<compile_context>
chip_gen: v6e
topology: v6e:2x2x1
jax: 0.10.0
libtpu: 0.0.40
codegen_flags: <defaults>
</compile_context>

<pallas_src>
import math
from functools import partial

import jax
import jax.numpy as jnp
from jax.experimental import pallas as pl
from jax.experimental.pallas import tpu as pltpu


def _layer_norm(v, gamma, beta, eps=1e-5):
    # f32 elementwise math (v5e VPU/EUP have no bf16 path).
    mu = jnp.mean(v, axis=-1, keepdims=True)
    var = jnp.mean((v - mu) ** 2, axis=-1, keepdims=True)
    return (v - mu) * jax.lax.rsqrt(var + eps) * gamma + beta


def vit_encoder_kernel(x_ref, bias_ref, wp_ref, bp_ref, pos_ref,
                       g1_ref, be1_ref, wqkv_ref, bqkv_ref, wo_ref, bo_ref,
                       g2_ref, be2_ref, w1_ref, bm1_ref, w2_ref, bm2_ref,
                       out_ref, *, num_heads):
    Bt, N, CPP = x_ref.shape
    D = wp_ref.shape[1]
    hd = D // num_heads
    R = Bt * N                                   # token rows in this block

    # ---- patch embedding (bf16 MXU, f32 accumulate) + positional embed ----
    x = x_ref[...].reshape(R, CPP)               # leading-dim merge (free)
    h = jnp.dot(x, wp_ref[...], preferred_element_type=jnp.float32) + bp_ref[...]
    # broadcast (N, D) positional table over the Bt images in this block
    h = (h.reshape(Bt, N, D) + pos_ref[...][None, :, :]).reshape(R, D)

    # ---- multi-head self-attention (pre-LN) ----
    hn = _layer_norm(h, g1_ref[...], be1_ref[...]).astype(jnp.bfloat16)

    # fused full-width QKV projection: (R, D) x (D, 3D); the 1/sqrt(hd) scale
    # is already folded into the Q columns / bias at wrapper time.
    qkv = jnp.dot(hn, wqkv_ref[...], preferred_element_type=jnp.float32) + bqkv_ref[...]
    q = qkv[:, 0 * D:1 * D].astype(jnp.bfloat16)      # D-aligned lane slices
    k = qkv[:, 1 * D:2 * D].astype(jnp.bfloat16)
    v = qkv[:, 2 * D:3 * D].astype(jnp.bfloat16)

    bias = bias_ref[...]                              # (R,R): 0 in-image, -1e30 across
    ctx_heads = []
    for hh in range(num_heads):                       # small static unroll
        sl = slice(hh * hd, (hh + 1) * hd)
        # block-diagonal packed attention: one (R,R) score matmul per head,
        # lane-dense f32 softmax over all R=Bt*N columns.
        s = jnp.einsum('nk,mk->nm', q[:, sl], k[:, sl],
                       preferred_element_type=jnp.float32) + bias
        s = s - jnp.max(s, axis=-1, keepdims=True)
        p = jnp.exp(s)
        p = p * pl.reciprocal(jnp.sum(p, axis=-1, keepdims=True), approx=True)
        ctx_heads.append(jnp.dot(p.astype(jnp.bfloat16), v[:, sl],
                                 preferred_element_type=jnp.float32))

    # single full-depth output projection on the relayouted (R, D) context
    ctx = jnp.concatenate(ctx_heads, axis=-1).astype(jnp.bfloat16)
    h = h + jnp.dot(ctx, wo_ref[...], preferred_element_type=jnp.float32) + bo_ref[...]

    # ---- MLP (pre-LN); GELU kept in f32 ----
    hn2 = _layer_norm(h, g2_ref[...], be2_ref[...]).astype(jnp.bfloat16)
    m = jnp.dot(hn2, w1_ref[...], preferred_element_type=jnp.float32) + bm1_ref[...]
    m = jax.nn.gelu(m, approximate=True)  # TODO(synk): reference enc2 may use exact-erf GELU
    m = jnp.dot(m.astype(jnp.bfloat16), w2_ref[...],
                preferred_element_type=jnp.float32) + bm2_ref[...]
    h = h + m

    out_ref[...] = h.reshape(Bt, N, D).astype(out_ref.dtype)


def init_params(key, *, C, P, N, D, mlp_ratio=4):
    ks = jax.random.split(key, 8)
    s = 0.02
    f32 = jnp.float32
    Dm = mlp_ratio * D
    return dict(
        wp=jax.random.normal(ks[0], (C * P * P, D), f32) * s,
        bp=jnp.zeros((1, D), f32),
        pos=jax.random.normal(ks[1], (N, D), f32) * s,
        g1=jnp.ones((1, D), f32), be1=jnp.zeros((1, D), f32),
        wq=jax.random.normal(ks[2], (D, D), f32) * s,
        wk=jax.random.normal(ks[3], (D, D), f32) * s,
        wv=jax.random.normal(ks[4], (D, D), f32) * s,
        bq=jnp.zeros((1, D), f32), bk=jnp.zeros((1, D), f32), bv=jnp.zeros((1, D), f32),
        wo=jax.random.normal(ks[5], (D, D), f32) * s,
        bo=jnp.zeros((1, D), f32),
        g2=jnp.ones((1, D), f32), be2=jnp.zeros((1, D), f32),
        w1=jax.random.normal(ks[6], (D, Dm), f32) * s,
        bm1=jnp.zeros((1, Dm), f32),
        w2=jax.random.normal(ks[7], (Dm, D), f32) * s,
        bm2=jnp.zeros((1, D), f32),
    )


_PARAM_ORDER = ["wp", "bp", "pos", "g1", "be1", "wqkv", "bqkv", "wo", "bo",
                "g2", "be2", "w1", "bm1", "w2", "bm2"]


def _pick_block_batch(B, N):
    """Images per grid step: want >=128 (pref 256) token rows per matmul and
    an even grid with >=8 steps (>=4 per v7x TensorCore) when achievable."""
    divisors = [c for c in range(1, B + 1) if B % c == 0]
    prefs = [
        lambda c: c * N >= 256 and (B // c) >= 8 and (B // c) % 2 == 0,
        lambda c: c * N >= 128 and (B // c) >= 8 and (B // c) % 2 == 0,
        lambda c: c * N >= 128 and (B // c) % 2 == 0,
        lambda c: c * N >= 128,
    ]
    for pred in prefs:
        ok = [c for c in divisors if pred(c)]
        if ok:
            return ok[0]
    return B


def vit2_encoder(x_nchw, params, *, patch=4, num_heads=4, block_batch=None,
                 out_dtype=jnp.bfloat16):
    B, C, Himg, Wimg = x_nchw.shape
    P = patch
    nH, nW = Himg // P, Wimg // P
    N = nH * nW
    CPP = C * P * P
    D = params["wp"].shape[1]
    Dm = params["w1"].shape[1]
    assert D % num_heads == 0, "hidden dim must be divisible by num_heads"
    hd = D // num_heads

    if block_batch is None:
        block_batch = _pick_block_batch(B, N)
    Bt = block_batch
    assert B % Bt == 0
    grid_b = B // Bt
    R = Bt * N

    # ---- patchify (trace-time glue): NCHW -> (B, N, C*P*P), bf16 activations
    xp = x_nchw.reshape(B, C, nH, P, nW, P)
    xp = jnp.transpose(xp, (0, 2, 4, 1, 3, 5)).reshape(B, N, CPP)
    xp = xp.astype(jnp.bfloat16)

    bf16, f32 = jnp.bfloat16, jnp.float32
    scale = 1.0 / math.sqrt(hd)

    # fused, full-width QKV weight; attention scale folded into the Q columns
    wqkv = jnp.concatenate(
        [params["wq"] * scale, params["wk"], params["wv"]], axis=1).astype(bf16)
    bqkv = jnp.concatenate(
        [params["bq"] * scale, params["bk"], params["bv"]], axis=1).astype(f32)

    kargs = dict(
        wp=params["wp"].astype(bf16),
        bp=params["bp"].astype(f32),
        pos=params["pos"].astype(f32),                 # (N, D); broadcast in-kernel
        g1=params["g1"].astype(f32), be1=params["be1"].astype(f32),
        wqkv=wqkv, bqkv=bqkv,
        wo=params["wo"].astype(bf16),
        bo=params["bo"].astype(f32),
        g2=params["g2"].astype(f32), be2=params["be2"].astype(f32),
        w1=params["w1"].astype(bf16), bm1=params["bm1"].astype(f32),
        w2=params["w2"].astype(bf16), bm2=params["bm2"].astype(f32),
    )

    # block-diagonal attention bias for the packed (R, R) score matmuls
    img_id = jnp.arange(R, dtype=jnp.int32) // N
    attn_bias = jnp.where(img_id[:, None] == img_id[None, :], 0.0, -1e30).astype(f32)

    def nbytes(a):
        return int(a.size) * jnp.dtype(a.dtype).itemsize

    weight_bytes = sum(nbytes(kargs[n]) for n in _PARAM_ORDER) + nbytes(attn_bias)
    # For ViT-L/H sized weights, single-buffer the constant-index weight blocks
    # (they are never re-fetched, so Buffered(1) halves their VMEM footprint).
    single_buffer_weights = weight_bytes > (8 << 20)

    def const_spec(a):   # full-array block, constant index -> fetched once
        idx = lambda b, _nd=a.ndim: (0,) * _nd
        if single_buffer_weights:
            return pl.BlockSpec(a.shape, idx, pipeline_mode=pl.Buffered(1))
        return pl.BlockSpec(a.shape, idx)

    in_specs = [pl.BlockSpec((Bt, N, CPP), lambda b: (b, 0, 0)),
                const_spec(attn_bias)]
    in_specs += [const_spec(kargs[name]) for name in _PARAM_ORDER]
    out_specs = pl.BlockSpec((Bt, N, D), lambda b: (b, 0, 0))

    # Generation-aware VMEM request: what this kernel needs (+headroom), never
    # more than half the chip's per-core capacity (v7x only has 64 MiB total).
    io_block_bytes = (Bt * N * CPP * 2) + (Bt * N * D * jnp.dtype(out_dtype).itemsize)
    wbuf = 1 if single_buffer_weights else 2
    vmem_needed = 2 * io_block_bytes + wbuf * weight_bytes + (2 << 20)
    try:
        vmem_cap = pltpu.get_tpu_info().vmem_capacity_bytes
    except Exception:
        vmem_cap = 64 << 20
    vmem_limit = int(min(vmem_cap // 2, max(4 << 20, 2 * vmem_needed)))

    # Advisory cost estimate so XLA schedules surrounding ops sensibly.
    flops_step = 2 * R * (CPP * D + 3 * D * D + 2 * R * D + D * D + 2 * D * Dm)
    transc_step = num_heads * R * R + R * Dm
    flops = grid_b * flops_step
    transcendentals = grid_b * transc_step
    bytes_accessed = int(xp.size) * 2 + B * N * D * jnp.dtype(out_dtype).itemsize + weight_bytes

    out = pl.pallas_call(
        partial(vit_encoder_kernel, num_heads=num_heads),
        out_shape=jax.ShapeDtypeStruct((B, N, D), out_dtype),
        grid=(grid_b,),
        in_specs=in_specs,
        out_specs=out_specs,
        compiler_params=pltpu.CompilerParams(
            dimension_semantics=("parallel",),
            vmem_limit_bytes=vmem_limit,
        ),
        cost_estimate=pl.CostEstimate(
            flops=int(flops),
            transcendentals=int(transcendentals),
            bytes_accessed=int(bytes_accessed),
        ),
    )(xp, attn_bias, *[kargs[name] for name in _PARAM_ORDER])
    return out


if __name__ == "__main__":
    key = jax.random.PRNGKey(0)
    k_x, k_p = jax.random.split(key)

    # Small but MXU/lane/pipeline-friendly demo shapes:
    #   batch=64 RGB 16x16 images, patch=4 -> 16 tokens/image,
    #   hidden D=128 (lane-dense bf16 output), 4 heads (hd=32), MLP 4x.
    # Auto block_batch picks 8 images/step -> 128 token rows per matmul and an
    # 8-long grid (>=4 pipelined steps per v7x TensorCore).
    B, C, Himg, Wimg = 64, 3, 16, 16
    P, D, NUM_HEADS = 4, 128, 4
    N = (Himg // P) * (Wimg // P)

    x = jax.random.normal(k_x, (B, C, Himg, Wimg), jnp.float32)
    params = init_params(k_p, C=C, P=P, N=N, D=D)

    feats = vit2_encoder(x, params, patch=P, num_heads=NUM_HEADS)
    feats = jax.block_until_ready(feats)

    assert feats.shape == (B, N, D)
    assert bool(jnp.all(jnp.isfinite(feats.astype(jnp.float32))))
    print("KERNEL_OK")
</pallas_src>

<mosaic_0001>
module attributes {stable_mosaic.version = 11 : i64} {
  func.func @vit_encoder_kernel(%arg0: i32, %arg1: memref<8x16x48xbf16, #tpu.memory_space<vmem>>, %arg2: memref<128x128xf32, #tpu.memory_space<vmem>>, %arg3: memref<48x128xbf16, #tpu.memory_space<vmem>>, %arg4: memref<1x128xf32, #tpu.memory_space<vmem>>, %arg5: memref<16x128xf32, #tpu.memory_space<vmem>>, %arg6: memref<1x128xf32, #tpu.memory_space<vmem>>, %arg7: memref<1x128xf32, #tpu.memory_space<vmem>>, %arg8: memref<128x384xbf16, #tpu.memory_space<vmem>>, %arg9: memref<1x384xf32, #tpu.memory_space<vmem>>, %arg10: memref<128x128xbf16, #tpu.memory_space<vmem>>, %arg11: memref<1x128xf32, #tpu.memory_space<vmem>>, %arg12: memref<1x128xf32, #tpu.memory_space<vmem>>, %arg13: memref<1x128xf32, #tpu.memory_space<vmem>>, %arg14: memref<128x512xbf16, #tpu.memory_space<vmem>>, %arg15: memref<1x512xf32, #tpu.memory_space<vmem>>, %arg16: memref<512x128xbf16, #tpu.memory_space<vmem>>, %arg17: memref<1x128xf32, #tpu.memory_space<vmem>>, %arg18: memref<8x16x128xbf16, #tpu.memory_space<vmem>>) attributes {dimension_semantics = [#tpu.dimension_semantics<parallel>], iteration_bounds = array<i64: 8>, scalar_prefetch = 0 : i64, scratch_operands = 0 : i64, tpu.core_type = #tpu.core_type<tc>, window_params = [{transform_indices = @transform_0, window_bounds = array<i64: 8, 16, 48>}, {pipeline_mode = #tpu.pipeline_mode<synchronous>, transform_indices = @transform_1, window_bounds = array<i64: 128, 128>}, {pipeline_mode = #tpu.pipeline_mode<synchronous>, transform_indices = @transform_2, window_bounds = array<i64: 48, 128>}, {pipeline_mode = #tpu.pipeline_mode<synchronous>, transform_indices = @transform_3, window_bounds = array<i64: 1, 128>}, {pipeline_mode = #tpu.pipeline_mode<synchronous>, transform_indices = @transform_4, window_bounds = array<i64: 16, 128>}, {pipeline_mode = #tpu.pipeline_mode<synchronous>, transform_indices = @transform_5, window_bounds = array<i64: 1, 128>}, {pipeline_mode = #tpu.pipeline_mode<synchronous>, transform_indices = @transform_6, window_bounds = array<i64: 1, 128>}, {pipeline_mode = #tpu.pipeline_mode<synchronous>, transform_indices = @transform_7, window_bounds = array<i64: 128, 384>}, {pipeline_mode = #tpu.pipeline_mode<synchronous>, transform_indices = @transform_8, window_bounds = array<i64: 1, 384>}, {pipeline_mode = #tpu.pipeline_mode<synchronous>, transform_indices = @transform_9, window_bounds = array<i64: 128, 128>}, {pipeline_mode = #tpu.pipeline_mode<synchronous>, transform_indices = @transform_10, window_bounds = array<i64: 1, 128>}, {pipeline_mode = #tpu.pipeline_mode<synchronous>, transform_indices = @transform_11, window_bounds = array<i64: 1, 128>}, {pipeline_mode = #tpu.pipeline_mode<synchronous>, transform_indices = @transform_12, window_bounds = array<i64: 1, 128>}, {pipeline_mode = #tpu.pipeline_mode<synchronous>, transform_indices = @transform_13, window_bounds = array<i64: 128, 512>}, {pipeline_mode = #tpu.pipeline_mode<synchronous>, transform_indices = @transform_14, window_bounds = array<i64: 1, 512>}, {pipeline_mode = #tpu.pipeline_mode<synchronous>, transform_indices = @transform_15, window_bounds = array<i64: 512, 128>}, {pipeline_mode = #tpu.pipeline_mode<synchronous>, transform_indices = @transform_16, window_bounds = array<i64: 1, 128>}, {transform_indices = @transform_17, window_bounds = array<i64: 8, 16, 128>}]} {
    %c0 = arith.constant 0 : index
    %c0_0 = arith.constant 0 : index
    %c0_1 = arith.constant 0 : index
    %0 = vector.load %arg1[%c0, %c0_0, %c0_1] : memref<8x16x48xbf16, #tpu.memory_space<vmem>>, vector<8x16x48xbf16>
    %1 = vector.shape_cast %0 : vector<8x16x48xbf16> to vector<128x48xbf16>
    %c0_2 = arith.constant 0 : index
    %c0_3 = arith.constant 0 : index
    %2 = vector.load %arg3[%c0_2, %c0_3] : memref<48x128xbf16, #tpu.memory_space<vmem>>, vector<48x128xbf16>
    %cst = arith.constant dense<0.000000e+00> : vector<128x128xf32>
    %3 = tpu.matmul %1, %2, %cst {dimension_numbers = #tpu.dot_dimension_numbers<[1], [0], [0], [1], [0, 0, 1, 1], [], []>} : vector<128x48xbf16>, vector<48x128xbf16>, vector<128x128xf32> -> vector<128x128xf32>
    %c0_4 = arith.constant 0 : index
    %c0_5 = arith.constant 0 : index
    %4 = vector.load %arg4[%c0_4, %c0_5] : memref<1x128xf32, #tpu.memory_space<vmem>>, vector<1x128xf32>
    %5 = vector.broadcast %4 : vector<1x128xf32> to vector<128x128xf32>
    %6 = arith.addf %3, %5 : vector<128x128xf32>
    %7 = vector.shape_cast %6 : vector<128x128xf32> to vector<8x16x128xf32>
    %c0_6 = arith.constant 0 : index
    %c0_7 = arith.constant 0 : index
    %8 = vector.load %arg5[%c0_6, %c0_7] : memref<16x128xf32, #tpu.memory_space<vmem>>, vector<16x128xf32>
    %9 = vector.shape_cast %8 : vector<16x128xf32> to vector<1x16x128xf32>
    %10 = vector.broadcast %9 : vector<1x16x128xf32> to vector<8x16x128xf32>
    %11 = arith.addf %7, %10 : vector<8x16x128xf32>
    %12 = vector.shape_cast %11 : vector<8x16x128xf32> to vector<128x128xf32>
    %c0_8 = arith.constant 0 : index
    %c0_9 = arith.constant 0 : index
    %13 = vector.load %arg6[%c0_8, %c0_9] : memref<1x128xf32, #tpu.memory_space<vmem>>, vector<1x128xf32>
    %c0_10 = arith.constant 0 : index
    %c0_11 = arith.constant 0 : index
    %14 = vector.load %arg7[%c0_10, %c0_11] : memref<1x128xf32, #tpu.memory_space<vmem>>, vector<1x128xf32>
    %cst_12 = arith.constant dense<0.000000e+00> : vector<128xf32>
    %15 = vector.multi_reduction <add>, %12, %cst_12 [1] : vector<128x128xf32> to vector<128xf32>
    %16 = vector.shape_cast %15 : vector<128xf32> to vector<128x1xf32>
    %cst_13 = arith.constant 1.280000e+02 : f32
    %17 = vector.broadcast %cst_13 : f32 to vector<128x1xf32>
    %18 = arith.divf %16, %17 : vector<128x1xf32>
    %19 = vector.broadcast %18 : vector<128x1xf32> to vector<128x128xf32>
    %20 = arith.subf %12, %19 : vector<128x128xf32>
    %21 = arith.mulf %20, %20 : vector<128x128xf32>
    %cst_14 = arith.constant dense<0.000000e+00> : vector<128xf32>
    %22 = vector.multi_reduction <add>, %21, %cst_14 [1] : vector<128x128xf32> to vector<128xf32>
    %23 = vector.shape_cast %22 : vector<128xf32> to vector<128x1xf32>
    %cst_15 = arith.constant 1.280000e+02 : f32
    %24 = vector.broadcast %cst_15 : f32 to vector<128x1xf32>
    %25 = arith.divf %23, %24 : vector<128x1xf32>
    %26 = vector.broadcast %18 : vector<128x1xf32> to vector<128x128xf32>
    %27 = arith.subf %12, %26 : vector<128x128xf32>
    %cst_16 = arith.constant 9.99999974E-6 : f32
    %28 = vector.broadcast %cst_16 : f32 to vector<128x1xf32>
    %29 = arith.addf %25, %28 : vector<128x1xf32>
    %30 = math.rsqrt %29 : vector<128x1xf32>
    %31 = vector.broadcast %30 : vector<128x1xf32> to vector<128x128xf32>
    %32 = arith.mulf %27, %31 : vector<128x128xf32>
    %33 = vector.broadcast %13 : vector<1x128xf32> to vector<128x128xf32>
    %34 = arith.mulf %32, %33 : vector<128x128xf32>
    %35 = vector.broadcast %14 : vector<1x128xf32> to vector<128x128xf32>
    %36 = arith.addf %34, %35 : vector<128x128xf32>
    %37 = arith.truncf %36 : vector<128x128xf32> to vector<128x128xbf16>
    %c0_17 = arith.constant 0 : index
    %c0_18 = arith.constant 0 : index
    %38 = vector.load %arg8[%c0_17, %c0_18] : memref<128x384xbf16, #tpu.memory_space<vmem>>, vector<128x384xbf16>
    %cst_19 = arith.constant dense<0.000000e+00> : vector<128x384xf32>
    %39 = tpu.matmul %37, %38, %cst_19 {dimension_numbers = #tpu.dot_dimension_numbers<[1], [0], [0], [1], [0, 0, 1, 1], [], []>} : vector<128x128xbf16>, vector<128x384xbf16>, vector<128x384xf32> -> vector<128x384xf32>
    %c0_20 = arith.constant 0 : index
    %c0_21 = arith.constant 0 : index
    %40 = vector.load %arg9[%c0_20, %c0_21] : memref<1x384xf32, #tpu.memory_space<vmem>>, vector<1x384xf32>
    %41 = vector.broadcast %40 : vector<1x384xf32> to vector<128x384xf32>
    %42 = arith.addf %39, %41 : vector<128x384xf32>
    %43 = vector.extract_strided_slice %42 {offsets = [0, 0], sizes = [128, 128], strides = [1, 1]} : vector<128x384xf32> to vector<128x128xf32>
    %44 = arith.truncf %43 : vector<128x128xf32> to vector<128x128xbf16>
    %45 = vector.extract_strided_slice %42 {offsets = [0, 128], sizes = [128, 128], strides = [1, 1]} : vector<128x384xf32> to vector<128x128xf32>
    %46 = arith.truncf %45 : vector<128x128xf32> to vector<128x128xbf16>
    %47 = vector.extract_strided_slice %42 {offsets = [0, 256], sizes = [128, 128], strides = [1, 1]} : vector<128x384xf32> to vector<128x128xf32>
    %48 = arith.truncf %47 : vector<128x128xf32> to vector<128x128xbf16>
    %c0_22 = arith.constant 0 : index
    %c0_23 = arith.constant 0 : index
    %49 = vector.load %arg2[%c0_22, %c0_23] : memref<128x128xf32, #tpu.memory_space<vmem>>, vector<128x128xf32>
    %50 = vector.extract_strided_slice %44 {offsets = [0, 0], sizes = [128, 32], strides = [1, 1]} : vector<128x128xbf16> to vector<128x32xbf16>
    %51 = vector.extract_strided_slice %46 {offsets = [0, 0], sizes = [128, 32], strides = [1, 1]} : vector<128x128xbf16> to vector<128x32xbf16>
    "tpu.trace_start"() <{level = 10 : i32, message = "nk,mk->nm"}> : () -> ()
    %cst_24 = arith.constant dense<0.000000e+00> : vector<128x128xf32>
    %52 = tpu.matmul %50, %51, %cst_24 {dimension_numbers = #tpu.dot_dimension_numbers<[1], [1], [0], [0], [0, 0, 1, 0], [], []>} : vector<128x32xbf16>, vector<128x32xbf16>, vector<128x128xf32> -> vector<128x128xf32>
    "tpu.trace_stop"() : () -> ()
    %53 = arith.addf %52, %49 : vector<128x128xf32>
    %cst_25 = arith.constant dense<0xFF800000> : vector<128xf32>
    %54 = vector.multi_reduction <maximumf>, %53, %cst_25 [1] : vector<128x128xf32> to vector<128xf32>
    %55 = vector.shape_cast %54 : vector<128xf32> to vector<128x1xf32>
    %56 = vector.broadcast %55 : vector<128x1xf32> to vector<128x128xf32>
    %57 = arith.subf %53, %56 : vector<128x128xf32>
    %58 = math.exp %57 : vector<128x128xf32>
    %cst_26 = arith.constant dense<0.000000e+00> : vector<128xf32>
    %59 = vector.multi_reduction <add>, %58, %cst_26 [1] : vector<128x128xf32> to vector<128xf32>
    %60 = vector.shape_cast %59 : vector<128xf32> to vector<128x1xf32>
    %61 = tpu.reciprocal %60 {approx = true} : vector<128x1xf32> -> vector<128x1xf32>
    %62 = vector.broadcast %61 : vector<128x1xf32> to vector<128x128xf32>
    %63 = arith.mulf %58, %62 : vector<128x128xf32>
    %64 = arith.truncf %63 : vector<128x128xf32> to vector<128x128xbf16>
    %65 = vector.extract_strided_slice %48 {offsets = [0, 0], sizes = [128, 32], strides = [1, 1]} : vector<128x128xbf16> to vector<128x32xbf16>
    %cst_27 = arith.constant dense<0.000000e+00> : vector<128x32xf32>
    %66 = tpu.matmul %64, %65, %cst_27 {dimension_numbers = #tpu.dot_dimension_numbers<[1], [0], [0], [1], [0, 0, 1, 1], [], []>} : vector<128x128xbf16>, vector<128x32xbf16>, vector<128x32xf32> -> vector<128x32xf32>
    %67 = vector.extract_strided_slice %44 {offsets = [0, 32], sizes = [128, 32], strides = [1, 1]} : vector<128x128xbf16> to vector<128x32xbf16>
    %68 = vector.extract_strided_slice %46 {offsets = [0, 32], sizes = [128, 32], strides = [1, 1]} : vector<128x128xbf16> to vector<128x32xbf16>
    "tpu.trace_start"() <{level = 10 : i32, message = "nk,mk->nm"}> : () -> ()
    %cst_28 = arith.constant dense<0.000000e+00> : vector<128x128xf32>
    %69 = tpu.matmul %67, %68, %cst_28 {dimension_numbers = #tpu.dot_dimension_numbers<[1], [1], [0], [0], [0, 0, 1, 0], [], []>} : vector<128x32xbf16>, vector<128x32xbf16>, vector<128x128xf32> -> vector<128x128xf32>
    "tpu.trace_stop"() : () -> ()
    %70 = arith.addf %69, %49 : vector<128x128xf32>
    %cst_29 = arith.constant dense<0xFF800000> : vector<128xf32>
    %71 = vector.multi_reduction <maximumf>, %70, %cst_29 [1] : vector<128x128xf32> to vector<128xf32>
    %72 = vector.shape_cast %71 : vector<128xf32> to vector<128x1xf32>
    %73 = vector.broadcast %72 : vector<128x1xf32> to vector<128x128xf32>
    %74 = arith.subf %70, %73 : vector<128x128xf32>
    %75 = math.exp %74 : vector<128x128xf32>
    %cst_30 = arith.constant dense<0.000000e+00> : vector<128xf32>
    %76 = vector.multi_reduction <add>, %75, %cst_30 [1] : vector<128x128xf32> to vector<128xf32>
    %77 = vector.shape_cast %76 : vector<128xf32> to vector<128x1xf32>
    %78 = tpu.reciprocal %77 {approx = true} : vector<128x1xf32> -> vector<128x1xf32>
    %79 = vector.broadcast %78 : vector<128x1xf32> to vector<128x128xf32>
    %80 = arith.mulf %75, %79 : vector<128x128xf32>
    %81 = arith.truncf %80 : vector<128x128xf32> to vector<128x128xbf16>
    %82 = vector.extract_strided_slice %48 {offsets = [0, 32], sizes = [128, 32], strides = [1, 1]} : vector<128x128xbf16> to vector<128x32xbf16>
    %cst_31 = arith.constant dense<0.000000e+00> : vector<128x32xf32>
    %83 = tpu.matmul %81, %82, %cst_31 {dimension_numbers = #tpu.dot_dimension_numbers<[1], [0], [0], [1], [0, 0, 1, 1], [], []>} : vector<128x128xbf16>, vector<128x32xbf16>, vector<128x32xf32> -> vector<128x32xf32>
    %84 = vector.extract_strided_slice %44 {offsets = [0, 64], sizes = [128, 32], strides = [1, 1]} : vector<128x128xbf16> to vector<128x32xbf16>
    %85 = vector.extract_strided_slice %46 {offsets = [0, 64], sizes = [128, 32], strides = [1, 1]} : vector<128x128xbf16> to vector<128x32xbf16>
    "tpu.trace_start"() <{level = 10 : i32, message = "nk,mk->nm"}> : () -> ()
    %cst_32 = arith.constant dense<0.000000e+00> : vector<128x128xf32>
    %86 = tpu.matmul %84, %85, %cst_32 {dimension_numbers = #tpu.dot_dimension_numbers<[1], [1], [0], [0], [0, 0, 1, 0], [], []>} : vector<128x32xbf16>, vector<128x32xbf16>, vector<128x128xf32> -> vector<128x128xf32>
    "tpu.trace_stop"() : () -> ()
    %87 = arith.addf %86, %49 : vector<128x128xf32>
    %cst_33 = arith.constant dense<0xFF800000> : vector<128xf32>
    %88 = vector.multi_reduction <maximumf>, %87, %cst_33 [1] : vector<128x128xf32> to vector<128xf32>
    %89 = vector.shape_cast %88 : vector<128xf32> to vector<128x1xf32>
    %90 = vector.broadcast %89 : vector<128x1xf32> to vector<128x128xf32>
    %91 = arith.subf %87, %90 : vector<128x128xf32>
    %92 = math.exp %91 : vector<128x128xf32>
    %cst_34 = arith.constant dense<0.000000e+00> : vector<128xf32>
    %93 = vector.multi_reduction <add>, %92, %cst_34 [1] : vector<128x128xf32> to vector<128xf32>
    %94 = vector.shape_cast %93 : vector<128xf32> to vector<128x1xf32>
    %95 = tpu.reciprocal %94 {approx = true} : vector<128x1xf32> -> vector<128x1xf32>
    %96 = vector.broadcast %95 : vector<128x1xf32> to vector<128x128xf32>
    %97 = arith.mulf %92, %96 : vector<128x128xf32>
    %98 = arith.truncf %97 : vector<128x128xf32> to vector<128x128xbf16>
    %99 = vector.extract_strided_slice %48 {offsets = [0, 64], sizes = [128, 32], strides = [1, 1]} : vector<128x128xbf16> to vector<128x32xbf16>
    %cst_35 = arith.constant dense<0.000000e+00> : vector<128x32xf32>
    %100 = tpu.matmul %98, %99, %cst_35 {dimension_numbers = #tpu.dot_dimension_numbers<[1], [0], [0], [1], [0, 0, 1, 1], [], []>} : vector<128x128xbf16>, vector<128x32xbf16>, vector<128x32xf32> -> vector<128x32xf32>
    %101 = vector.extract_strided_slice %44 {offsets = [0, 96], sizes = [128, 32], strides = [1, 1]} : vector<128x128xbf16> to vector<128x32xbf16>
    %102 = vector.extract_strided_slice %46 {offsets = [0, 96], sizes = [128, 32], strides = [1, 1]} : vector<128x128xbf16> to vector<128x32xbf16>
    "tpu.trace_start"() <{level = 10 : i32, message = "nk,mk->nm"}> : () -> ()
    %cst_36 = arith.constant dense<0.000000e+00> : vector<128x128xf32>
    %103 = tpu.matmul %101, %102, %cst_36 {dimension_numbers = #tpu.dot_dimension_numbers<[1], [1], [0], [0], [0, 0, 1, 0], [], []>} : vector<128x32xbf16>, vector<128x32xbf16>, vector<128x128xf32> -> vector<128x128xf32>
    "tpu.trace_stop"() : () -> ()
    %104 = arith.addf %103, %49 : vector<128x128xf32>
    %cst_37 = arith.constant dense<0xFF800000> : vector<128xf32>
    %105 = vector.multi_reduction <maximumf>, %104, %cst_37 [1] : vector<128x128xf32> to vector<128xf32>
    %106 = vector.shape_cast %105 : vector<128xf32> to vector<128x1xf32>
    %107 = vector.broadcast %106 : vector<128x1xf32> to vector<128x128xf32>
    %108 = arith.subf %104, %107 : vector<128x128xf32>
    %109 = math.exp %108 : vector<128x128xf32>
    %cst_38 = arith.constant dense<0.000000e+00> : vector<128xf32>
    %110 = vector.multi_reduction <add>, %109, %cst_38 [1] : vector<128x128xf32> to vector<128xf32>
    %111 = vector.shape_cast %110 : vector<128xf32> to vector<128x1xf32>
    %112 = tpu.reciprocal %111 {approx = true} : vector<128x1xf32> -> vector<128x1xf32>
    %113 = vector.broadcast %112 : vector<128x1xf32> to vector<128x128xf32>
    %114 = arith.mulf %109, %113 : vector<128x128xf32>
    %115 = arith.truncf %114 : vector<128x128xf32> to vector<128x128xbf16>
    %116 = vector.extract_strided_slice %48 {offsets = [0, 96], sizes = [128, 32], strides = [1, 1]} : vector<128x128xbf16> to vector<128x32xbf16>
    %cst_39 = arith.constant dense<0.000000e+00> : vector<128x32xf32>
    %117 = tpu.matmul %115, %116, %cst_39 {dimension_numbers = #tpu.dot_dimension_numbers<[1], [0], [0], [1], [0, 0, 1, 1], [], []>} : vector<128x128xbf16>, vector<128x32xbf16>, vector<128x32xf32> -> vector<128x32xf32>
    %118 = tpu.concatenate %66, %83, %100, %117 in 1 : vector<128x32xf32>, vector<128x32xf32>, vector<128x32xf32>, vector<128x32xf32> -> vector<128x128xf32>
    %119 = arith.truncf %118 : vector<128x128xf32> to vector<128x128xbf16>
    %c0_40 = arith.constant 0 : index
    %c0_41 = arith.constant 0 : index
    %120 = vector.load %arg10[%c0_40, %c0_41] : memref<128x128xbf16, #tpu.memory_space<vmem>>, vector<128x128xbf16>
    %cst_42 = arith.constant dense<0.000000e+00> : vector<128x128xf32>
    %121 = tpu.matmul %119, %120, %cst_42 {dimension_numbers = #tpu.dot_dimension_numbers<[1], [0], [0], [1], [0, 0, 1, 1], [], []>} : vector<128x128xbf16>, vector<128x128xbf16>, vector<128x128xf32> -> vector<128x128xf32>
    %122 = arith.addf %12, %121 : vector<128x128xf32>
    %c0_43 = arith.constant 0 : index
    %c0_44 = arith.constant 0 : index
    %123 = vector.load %arg11[%c0_43, %c0_44] : memref<1x128xf32, #tpu.memory_space<vmem>>, vector<1x128xf32>
    %124 = vector.broadcast %123 : vector<1x128xf32> to vector<128x128xf32>
    %125 = arith.addf %122, %124 : vector<128x128xf32>
    %c0_45 = arith.constant 0 : index
    %c0_46 = arith.constant 0 : index
    %126 = vector.load %arg12[%c0_45, %c0_46] : memref<1x128xf32, #tpu.memory_space<vmem>>, vector<1x128xf32>
    %c0_47 = arith.constant 0 : index
    %c0_48 = arith.constant 0 : index
    %127 = vector.load %arg13[%c0_47, %c0_48] : memref<1x128xf32, #tpu.memory_space<vmem>>, vector<1x128xf32>
    %cst_49 = arith.constant dense<0.000000e+00> : vector<128xf32>
    %128 = vector.multi_reduction <add>, %125, %cst_49 [1] : vector<128x128xf32> to vector<128xf32>
    %129 = vector.shape_cast %128 : vector<128xf32> to vector<128x1xf32>
    %cst_50 = arith.constant 1.280000e+02 : f32
    %130 = vector.broadcast %cst_50 : f32 to vector<128x1xf32>
    %131 = arith.divf %129, %130 : vector<128x1xf32>
    %132 = vector.broadcast %131 : vector<128x1xf32> to vector<128x128xf32>
    %133 = arith.subf %125, %132 : vector<128x128xf32>
    %134 = arith.mulf %133, %133 : vector<128x128xf32>
    %cst_51 = arith.constant dense<0.000000e+00> : vector<128xf32>
    %135 = vector.multi_reduction <add>, %134, %cst_51 [1] : vector<128x128xf32> to vector<128xf32>
    %136 = vector.shape_cast %135 : vector<128xf32> to vector<128x1xf32>
    %cst_52 = arith.constant 1.280000e+02 : f32
    %137 = vector.broadcast %cst_52 : f32 to vector<128x1xf32>
    %138 = arith.divf %136, %137 : vector<128x1xf32>
    %139 = vector.broadcast %131 : vector<128x1xf32> to vector<128x128xf32>
    %140 = arith.subf %125, %139 : vector<128x128xf32>
    %cst_53 = arith.constant 9.99999974E-6 : f32
    %141 = vector.broadcast %cst_53 : f32 to vector<128x1xf32>
    %142 = arith.addf %138, %141 : vector<128x1xf32>
    %143 = math.rsqrt %142 : vector<128x1xf32>
    %144 = vector.broadcast %143 : vector<128x1xf32> to vector<128x128xf32>
    %145 = arith.mulf %140, %144 : vector<128x128xf32>
    %146 = vector.broadcast %126 : vector<1x128xf32> to vector<128x128xf32>
    %147 = arith.mulf %145, %146 : vector<128x128xf32>
    %148 = vector.broadcast %127 : vector<1x128xf32> to vector<128x128xf32>
    %149 = arith.addf %147, %148 : vector<128x128xf32>
    %150 = arith.truncf %149 : vector<128x128xf32> to vector<128x128xbf16>
    %c0_54 = arith.constant 0 : index
    %c0_55 = arith.constant 0 : index
    %151 = vector.load %arg14[%c0_54, %c0_55] : memref<128x512xbf16, #tpu.memory_space<vmem>>, vector<128x512xbf16>
    %cst_56 = arith.constant dense<0.000000e+00> : vector<128x512xf32>
    %152 = tpu.matmul %150, %151, %cst_56 {dimension_numbers = #tpu.dot_dimension_numbers<[1], [0], [0], [1], [0, 0, 1, 1], [], []>} : vector<128x128xbf16>, vector<128x512xbf16>, vector<128x512xf32> -> vector<128x512xf32>
    %c0_57 = arith.constant 0 : index
    %c0_58 = arith.constant 0 : index
    %153 = vector.load %arg15[%c0_57, %c0_58] : memref<1x512xf32, #tpu.memory_space<vmem>>, vector<1x512xf32>
    %154 = vector.broadcast %153 : vector<1x512xf32> to vector<128x512xf32>
    %155 = arith.addf %152, %154 : vector<128x512xf32>
    %156 = arith.mulf %155, %155 : vector<128x512xf32>
    %157 = arith.mulf %155, %156 : vector<128x512xf32>
    %cst_59 = arith.constant 4.471500e-02 : f32
    %158 = vector.broadcast %cst_59 : f32 to vector<128x512xf32>
    %159 = arith.mulf %158, %157 : vector<128x512xf32>
    %160 = arith.addf %155, %159 : vector<128x512xf32>
    %cst_60 = arith.constant 0.797884583 : f32
    %161 = vector.broadcast %cst_60 : f32 to vector<128x512xf32>
    %162 = arith.mulf %161, %160 : vector<128x512xf32>
    %163 = math.tanh %162 : vector<128x512xf32>
    %cst_61 = arith.constant 1.000000e+00 : f32
    %164 = vector.broadcast %cst_61 : f32 to vector<128x512xf32>
    %165 = arith.addf %164, %163 : vector<128x512xf32>
    %cst_62 = arith.constant 5.000000e-01 : f32
    %166 = vector.broadcast %cst_62 : f32 to vector<128x512xf32>
    %167 = arith.mulf %166, %165 : vector<128x512xf32>
    %168 = arith.mulf %155, %167 : vector<128x512xf32>
    %169 = arith.truncf %168 : vector<128x512xf32> to vector<128x512xbf16>
    %c0_63 = arith.constant 0 : index
    %c0_64 = arith.constant 0 : index
    %170 = vector.load %arg16[%c0_63, %c0_64] : memref<512x128xbf16, #tpu.memory_space<vmem>>, vector<512x128xbf16>
    %cst_65 = arith.constant dense<0.000000e+00> : vector<128x128xf32>
    %171 = tpu.matmul %169, %170, %cst_65 {dimension_numbers = #tpu.dot_dimension_numbers<[1], [0], [0], [1], [0, 0, 1, 1], [], []>} : vector<128x512xbf16>, vector<512x128xbf16>, vector<128x128xf32> -> vector<128x128xf32>
    %c0_66 = arith.constant 0 : index
    %c0_67 = arith.constant 0 : index
    %172 = vector.load %arg17[%c0_66, %c0_67] : memref<1x128xf32, #tpu.memory_space<vmem>>, vector<1x128xf32>
    %173 = vector.broadcast %172 : vector<1x128xf32> to vector<128x128xf32>
    %174 = arith.addf %171, %173 : vector<128x128xf32>
    %175 = arith.addf %125, %174 : vector<128x128xf32>
    %176 = vector.shape_cast %175 : vector<128x128xf32> to vector<8x16x128xf32>
    %177 = arith.truncf %176 : vector<8x16x128xf32> to vector<8x16x128xbf16>
    %c0_68 = arith.constant 0 : index
    %c0_69 = arith.constant 0 : index
    %c0_70 = arith.constant 0 : index
    %178 = vector.load %arg18[%c0_68, %c0_69, %c0_70] : memref<8x16x128xbf16, #tpu.memory_space<vmem>>, vector<8x16x128xbf16>
    tpu.vector_store %arg18[%c0_68, %c0_69, %c0_70], %177 {strides = array<i32>} : memref<8x16x128xbf16, #tpu.memory_space<vmem>>, vector<8x16x128xbf16>,
    return
  }
  func.func @transform_0(%arg0: i32) -> (i32, i32, i32) {
    %c0_i32 = arith.constant 0 : i32
    %c0_i32_0 = arith.constant 0 : i32
    %c0_i32_1 = arith.constant 0 : i32
    return %arg0, %c0_i32, %c0_i32_0 : i32, i32, i32
  }
  func.func @transform_1(%arg0: i32) -> (i32, i32) {
    %c0_i32 = arith.constant 0 : i32
    %c0_i32_0 = arith.constant 0 : i32
    %c0_i32_1 = arith.constant 0 : i32
    return %c0_i32, %c0_i32_0 : i32, i32
  }
  func.func @transform_2(%arg0: i32) -> (i32, i32) {
    %c0_i32 = arith.constant 0 : i32
    %c0_i32_0 = arith.constant 0 : i32
    %c0_i32_1 = arith.constant 0 : i32
    return %c0_i32, %c0_i32_0 : i32, i32
  }
  func.func @transform_3(%arg0: i32) -> (i32, i32) {
    %c0_i32 = arith.constant 0 : i32
    %c0_i32_0 = arith.constant 0 : i32
    %c0_i32_1 = arith.constant 0 : i32
    return %c0_i32, %c0_i32_0 : i32, i32
  }
  func.func @transform_4(%arg0: i32) -> (i32, i32) {
    %c0_i32 = arith.constant 0 : i32
    %c0_i32_0 = arith.constant 0 : i32
    %c0_i32_1 = arith.constant 0 : i32
    return %c0_i32, %c0_i32_0 : i32, i32
  }
  func.func @transform_5(%arg0: i32) -> (i32, i32) {
    %c0_i32 = arith.constant 0 : i32
    %c0_i32_0 = arith.constant 0 : i32
    %c0_i32_1 = arith.constant 0 : i32
    return %c0_i32, %c0_i32_0 : i32, i32
  }
  func.func @transform_6(%arg0: i32) -> (i32, i32) {
    %c0_i32 = arith.constant 0 : i32
    %c0_i32_0 = arith.constant 0 : i32
    %c0_i32_1 = arith.constant 0 : i32
    return %c0_i32, %c0_i32_0 : i32, i32
  }
  func.func @transform_7(%arg0: i32) -> (i32, i32) {
    %c0_i32 = arith.constant 0 : i32
    %c0_i32_0 = arith.constant 0 : i32
    %c0_i32_1 = arith.constant 0 : i32
    return %c0_i32, %c0_i32_0 : i32, i32
  }
  func.func @transform_8(%arg0: i32) -> (i32, i32) {
    %c0_i32 = arith.constant 0 : i32
    %c0_i32_0 = arith.constant 0 : i32
    %c0_i32_1 = arith.constant 0 : i32
    return %c0_i32, %c0_i32_0 : i32, i32
  }
  func.func @transform_9(%arg0: i32) -> (i32, i32) {
    %c0_i32 = arith.constant 0 : i32
    %c0_i32_0 = arith.constant 0 : i32
    %c0_i32_1 = arith.constant 0 : i32
    return %c0_i32, %c0_i32_0 : i32, i32
  }
  func.func @transform_10(%arg0: i32) -> (i32, i32) {
    %c0_i32 = arith.constant 0 : i32
    %c0_i32_0 = arith.constant 0 : i32
    %c0_i32_1 = arith.constant 0 : i32
    return %c0_i32, %c0_i32_0 : i32, i32
  }
  func.func @transform_11(%arg0: i32) -> (i32, i32) {
    %c0_i32 = arith.constant 0 : i32
    %c0_i32_0 = arith.constant 0 : i32
    %c0_i32_1 = arith.constant 0 : i32
    return %c0_i32, %c0_i32_0 : i32, i32
  }
  func.func @transform_12(%arg0: i32) -> (i32, i32) {
    %c0_i32 = arith.constant 0 : i32
    %c0_i32_0 = arith.constant 0 : i32
    %c0_i32_1 = arith.constant 0 : i32
    return %c0_i32, %c0_i32_0 : i32, i32
  }
  func.func @transform_13(%arg0: i32) -> (i32, i32) {
    %c0_i32 = arith.constant 0 : i32
    %c0_i32_0 = arith.constant 0 : i32
    %c0_i32_1 = arith.constant 0 : i32
    return %c0_i32, %c0_i32_0 : i32, i32
  }
  func.func @transform_14(%arg0: i32) -> (i32, i32) {
    %c0_i32 = arith.constant 0 : i32
    %c0_i32_0 = arith.constant 0 : i32
    %c0_i32_1 = arith.constant 0 : i32
    return %c0_i32, %c0_i32_0 : i32, i32
  }
  func.func @transform_15(%arg0: i32) -> (i32, i32) {
    %c0_i32 = arith.constant 0 : i32
    %c0_i32_0 = arith.constant 0 : i32
    %c0_i32_1 = arith.constant 0 : i32
    return %c0_i32, %c0_i32_0 : i32, i32
  }
  func.func @transform_16(%arg0: i32) -> (i32, i32) {
    %c0_i32 = arith.constant 0 : i32
    %c0_i32_0 = arith.constant 0 : i32
    %c0_i32_1 = arith.constant 0 : i32
    return %c0_i32, %c0_i32_0 : i32, i32
  }
  func.func @transform_17(%arg0: i32) -> (i32, i32, i32) {
    %c0_i32 = arith.constant 0 : i32
    %c0_i32_0 = arith.constant 0 : i32
    %c0_i32_1 = arith.constant 0 : i32
    return %arg0, %c0_i32, %c0_i32_0 : i32, i32, i32
  }
}

</mosaic_0001>

<bundles_post_ra>
// kernel: tpu_custom_call.1
= control target key start
LH: loop header
LB: loop body
LE: loop exit
PB: predicated region body
PF: predicated region fallthrough
CT: control target
= control target key end

     0   :  { %s10771_s0 = inlined_call_operand.vmem [shape: bf16[64,16,48], index: 0, kind: input, shape index: {}]   ;;  %s10772_s1 = inlined_call_operand.vmem [shape: f32[128,128], index: 1, kind: input, shape index: {}]   ;;  %s10773_s2 = inlined_call_operand.hbm [shape: bf16[48,128], index: 2, kind: input, shape index: {}]   ;;  %s10774_s3 = inlined_call_operand.hbm [shape: f32[1,128], index: 3, kind: input, shape index: {}]   ;;  %s10775_s4 = inlined_call_operand.hbm [shape: f32[16,128], index: 4, kind: input, shape index: {}]   ;;  %s10776_s5 = inlined_call_operand.vmem [shape: f32[1,128], index: 5, kind: input, shape index: {}]   ;;  %s10777_s6 = inlined_call_operand.vmem [shape: f32[1,128], index: 6, kind: input, shape index: {}]   ;;  %s10778_s7 = inlined_call_operand.vmem [shape: bf16[128,384], index: 7, kind: input, shape index: {}]   ;;  %s10779_s8 = inlined_call_operand.vmem [shape: f32[1,384], index: 8, kind: input, shape index: {}]   ;;  %s10780_s9 = inlined_call_operand.vmem [shape: bf16[128,128], index: 9, kind: input, shape index: {}]   ;;  %s10781_s10 = inlined_call_operand.vmem [shape: f32[1,128], index: 10, kind: input, shape index: {}]   ;;  %s10782_s11 = inlined_call_operand.hbm [shape: f32[1,128], index: 11, kind: input, shape index: {}]   ;;  %s10783_s12 = inlined_call_operand.vmem [shape: f32[1,128], index: 12, kind: input, shape index: {}]   ;;  %s10784_s13 = inlined_call_operand.vmem [shape: bf16[128,512], index: 13, kind: input, shape index: {}]   ;;  %s10785_s14 = inlined_call_operand.vmem [shape: f32[1,512], index: 14, kind: input, shape index: {}]   ;;  %s10786_s15 = inlined_call_operand.vmem [shape: bf16[512,128], index: 15, kind: input, shape index: {}]   ;;  %s10787_s16 = inlined_call_operand.vmem [shape: f32[1,128], index: 16, kind: input, shape index: {}]   ;;  %s10788_s17 = inlined_call_operand.hbm [shape: bf16[64,16,128], index: 17, kind: output, shape index: {}]  }
   0x1   :  { %10882 = sst [smem:[#allocation71_spill]] %s10771_s0 }
   0x2   :  { %10883 = sst [smem:[#allocation72_spill]] %s10772_s1 }
   0x3   :  { %10884 = sst [smem:[#allocation73_spill]] %s10774_s3 }
   0x4   :  { %22 = vsyncpa [#allocation3], 0 }
   0x5   :  { %23 = vsyncpa [#allocation6], 0 }
   0x6   :  { %24 = vsyncpa [#allocation9], 0 }
   0x7   :  { %25 = vsyncpa [#allocation4], 0 }
   0x8   :  { %27 = vsyncpa [#allocation4 + $0x1], 0  ;;  %s7696_s24 = smov 0   ;;  %s7698_s25 = smov 0  }
   0x9   :  { %s7700_s26 = smov 0   ;;  %s7702_s27 = smov 0  }
   0xa LB: > { %10885 = sst [smem:[#allocation15_spill]] %s7578_s24  ;;  %s7717_s28 = sadd.s32 4294967295, %s7590_s27   ;;  %s7590_s27 = sphi %s7702_s27, %s11112_s27   ;;  %s7586_s26 = sphi %s7700_s26, %s11114_s26   ;;  %s7582_s25 = sphi %s7698_s25, %s11116_s25   ;;  %s7578_s24 = sphi %s7696_s24, %s11115_s24  }
   0xb   : > { %10886 = sst [smem:[#allocation16_spill]] %s7586_s26  ;;  %s5662_s29 = sadd.s32 4294967294, %s7590_s27  }
   0xc   : > { %s7721_s0 = sadd.s32 1, %s7590_s27   ;;  %s402_s30 = sadd.s32 1, %s7586_s26 }
   0xd   : > { %10887 = sst [smem:[#allocation17_spill]] %s7721_s0  ;;  %s399_s18 = ssub.s32 %s7590_s27, %s7721_s0 }
   0xe   : > { %p412_p0 = scmp.ne.s32.totalorder %s7586_s26, %s7582_s25  ;;  %p400_p1 = scmp.eq.s32.totalorder %s399_s18, 0 }
   0xf   : > { %p413_p2 = scmp.eq.s32.totalorder %s7717_s28, 7  ;;  %p418_p3 = scmp.ne.s32.totalorder %s7582_s25, %s7578_s24 }
  0x10   : > { %p419_p4 = scmp.eq.s32.totalorder %s5662_s29, 7  ;;  %p5663_p7 = scmp.ge.s32.totalorder %s7590_s27, 1 }
  0x11   : > { %s7732_s19 = scalar_select %p400_p1, %s7586_s26, %s402_s30  }
  0x12   : > { %p7734_p5 = por %p413_p2, %p412_p0  ;;  %p7738_p6 = por %p419_p4, %p418_p3 }
  0x13   : > { %10888 = sst [smem:[#allocation18_spill]] %s7732_s19  ;;  %p426_p8 = scmp.lt.s32.totalorder %s7590_s27, 9 }
  0x14   : > { %s10890_s20 = scalar_select %p7738_p6, 1, 0 }
  0x15   : > { %p6644_p9 = scmp.eq.s32.totalorder %s7717_s28, 0  ;;  %p7745_p10 = pnand %p5663_p7, %p426_p8 }
  0x16   : > { %10891 = sst [smem:[#allocation19_spill]] %s10890_s20  ;;  %s7592_s22 = smov [#allocation5]  }
  0x17   : > { %s455_s23 = sshll.u32 %s7592_s22, 4  ;;  %p6627_p11 = pneg %p7745_p10  ;;  %s456_s23 = int_to_ptr.vmem [resolvable:$true] %s455_s23 }
  0x18   : > { %s7593_s29 = smov [#allocation2]   ;;  %s7594_s19 = smov [#allocation7]  }
  0x19   : > { %s441_s30 = sshll.u32 %s7593_s29, 4  ;;  %p7753_p12 = pnand %p6644_p9, %p6627_p11  ;;  %s7757_s30 = int_to_ptr.vmem [resolvable:$true] %s441_s30 }
  0x1a   : > { %s465_s26 = sshll.u32 %s7594_s19, 4  ;;  %s7425_s0 = scalar_lea.vmem %s456_s23, 16  ;;  %s466_s26 = int_to_ptr.vmem [resolvable:$true] %s465_s26 }
  0x1b   : > { %p7416_p13 = pneg %p7753_p12  ;;  %p7426_p0 = scmp.ne.s32.totalorder %s456_s23, %s7425_s0 }
  0x1c   : > { %s7432_s22 = scalar_lea.vmem %s456_s23, 32  ;;  %p7433_p3 = scmp.lt.s32.totalorder %s456_s23, %s456_s23 }
  0x1d   : > { %p7428_p1 = pnand %p7426_p0, %p7416_p13  ;;  %p7434_p4 = scmp.lt.s32.totalorder %s7432_s22, %s7425_s0 }
  0x1f   : > { %p7429_p2 = pneg %p7428_p1  ;;  %p7435_p7 = por %p7434_p4, %p7433_p3 }
  0x21   : > { %p7436_p8 = pnand %p7435_p7, %p7429_p2 }
  0x23   : > { %7439 = shalt.err (!%p7436_p8)
}
  0x24   : > { %s10894_s3 = sld [smem:[#allocation73_spill]]  ;;  %s7451_s19 = scalar_lea.vmem %s7757_s30, 384 }
  0x25   : > { %p7452_p11 = scmp.ne.s32.totalorder %s7757_s30, %s7451_s19  ;;  %p7459_p3 = scmp.lt.s32.totalorder %s7757_s30, %s7757_s30 }
  0x26   : > { %p7460_p2 = scmp.lt.s32.totalorder %s7451_s19, %s7451_s19 }
  0x27   : > { %p7454_p0 = pnand %p7452_p11, %p7416_p13 }
  0x28   : > { %p7461_p4 = por %p7460_p2, %p7459_p3 }
  0x29   : > { %p7455_p1 = pneg %p7454_p0 }
  0x2a   : > { %6633 = dma.hbm_to_vmem [thread:$0]  (!%p7753_p12), %s10894_s3, 16, %s456_s23, [#allocation6]  }
  0x2b   : > { %p7462_p7 = pnand %p7461_p4, %p7455_p1 }
  0x2d   : > { %7465 = shalt.err (!%p7462_p7)
}
  0x2e   : > { %s7595_s0 = smov 64   ;;  %s7596_s20 = smov 4  }
  0x2f   : > { %6630 = dma.hbm_to_vmem [thread:$0]  (!%p7753_p12), %s10773_s2, 384, %s7757_s30, [#allocation3], %s7595_s0, %s7595_s0, %s7596_s20  }
  0x30   : > { %s7477_s29 = scalar_lea.vmem %s466_s26, 256  ;;  %p7485_p3 = scmp.lt.s32.totalorder %s466_s26, %s466_s26 }
  0x31   : > { %p7478_p8 = scmp.ne.s32.totalorder %s466_s26, %s7477_s29  ;;  %p7486_p1 = scmp.lt.s32.totalorder %s7477_s29, %s7477_s29 }
  0x33   : > { %p7480_p11 = pnand %p7478_p8, %p7416_p13  ;;  %p7487_p2 = por %p7486_p1, %p7485_p3 }
  0x35   : > { %p7481_p0 = pneg %p7480_p11 }
  0x37   : > { %p7488_p4 = pnand %p7487_p2, %p7481_p0 }
  0x39   : > { %7491 = shalt.err (!%p7488_p4)
}
  0x3a   : > { %s7597_s19 = smov 128   ;;  %s7598_s3 = smov 8  }
  0x3b   : > { %6636 = dma.hbm_to_vmem [thread:$0]  (!%p7753_p12), %s10775_s4, 256, %s466_s26, [#allocation6], %s7597_s19, %s7597_s19, %s7598_s3  }
  0x3c   : > { %s7599_s30 = smov [#allocation8]  }
  0x3d   : > { %s497_s0 = sshll.u32 %s7599_s30, 4  ;;  %s498_s0 = int_to_ptr.vmem [resolvable:$true] %s497_s0 }
  0x3e   : > { %s7503_s20 = scalar_lea.vmem %s498_s0, 16  ;;  %s7510_s23 = scalar_lea.vmem %s498_s0, 32 }
  0x3f   : > { %p7504_p7 = scmp.ne.s32.totalorder %s498_s0, %s7503_s20  ;;  %p7511_p0 = scmp.lt.s32.totalorder %s498_s0, %s498_s0 }
  0x40   : > { %p7512_p3 = scmp.lt.s32.totalorder %s7510_s23, %s7503_s20 }
  0x41   : > { %p7506_p8 = pnand %p7504_p7, %p7416_p13 }
  0x42   : > { %p7513_p1 = por %p7512_p3, %p7511_p0 }
  0x43   : > { %p7507_p11 = pneg %p7506_p8 }
  0x45   : > { %p7514_p2 = pnand %p7513_p1, %p7507_p11 }
  0x47   : > { %7517 = shalt.err (!%p7514_p2)
}
  0x48   : > { %6639 = dma.hbm_to_vmem [thread:$0]  (!%p7753_p12), %s10782_s11, 16, %s498_s0, [#allocation9]  }
  0x49   : > { %535 = sbr.rel (%p7745_p10) target bundleno = 4698 (0x125a), region = 88 }
  0x4e   : > { %7561 = dma.done.wait (%p6644_p9), [#allocation3], 384  }
  0x4f   : > { %7563 = vsyncadd (%p6644_p9), [#allocation3], 4294966912 }
  0x50   : > { %7565 = dma.done.wait (%p6644_p9), [#allocation6], 272  }
  0x51   : > { %7567 = vsyncadd (%p6644_p9), [#allocation6], 4294967024 }
  0x52   : > { %7569 = dma.done.wait (%p6644_p9), [#allocation9], 16  }
  0x53   : > { %7571 = vsyncadd (%p6644_p9), [#allocation9], 4294967280  ;;  %s5675_s3 = sshll.u32 %s7717_s28, 3  ;;  %v6818_v0 = vld [vmem:[#allocation2 + $0x10] sm:$0xff]   ;;  %s10895_s19 = sld [smem:[#allocation71_spill]]  ;;  %v6819_v1 = vld [vmem:[#allocation2 + $0x8] sm:$0xff]  }
  0x54   : > { %p601_p10 = scmp.lt.s32.totalorder %s5675_s3, 63  ;;  %6219 = vmatprep.subr.bf16.mxu0 %v6818_v0  ;;  %vm696_vm0 = vcmask 392192   ;;  %v6820_v3 = vld [vmem:[#allocation2] sm:$0xff]   ;;  %v5678_v11 = vld [vmem:[#allocation5] ss:$0 sm:$0xff]  ;;  %vm1494_vm1 = vcmask 261120  }
  0x55   : > { %6220 = vmatpush3.bf16.msra.mxu0 %v6818_v0  ;;  %v818_v13 = vld [vmem:[#allocation7] sm:$0xff]  ;;  %v819_v19 = vld [vmem:[#allocation7 + $0x8] sm:$0xff]  ;;  %s10919_s18 = sld [smem:[#allocation72_spill]]  ;;  %vm3471_vm2 = vcmask 523264   ;;  %vm3488_vm3 = vcmask 785408   ;;  %s597_s29 = sand.u32 1, %s7582_s25  }
  0x56   : > { %s11118_s3 = smov (!%p601_p10, %s5675_s3), 63  ;;  %6221 = vmatprep.subr.bf16.mxu0 %v6819_v1  ;;  %v6829_v62 = vld [vmem:[%s10778_s7 + $0xac] ss:$12 sps:$4 sm:$0xff]   ;;  %v6831_v63 = vld [vmem:[%s10778_s7 + $0xa8] ss:$12 sps:$4 sm:$0xff]   ;;  %s5674_s24 = sshll.u32 %s597_s29, 6 }
  0x57   : > { %s5854_s26 = sshll.u32 %s11118_s3, 3  ;;  %1244 = vmatprep.subr.bf16.mxu1 %v6829_v62  ;;  %s7601_s3 = smov 96  }
  0x58   : > { %1245 = vmatpush1.bf16.msra.mxu1 %v6831_v63  ;;  %v6839_v63 = vld [vmem:[%s10778_s7 + $0x78] ss:$12 sps:$4 sm:$0xff]   ;;  %s10729_s20 = scalar_lea.sflag [#allocation4], %s597_s29  ;;  %s7604_s23 = smov [#allocation10]  }
  0x59   : > { %s605_s22 = scalar_lea.vmem %s10895_s19, %s5854_s26  ;;  %6222 = vmatpush3.bf16.msra.mxu0 %v6819_v1  ;;  %s10881_s19 = smov 64  }
  0x5a   : > { %v6821_v2 = vld [vmem:[%s605_s22] sm:$0xff]   ;;  %6223 = vmatprep.subr.bf16.mxu0 %v6820_v3  ;;  %v6822_v4 = vld [vmem:[%s605_s22 + $0x8] sm:$0xff]   ;;  %v6823_v5 = vld [vmem:[%s605_s22 + $0x10] sm:$0xff]   ;;  %s7603_s26 = smov 32  }
  0x5b   : > { %6225 = vmatprep.mubr.msk.bf16.mxu0 %vm696_vm0, %v6821_v2  ;;  %v6824_v6 = vld [vmem:[%s605_s22 + $0x18] sm:$0xff]   ;;  %v6825_v7 = vld [vmem:[%s605_s22 + $0x20] sm:$0xff]   ;;  %v6826_v8 = vld [vmem:[%s605_s22 + $0x28] sm:$0xff]  }
  0x5c   : > { %v6827_v9 = vld [vmem:[%s605_s22 + $0x30] sm:$0xff]   ;;  %v6828_v10 = vld [vmem:[%s605_s22 + $0x38] sm:$0xff]  }
  0x5d   : > { %6224 = vmatpush3.bf16.msra.mxu0 %v6820_v3 }
  0x60   : > { %6226 = vmatmul.mubr.msk.bf16.vlgmr.msra.gmra.mxu0 %vm696_vm0, %v6822_v4 }
  0x61   : > { %6229 = vmatprep.mubr.msk.bf16.mxu0 %vm696_vm0, %v6823_v5 }
  0x68   : > { %6230 = vmatmul.mubr.msk.bf16.gmra.mxu0 %vm696_vm0, %v6824_v6 }
  0x69   : > { %6233 = vmatprep.mubr.msk.bf16.mxu0 %vm696_vm0, %v6825_v7 }
  0x70   : > { %6234 = vmatmul.mubr.msk.bf16.gmra.mxu0 %vm696_vm0, %v6826_v8 }
  0x71   : > { %6237 = vmatprep.mubr.msk.bf16.mxu0 %vm696_vm0, %v6827_v9 }
  0x78   : > { %6238 = vmatmul.mubr.msk.bf16.gmra.mxu0 %vm696_vm0, %v6828_v10 }
 0x120   : > { %v6227_v12 = vpop.f32.mrf.mxu0 }
 0x121   : > { %v764_v14 = vadd.f32 %v6227_v12, %v5678_v11 }
 0x122   : > { %v755_v15 = vpop.f32.mrf.mxu0 }
 0x123   : > { %v7824_v16 = vadd.f32 %v818_v13, %v764_v14  ;;  %v756_v17 = vadd.f32 %v5678_v11, %v755_v15 }
 0x124   : > { %v6228_v18 = vpop.f32.mrf.mxu0 }
 0x125   : > { %10896 = vst [vmem:[#allocation20_spill] sm:$0xff] %v7824_v16  ;;  %v7826_v20 = vadd.f32 %v818_v13, %v756_v17  ;;  %v767_v21 = vadd.f32 %v6228_v18, %v5678_v11  ;;  %842 = vadd.xlane.f32.xlu1 %v7824_v16 }
 0x126   : > { %v758_v22 = vpop.f32.mrf.mxu0 }
 0x127   : > { %10897 = vst [vmem:[#allocation21_spill] sm:$0xff] %v7826_v20  ;;  %v7829_v23 = vadd.f32 %v819_v19, %v767_v21  ;;  %v759_v24 = vadd.f32 %v5678_v11, %v758_v22  ;;  %838 = vadd.xlane.f32.xlu0 %v7826_v20 }
 0x128   : > { %v6231_v25 = vpop.f32.mrf.mxu0 }
 0x129   : > { %10898 = vst [vmem:[#allocation22_spill] sm:$0xff] %v7829_v23  ;;  %v7832_v26 = vadd.f32 %v819_v19, %v759_v24  ;;  %844 = vadd.xlane.f32.xlu1 %v7829_v23  ;;  %v780_v28 = vadd.f32 %v6231_v25, %v5678_v11 }
 0x12a   : > { %v771_v27 = vpop.f32.mrf.mxu0 }
 0x12b   : > { %10899 = vst [vmem:[#allocation23_spill] sm:$0xff] %v7832_v26  ;;  %v772_v29 = vadd.f32 %v5678_v11, %v771_v27  ;;  %840 = vadd.xlane.f32.xlu0 %v7832_v26  ;;  %v7838_v33 = vadd.f32 %v818_v13, %v780_v28 }
 0x12c   : > { %v6232_v30 = vpop.f32.mrf.mxu0 }
 0x12d   : > { %v7836_v31 = vadd.f32 %v818_v13, %v772_v29  ;;  %10901 = vst [vmem:[#allocation25_spill] sm:$0xff] %v7838_v33  ;;  %v783_v36 = vadd.f32 %v6232_v30, %v5678_v11 }
 0x12e   : > { %v774_v32 = vpop.f32.mrf.mxu0 }
 0x12f   : > { %10900 = vst [vmem:[#allocation24_spill] sm:$0xff] %v7836_v31  ;;  %v775_v34 = vadd.f32 %v5678_v11, %v774_v32  ;;  %846 = vadd.xlane.f32.xlu0 %v7836_v31  ;;  %v7845_v42 = vadd.f32 %v819_v19, %v783_v36 }
 0x130   : > { %v6235_v35 = vpop.f32.mrf.mxu0 }
 0x131   : > { %v7841_v37 = vadd.f32 %v819_v19, %v775_v34  ;;  %v796_v39 = vadd.f32 %v6235_v35, %v5678_v11  ;;  %10903 = vst [vmem:[#allocation27_spill] sm:$0xff] %v7845_v42 }
 0x132   : > { %v787_v38 = vpop.f32.mrf.mxu0 }
 0x133   : > { %10902 = vst [vmem:[#allocation26_spill] sm:$0xff] %v7841_v37  ;;  %v788_v40 = vadd.f32 %v5678_v11, %v787_v38  ;;  %848 = vadd.xlane.f32.xlu1 %v7841_v37  ;;  %850 = vadd.xlane.f32.xlu0 %v7838_v33  ;;  %v7849_v45 = vadd.f32 %v818_v13, %v796_v39  ;;  %v6832_v39 = vld [vmem:[%s10778_s7 + $0x94] ss:$12 sps:$4 sm:$0xff]  }
 0x134   : > { %v6236_v41 = vpop.f32.mrf.mxu0  ;;  %1246 = vmatprep.subr.bf16.mxu1 %v6832_v39 }
 0x135   : > { %v7847_v43 = vadd.f32 %v818_v13, %v788_v40  ;;  %10905 = vst [vmem:[#allocation29_spill] sm:$0xff] %v7849_v45  ;;  %v799_v46 = vadd.f32 %v6236_v41, %v5678_v11  ;;  %v6834_v40 = vld [vmem:[%s10778_s7 + $0xb0] ss:$12 sps:$4 sm:$0xff]  }
 0x136   : > { %v790_v44 = vpop.f32.mrf.mxu0  ;;  %v6835_v41 = vld [vmem:[%s10778_s7 + $0x90] ss:$12 sps:$4 sm:$0xff]   ;;  %6241 = vmatprep.subr.bf16.mxu0 %v6834_v40 }
 0x137   : > { %10904 = vst [vmem:[#allocation28_spill] sm:$0xff] %v7847_v43  ;;  %v791_v47 = vadd.f32 %v5678_v11, %v790_v44  ;;  %852 = vadd.xlane.f32.xlu1 %v7845_v42  ;;  %854 = vadd.xlane.f32.xlu0 %v7847_v43  ;;  %v7855_v51 = vadd.f32 %v819_v19, %v799_v46 }
 0x138   : > { %v6239_v48 = vpop.f32.mrf.mxu0  ;;  %1247 = vmatpush1.bf16.msra.mxu1 %v6835_v41  ;;  %6242 = vmatpush3.bf16.msra.mxu0 %v6834_v40  ;;  %v6848_v40 = vld [vmem:[%s10778_s7 + $0x34] ss:$12 sps:$4 sm:$0xff]   ;;  %v6850_v41 = vld [vmem:[%s10778_s7 + $0x50] ss:$12 sps:$4 sm:$0xff]  }
 0x139   : > { %v7853_v49 = vadd.f32 %v819_v19, %v791_v47  ;;  %10907 = vst [vmem:[#allocation31_spill] sm:$0xff] %v7855_v51  ;;  %v812_v52 = vadd.f32 %v6239_v48, %v5678_v11 }
 0x13a   : > { %v803_v50 = vpop.f32.mrf.mxu0 }
 0x13b   : > { %10906 = vst [vmem:[#allocation30_spill] sm:$0xff] %v7853_v49  ;;  %v804_v53 = vadd.f32 %v5678_v11, %v803_v50  ;;  %856 = vadd.xlane.f32.xlu1 %v7853_v49  ;;  %858 = vadd.xlane.f32.xlu0 %v7849_v45  ;;  %v7861_v57 = vadd.f32 %v818_v13, %v812_v52 }
 0x13c   : > { %v6240_v54 = vpop.f32.mrf.mxu0 }
 0x13d   : > { %v7859_v55 = vadd.f32 %v818_v13, %v804_v53  ;;  %10909 = vst [vmem:[#allocation33_spill] sm:$0xff] %v7861_v57  ;;  %v815_v58 = vadd.f32 %v6240_v54, %v5678_v11 }
 0x13e   : > { %v806_v56 = vpop.f32.mrf.mxu0 }
 0x13f   : > { %10908 = vst [vmem:[#allocation32_spill] sm:$0xff] %v7859_v55  ;;  %v807_v59 = vadd.f32 %v5678_v11, %v806_v56  ;;  %860 = vadd.xlane.f32.xlu1 %v7855_v51  ;;  %862 = vadd.xlane.f32.xlu0 %v7859_v55  ;;  %v7867_v61 = vadd.f32 %v819_v19, %v815_v58  ;;  %v6836_v56 = vld [vmem:[%s10778_s7 + $0x7c] ss:$12 sps:$4 sm:$0xff]   ;;  %v6838_v58 = vld [vmem:[%s10778_s7 + $0x98] ss:$12 sps:$4 sm:$0xff]  }
 0x140   : > { %1248 = vmatprep.subr.bf16.mxu1 %v6836_v56  ;;  %6243 = vmatprep.subr.bf16.mxu0 %v6838_v58  ;;  %v6856_v56 = vld [vmem:[%s10778_s7 + $0x4] ss:$12 sps:$4 sm:$0xff]  }
 0x141   : > { %v7865_v60 = vadd.f32 %v819_v19, %v807_v59  ;;  %10911 = vst [vmem:[#allocation35_spill] sm:$0xff] %v7867_v61  ;;  %1249 = vmatpush1.bf16.msra.mxu1 %v6839_v63  ;;  %6244 = vmatpush3.bf16.msra.mxu0 %v6838_v58  ;;  %v6858_v58 = vld [vmem:[%s10778_s7 + $0x20] ss:$12 sps:$4 sm:$0xff]  }
 0x142   : > { %v6859_v63 = vld [vmem:[%s10778_s7] ss:$12 sps:$4 sm:$0xff]  }
 0x143   : > { %10910 = vst [vmem:[#allocation34_spill] sm:$0xff] %v7865_v60  ;;  %864 = vadd.xlane.f32.xlu1 %v7865_v60  ;;  %866 = vadd.xlane.f32.xlu0 %v7861_v57 }
 0x147   : > { %868 = vadd.xlane.f32.xlu1 %v7867_v61 }
 0x1ae   : > { %v843_v0 = vpop.xlane.xlu1 %842 }
 0x1af   : > { %v873_v2 = vmul.f32 0.0078125, %v843_v0 }
 0x1b0   : > { %v839_v1 = vpop.xlane.xlu0 %838 }
 0x1b1   : > { %v871_v3 = vmul.f32 0.0078125, %v839_v1  ;;  %v7884_v10 = vsub.f32 %v7824_v16, %v873_v2 }
 0x1b2   : > { %v845_v4 = vpop.xlane.xlu1 %844 }
 0x1b3   : > { %v7879_v5 = vsub.f32 %v7826_v20, %v871_v3  ;;  %v874_v7 = vmul.f32 0.0078125, %v845_v4  ;;  %v905_v14 = vmul.f32 %v7884_v10, %v7884_v10 }
 0x1b4   : > { %v841_v6 = vpop.xlane.xlu0 %840 }
 0x1b5   : > { %v872_v8 = vmul.f32 0.0078125, %v841_v6  ;;  %v903_v9 = vmul.f32 %v7879_v5, %v7879_v5  ;;  %v7894_v17 = vsub.f32 %v7829_v23, %v874_v7  ;;  %v6840_v7 = vld [vmem:[%s10778_s7 + $0x64] ss:$12 sps:$4 sm:$0xff]  }
 0x1b6   : > { %1250 = vmatprep.subr.bf16.mxu1 %v6840_v7 }
 0x1b7   : > { %919 = vadd.xlane.f32.xlu0 %v903_v9  ;;  %v7887_v11 = vsub.f32 %v7832_v26, %v872_v8  ;;  %v906_v25 = vmul.f32 %v7894_v17, %v7894_v17  ;;  %v6842_v8 = vld [vmem:[%s10778_s7 + $0x80] ss:$12 sps:$4 sm:$0xff]  }
 0x1b8   : > { %v847_v12 = vpop.xlane.xlu0 %846  ;;  %6245 = vmatprep.subr.bf16.mxu0 %v6842_v8 }
 0x1b9   : > { %v875_v13 = vmul.f32 0.0078125, %v847_v12  ;;  %v904_v15 = vmul.f32 %v7887_v11, %v7887_v11  ;;  %6246 = vmatpush3.bf16.msra.mxu0 %v6842_v8 }
 0x1bb   : > { %923 = vadd.xlane.f32.xlu0 %v905_v14  ;;  %921 = vadd.xlane.f32.xlu1 %v904_v15  ;;  %v7897_v18 = vsub.f32 %v7836_v31, %v875_v13  ;;  %v6843_v13 = vld [vmem:[%s10778_s7 + $0x60] ss:$12 sps:$4 sm:$0xff]  }
 0x1bc   : > { %v849_v19 = vpop.xlane.xlu1 %848  ;;  %v851_v21 = vpop.xlane.xlu0 %850  ;;  %1251 = vmatpush1.bf16.msra.mxu1 %v6843_v13 }
 0x1bd   : > { %v876_v22 = vmul.f32 0.0078125, %v849_v19  ;;  %v877_v24 = vmul.f32 0.0078125, %v851_v21  ;;  %v907_v27 = vmul.f32 %v7897_v18, %v7897_v18 }
 0x1bf   : > { %925 = vadd.xlane.f32.xlu1 %v906_v25  ;;  %927 = vadd.xlane.f32.xlu0 %v907_v27  ;;  %v7904_v28 = vsub.f32 %v7841_v37, %v876_v22  ;;  %v7907_v29 = vsub.f32 %v7838_v33, %v877_v24  ;;  %v6844_v25 = vld [vmem:[%s10778_s7 + $0x4c] ss:$12 sps:$4 sm:$0xff]   ;;  %v6846_v27 = vld [vmem:[%s10778_s7 + $0x68] ss:$12 sps:$4 sm:$0xff]  }
 0x1c0   : > { %v853_v30 = vpop.xlane.xlu1 %852  ;;  %v855_v32 = vpop.xlane.xlu0 %854  ;;  %1252 = vmatprep.subr.bf16.mxu1 %v6844_v25  ;;  %6247 = vmatprep.subr.bf16.mxu0 %v6846_v27 }
 0x1c1   : > { %v878_v34 = vmul.f32 0.0078125, %v853_v30  ;;  %v879_v35 = vmul.f32 0.0078125, %v855_v32  ;;  %v908_v36 = vmul.f32 %v7904_v28, %v7904_v28  ;;  %v909_v38 = vmul.f32 %v7907_v29, %v7907_v29  ;;  %6248 = vmatpush3.bf16.msra.mxu0 %v6846_v27 }
 0x1c2   : > { %6249 = vmatprep.subr.bf16.mxu0 %v6850_v41 }
 0x1c3   : > { %929 = vadd.xlane.f32.xlu1 %v908_v36  ;;  %931 = vadd.xlane.f32.xlu0 %v909_v38  ;;  %v7923_v44 = vsub.f32 %v7845_v42, %v878_v34  ;;  %v7926_v46 = vsub.f32 %v7847_v43, %v879_v35  ;;  %v6847_v34 = vld [vmem:[%s10778_s7 + $0x48] ss:$12 sps:$4 sm:$0xff]  }
 0x1c4   : > { %v857_v47 = vpop.xlane.xlu1 %856  ;;  %v859_v48 = vpop.xlane.xlu0 %858  ;;  %1253 = vmatpush1.bf16.msra.mxu1 %v6847_v34 }
 0x1c5   : > { %v880_v50 = vmul.f32 0.0078125, %v857_v47  ;;  %v881_v52 = vmul.f32 0.0078125, %v859_v48  ;;  %v910_v53 = vmul.f32 %v7923_v44, %v7923_v44  ;;  %v911_v54 = vmul.f32 %v7926_v46, %v7926_v46  ;;  %v6851_v48 = vld [vmem:[%s10778_s7 + $0x30] ss:$12 sps:$4 sm:$0xff]   ;;  %1254 = vmatprep.subr.bf16.mxu1 %v6848_v40  ;;  %6250 = vmatpush3.bf16.msra.mxu0 %v6850_v41 }
 0x1c7   : > { %933 = vadd.xlane.f32.xlu1 %v910_v53  ;;  %935 = vadd.xlane.f32.xlu0 %v911_v54  ;;  %v7939_v59 = vsub.f32 %v7853_v49, %v880_v50  ;;  %v7942_v62 = vsub.f32 %v7849_v45, %v881_v52  ;;  %v6852_v52 = vld [vmem:[%s10778_s7 + $0x1c] ss:$12 sps:$4 sm:$0xff]   ;;  %v6854_v53 = vld [vmem:[%s10778_s7 + $0x38] ss:$12 sps:$4 sm:$0xff]  }
 0x1c8   : > { %v861_v0 = vpop.xlane.xlu1 %860  ;;  %v863_v1 = vpop.xlane.xlu0 %862  ;;  %1255 = vmatpush1.bf16.msra.mxu1 %v6851_v48  ;;  %v6855_v54 = vld [vmem:[%s10778_s7 + $0x18] ss:$12 sps:$4 sm:$0xff]   ;;  %6251 = vmatprep.subr.bf16.mxu0 %v6854_v53 }
 0x1c9   : > { %v882_v2 = vmul.f32 0.0078125, %v861_v0  ;;  %v883_v3 = vmul.f32 0.0078125, %v863_v1  ;;  %v912_v4 = vmul.f32 %v7939_v59, %v7939_v59  ;;  %v913_v6 = vmul.f32 %v7942_v62, %v7942_v62  ;;  %1256 = vmatprep.subr.bf16.mxu1 %v6852_v52  ;;  %6252 = vmatpush3.bf16.msra.mxu0 %v6854_v53  ;;  %v6860_v0 = vld [vmem:[%s10778_s7 + $0x8] ss:$12 sps:$4 sm:$0xff]   ;;  %v8449_v45 = vld [vmem:[%s10919_s18 + $0x60] sm:$0xff] }
 0x1ca   : > { %6253 = vmatprep.subr.bf16.mxu0 %v6858_v58  ;;  %v10798_v1 = vmov 0   ;;  %10925 = vst [vmem:[#allocation48_spill] sm:$0xff] %v8449_v45 }
 0x1cb   : > { %937 = vadd.xlane.f32.xlu1 %v912_v4  ;;  %939 = vadd.xlane.f32.xlu0 %v913_v6  ;;  %v7958_v9 = vsub.f32 %v7855_v51, %v882_v2  ;;  %v7961_v12 = vsub.f32 %v7859_v55, %v883_v3  ;;  %v8436_v55 = vld [vmem:[%s10919_s18 + $0x48] sm:$0xff] }
 0x1cc   : > { %v865_v14 = vpop.xlane.xlu1 %864  ;;  %v867_v15 = vpop.xlane.xlu0 %866  ;;  %1257 = vmatpush1.bf16.msra.mxu1 %v6855_v54  ;;  %1276 = vmatprep.mubr.bf16.mxu1 %v10798_v1 }
 0x1cd   : > { %v884_v19 = vmul.f32 0.0078125, %v865_v14  ;;  %v885_v21 = vmul.f32 0.0078125, %v867_v15  ;;  %v914_v22 = vmul.f32 %v7958_v9, %v7958_v9  ;;  %v915_v24 = vmul.f32 %v7961_v12, %v7961_v12  ;;  %1258 = vmatprep.subr.bf16.mxu1 %v6856_v56  ;;  %6254 = vmatpush3.bf16.msra.mxu0 %v6858_v58  ;;  %v8028_v58 = vld [vmem:[%s10776_s5] ss:$0 sm:$0xff] }
 0x1ce   : > { %6255 = vmatprep.subr.bf16.mxu0 %v6860_v0 }
 0x1cf   : > { %941 = vadd.xlane.f32.xlu1 %v914_v22  ;;  %943 = vadd.xlane.f32.xlu0 %v915_v24  ;;  %v7977_v30 = vsub.f32 %v7865_v60, %v884_v19  ;;  %v7980_v32 = vsub.f32 %v7861_v57, %v885_v21  ;;  %v8431_v57 = vld [vmem:[%s10919_s18 + $0x70] sm:$0xff] }
 0x1d0   : > { %v869_v35 = vpop.xlane.xlu1 %868  ;;  %1259 = vmatpush1.bf16.msra.mxu1 %v6859_v63  ;;  %10924 = vst [vmem:[#allocation47_spill] sm:$0xff] %v8431_v57 }
 0x1d1   : > { %v886_v36 = vmul.f32 0.0078125, %v869_v35  ;;  %v916_v38 = vmul.f32 %v7977_v30, %v7977_v30  ;;  %v917_v39 = vmul.f32 %v7980_v32, %v7980_v32  ;;  %6256 = vmatpush3.bf16.msra.mxu0 %v6860_v0 }
 0x1d3   : > { %945 = vadd.xlane.f32.xlu1 %v916_v38  ;;  %947 = vadd.xlane.f32.xlu0 %v917_v39  ;;  %v7996_v47 = vsub.f32 %v7867_v61, %v886_v36 }
 0x1d5   : > { %v918_v50 = vmul.f32 %v7996_v47, %v7996_v47 }
 0x1d7   : > { %949 = vadd.xlane.f32.xlu1 %v918_v50 }
 0x240   : > { %v920_v2 = vpop.xlane.xlu0 %919 }
 0x241   : > { %v951_v3 = vmul.f32 0.0078125, %v920_v2 }
 0x243   : > { %v967_v4 = vadd.f32 1e-05, %v951_v3 }
 0x244   : > { %v922_v6 = vpop.xlane.xlu1 %921  ;;  %v924_v7 = vpop.xlane.xlu0 %923 }
 0x245   : > { %6949 = vrsqrt.f32 %v967_v4  ;;  %v952_v8 = vmul.f32 0.0078125, %v922_v6  ;;  %v953_v13 = vmul.f32 0.0078125, %v924_v7 }
 0x247   : > { %v968_v14 = vadd.f32 1e-05, %v952_v8  ;;  %v969_v15 = vadd.f32 1e-05, %v953_v13 }
 0x248   : > { %v926_v19 = vpop.xlane.xlu1 %925  ;;  %v928_v21 = vpop.xlane.xlu0 %927 }
 0x249   : > { %6951 = vrsqrt.f32 %v968_v14  ;;  %v954_v22 = vmul.f32 0.0078125, %v926_v19  ;;  %v955_v24 = vmul.f32 0.0078125, %v928_v21 }
 0x24a   : > { %6953 = vrsqrt.f32 %v969_v15  ;;  %v8035_v15 = vld [vmem:[%s10777_s6] ss:$0 sm:$0xff] }
 0x24b   : > { %v970_v25 = vadd.f32 1e-05, %v954_v22  ;;  %v971_v27 = vadd.f32 1e-05, %v955_v24 }
 0x24c   : > { %v930_v34 = vpop.xlane.xlu1 %929  ;;  %v932_v35 = vpop.xlane.xlu0 %931 }
 0x24d   : > { %6955 = vrsqrt.f32 %v970_v25  ;;  %v956_v36 = vmul.f32 0.0078125, %v930_v34  ;;  %v957_v38 = vmul.f32 0.0078125, %v932_v35 }
 0x24e   : > { %6957 = vrsqrt.f32 %v971_v27 }
 0x24f   : > { %v972_v39 = vadd.f32 1e-05, %v956_v36  ;;  %v973_v40 = vadd.f32 1e-05, %v957_v38 }
 0x250   : > { %v934_v41 = vpop.xlane.xlu1 %933  ;;  %v936_v48 = vpop.xlane.xlu0 %935 }
 0x251   : > { %6959 = vrsqrt.f32 %v972_v39  ;;  %v958_v50 = vmul.f32 0.0078125, %v934_v41  ;;  %v959_v52 = vmul.f32 0.0078125, %v936_v48 }
 0x252   : > { %v6950_v53 = vpop.eup %6949  ;;  %6961 = vrsqrt.f32 %v973_v40 }
 0x253   : > { %v974_v54 = vadd.f32 1e-05, %v958_v50  ;;  %v975_v56 = vadd.f32 1e-05, %v959_v52  ;;  %v999_v63 = vmul.f32 %v6950_v53, %v7879_v5 }
 0x254   : > { %v938_v0 = vpop.xlane.xlu1 %937  ;;  %v940_v2 = vpop.xlane.xlu0 %939 }
 0x255   : > { %6963 = vrsqrt.f32 %v974_v54  ;;  %v960_v3 = vmul.f32 0.0078125, %v938_v0  ;;  %v961_v4 = vmul.f32 0.0078125, %v940_v2  ;;  %v1021_v7 = vmul.f32 %v8028_v58, %v999_v63 }
 0x256   : > { %v6952_v6 = vpop.eup %6951  ;;  %6965 = vrsqrt.f32 %v975_v56 }
 0x257   : > { %v6954_v8 = vpop.eup %6953  ;;  %v976_v13 = vadd.f32 1e-05, %v960_v3  ;;  %v977_v14 = vadd.f32 1e-05, %v961_v4  ;;  %v1000_v19 = vmul.f32 %v6952_v6, %v7887_v11  ;;  %v1043_v35 = vadd.f32 %v8035_v15, %v1021_v7 }
 0x258   : > { %v1001_v5 = vmul.f32 %v6954_v8, %v7884_v10  ;;  %v942_v21 = vpop.xlane.xlu1 %941  ;;  %v944_v22 = vpop.xlane.xlu0 %943 }
 0x259   : > { %6967 = vrsqrt.f32 %v976_v13  ;;  %v962_v24 = vmul.f32 0.0078125, %v942_v21  ;;  %v963_v25 = vmul.f32 0.0078125, %v944_v22  ;;  %v1022_v27 = vmul.f32 %v8028_v58, %v1000_v19 }
 0x25a   : > { %v6956_v34 = vpop.eup %6955  ;;  %6969 = vrsqrt.f32 %v977_v14  ;;  %v1023_v48 = vmul.f32 %v8028_v58, %v1001_v5 }
 0x25b   : > { %v6958_v36 = vpop.eup %6957  ;;  %v1002_v38 = vmul.f32 %v6956_v34, %v7894_v17  ;;  %v978_v39 = vadd.f32 1e-05, %v962_v24  ;;  %v979_v40 = vadd.f32 1e-05, %v963_v25  ;;  %v1044_v11 = vadd.f32 %v8035_v15, %v1022_v27 }
 0x25c   : > { %v946_v41 = vpop.xlane.xlu1 %945  ;;  %v948_v10 = vpop.xlane.xlu0 %947  ;;  %v1003_v50 = vmul.f32 %v6958_v36, %v7897_v18  ;;  %v1045_v18 = vadd.f32 %v8035_v15, %v1023_v48 }
 0x25d   : > { %6971 = vrsqrt.f32 %v978_v39  ;;  %v964_v52 = vmul.f32 0.0078125, %v946_v41  ;;  %v965_v53 = vmul.f32 0.0078125, %v948_v10  ;;  %v1059_v54 = vpack.c.bf16 %v1044_v11, %v1043_v35 }
 0x25e   : > { %v6960_v56 = vpop.eup %6959  ;;  %6973 = vrsqrt.f32 %v979_v40  ;;  %v1024_v63 = vmul.f32 %v8028_v58, %v1002_v38  ;;  %v1025_v4 = vmul.f32 %v8028_v58, %v1003_v50 }
 0x25f   : > { %v6962_v0 = vpop.eup %6961  ;;  %v980_v17 = vadd.f32 1e-05, %v964_v52  ;;  %v981_v2 = vadd.f32 1e-05, %v965_v53  ;;  %1277 = vmatmul.mubr.bf16.vlgmr.msra.gmra.mxu1 %v1059_v54  ;;  %6257 = vmatprep.mubr.bf16.mxu0 %v1059_v54  ;;  %v1004_v3 = vmul.f32 %v6960_v56, %v7904_v28 }
 0x260   : > { %v950_v6 = vpop.xlane.xlu1 %949  ;;  %v1046_v7 = vadd.f32 %v8035_v15, %v1024_v63  ;;  %1286 = vmatprep.mubr.bf16.mxu1 %v10798_v1  ;;  %v1005_v8 = vmul.f32 %v6962_v0, %v7907_v29  ;;  %v1047_v24 = vadd.f32 %v8035_v15, %v1025_v4 }
 0x261   : > { %6975 = vrsqrt.f32 %v980_v17  ;;  %v966_v13 = vmul.f32 0.0078125, %v950_v6  ;;  %v1026_v14 = vmul.f32 %v8028_v58, %v1004_v3 }
 0x262   : > { %v6964_v19 = vpop.eup %6963  ;;  %6977 = vrsqrt.f32 %v981_v2  ;;  %v1060_v5 = vpack.c.bf16 %v1046_v7, %v1045_v18  ;;  %v1027_v28 = vmul.f32 %v8028_v58, %v1005_v8 }
 0x263   : > { %v6966_v21 = vpop.eup %6965  ;;  %v982_v22 = vadd.f32 1e-05, %v966_v13  ;;  %v1048_v25 = vadd.f32 %v8035_v15, %v1026_v14  ;;  %v1006_v27 = vmul.f32 %v6964_v19, %v7923_v44 }
 0x264   : > { %6258 = vmatmul.mubr.bf16.vlgmr.msra.gmra.mxu0 %v1060_v5  ;;  %v1007_v29 = vmul.f32 %v6966_v21, %v7926_v46  ;;  %v1049_v38 = vadd.f32 %v8035_v15, %v1027_v28 }
 0x265   : > { %6979 = vrsqrt.f32 %v982_v22  ;;  %v1061_v34 = vpack.c.bf16 %v1048_v25, %v1047_v24  ;;  %v1028_v35 = vmul.f32 %v8028_v58, %v1006_v27 }
 0x266   : > { %v6968_v36 = vpop.eup %6967  ;;  %v1029_v41 = vmul.f32 %v8028_v58, %v1007_v29 }
 0x267   : > { %v6970_v39 = vpop.eup %6969  ;;  %1287 = vmatmul.mubr.bf16.gmra.mxu1 %v1060_v5  ;;  %6261 = vmatprep.mubr.bf16.mxu0 %v1061_v34  ;;  %v1050_v40 = vadd.f32 %v8035_v15, %v1028_v35  ;;  %v1008_v11 = vmul.f32 %v6968_v36, %v7939_v59 }
 0x268   : > { %1296 = vmatprep.mubr.bf16.mxu1 %v10798_v1  ;;  %v1009_v44 = vmul.f32 %v6970_v39, %v7942_v62  ;;  %v1051_v53 = vadd.f32 %v8035_v15, %v1029_v41 }
 0x269   : > { %v1062_v46 = vpack.c.bf16 %v1050_v40, %v1049_v38  ;;  %v1030_v10 = vmul.f32 %v8028_v58, %v1008_v11 }
 0x26a   : > { %v6972_v48 = vpop.eup %6971  ;;  %v1031_v50 = vmul.f32 %v8028_v58, %v1009_v44 }
 0x26b   : > { %v6974_v52 = vpop.eup %6973  ;;  %v1052_v54 = vadd.f32 %v8035_v15, %v1030_v10  ;;  %v1010_v56 = vmul.f32 %v6972_v48, %v7958_v9 }
 0x26c   : > { %6262 = vmatmul.mubr.bf16.gmra.mxu0 %v1062_v46  ;;  %v1011_v59 = vmul.f32 %v6974_v52, %v7961_v12  ;;  %v1053_v17 = vadd.f32 %v8035_v15, %v1031_v50 }
 0x26d   : > { %v1063_v63 = vpack.c.bf16 %v1052_v54, %v1051_v53  ;;  %v1032_v0 = vmul.f32 %v8028_v58, %v1010_v56 }
 0x26e   : > { %v6976_v62 = vpop.eup %6975  ;;  %v1033_v6 = vmul.f32 %v8028_v58, %v1011_v59 }
 0x26f   : > { %v6978_v2 = vpop.eup %6977  ;;  %1297 = vmatmul.mubr.bf16.gmra.mxu1 %v1061_v34  ;;  %6265 = vmatprep.mubr.bf16.mxu0 %v1063_v63  ;;  %v1054_v3 = vadd.f32 %v8035_v15, %v1032_v0  ;;  %v1012_v4 = vmul.f32 %v6976_v62, %v7977_v30 }
 0x270   : > { %1306 = vmatprep.mubr.bf16.mxu1 %v10798_v1  ;;  %v1013_v9 = vmul.f32 %v6978_v2, %v7980_v32  ;;  %v1055_v8 = vadd.f32 %v8035_v15, %v1033_v6 }
 0x271   : > { %v1064_v12 = vpack.c.bf16 %v1054_v3, %v1053_v17  ;;  %v1034_v18 = vmul.f32 %v8028_v58, %v1012_v4 }
 0x272   : > { %v6980_v7 = vpop.eup %6979  ;;  %v1035_v19 = vmul.f32 %v8028_v58, %v1013_v9 }
 0x273   : > { %v1056_v13 = vadd.f32 %v8035_v15, %v1034_v18  ;;  %v1014_v14 = vmul.f32 %v6980_v7, %v7996_v47  ;;  %v1101_v47 = vlaneseq }
 0x274   : > { %6266 = vmatmul.mubr.bf16.gmra.mxu0 %v1064_v12  ;;  %v1057_v32 = vadd.f32 %v8035_v15, %v1035_v19 }
 0x275   : > { %v1065_v30 = vpack.c.bf16 %v1056_v13, %v1055_v8  ;;  %v1036_v5 = vmul.f32 %v8028_v58, %v1014_v14  ;;  %v8090_v58 = vshrl.u32 %v1101_v47, 7 }
 0x277   : > { %1307 = vmatmul.mubr.bf16.gmra.mxu1 %v1062_v46  ;;  %6269 = vmatprep.mubr.bf16.mxu0 %v1065_v30  ;;  %v1058_v28 = vadd.f32 %v8035_v15, %v1036_v5  ;;  %10912 = vst [vmem:[#allocation36_spill] sm:$0xff] %v8090_v58  ;;  %v10797_v22 = vsub.s32 0, %v8090_v58  ;;  %v8096_v15 = vld [vmem:[%s10779_s8] sm:$0x7]  ;;  %v10796_v19 = vsub.s32 2, %v8090_v58 }
 0x278   : > { %1316 = vmatprep.mubr.bf16.mxu1 %v10798_v1 }
 0x279   : > { %v1066_v21 = vpack.c.bf16 %v1058_v28, %v1057_v32  ;;  %v8101_v25 = vrot.slane %v8096_v15, %v10797_v22 }
 0x27c   : > { %6270 = vmatmul.mubr.bf16.gmra.mxu0 %v1066_v21 }
 0x27f   : > { %1317 = vmatmul.mubr.bf16.gmra.mxu1 %v1063_v63 }
 0x280   : > { %1326 = vmatprep.mubr.bf16.mxu1 %v10798_v1 }
 0x287   : > { %1327 = vmatmul.mubr.bf16.gmra.mxu1 %v1064_v12 }
 0x288   : > { %1336 = vmatprep.mubr.bf16.mxu1 %v10798_v1 }
 0x28f   : > { %1337 = vmatmul.mubr.bf16.gmra.mxu1 %v1065_v30 }
 0x290   : > { %1346 = vmatprep.mubr.bf16.mxu1 %v10798_v1  ;;  %v8413_v1 = vld [vmem:[%s10919_s18 + $0x40] sm:$0xff] }
 0x291   : > { %10923 = vst [vmem:[#allocation46_spill] sm:$0xff] %v8413_v1 }
 0x297   : > { %1347 = vmatmul.mubr.bf16.gmra.mxu1 %v1066_v21 }
 0x31f   : > { %v1278_v24 = vpop.f32.mrf.mxu1 }
 0x320   : > { %v1279_v34 = vadd.f32 %v1278_v24, %v8101_v25  ;;  %v8153_v24 = vrot.slane %v8096_v15, %v10796_v19 }
 0x321   : > { %v8103_v27 = vpop.f32.mrf.mxu1 }
 0x323   : > { %v1282_v29 = vpop.f32.mrf.mxu1 }
 0x324   : > { %v1283_v35 = vadd.f32 %v1282_v29, %v8101_v25  ;;  %v8107_v36 = vpop.f32.mrf.mxu0 }
 0x325   : > { %v8109_v38 = vpop.f32.mrf.mxu1 }
 0x326   : > { %v8111_v39 = vpack.c.bf16 %v1283_v35, %v1279_v34  ;;  %v8113_v40 = vpop.f32.mrf.mxu0 }
 0x327   : > { %v1288_v11 = vpop.f32.mrf.mxu1 }
 0x328   : > { %v1289_v41 = vadd.f32 %v1288_v11, %v8101_v25  ;;  %v8116_v44 = vpop.f32.mrf.mxu0  ;;  %6289 = vmatprep.mubr.msk.bf16.mxu1 %vm1494_vm1, %v8111_v39 }
 0x329   : > { %v8120_v46 = vpop.f32.mrf.mxu1 }
 0x32a   : > { %v8122_v10 = vpop.f32.mrf.mxu0 }
 0x32b   : > { %v1292_v48 = vpop.f32.mrf.mxu1 }
 0x32c   : > { %v1293_v50 = vadd.f32 %v1292_v48, %v8101_v25  ;;  %v8125_v52 = vpop.f32.mrf.mxu0 }
 0x32d   : > { %v8127_v53 = vpop.f32.mrf.mxu1 }
 0x32e   : > { %v8129_v54 = vpack.c.bf16 %v1293_v50, %v1289_v41  ;;  %v8131_v56 = vpop.f32.mrf.mxu0 }
 0x32f   : > { %v1298_v59 = vpop.f32.mrf.mxu1 }
 0x330   : > { %v1299_v63 = vadd.f32 %v1298_v59, %v8101_v25  ;;  %v6264_v0 = vpop.f32.mrf.mxu0 }
 0x331   : > { %v8134_v62 = vpop.f32.mrf.mxu1 }
 0x332   : > { %v1410_v17 = vpop.f32.mrf.mxu0 }
 0x333   : > { %v1302_v2 = vpop.f32.mrf.mxu1 }
 0x334   : > { %v1303_v3 = vadd.f32 %v1302_v2, %v8101_v25  ;;  %v6267_v4 = vpop.f32.mrf.mxu0 }
 0x335   : > { %v8137_v6 = vpop.f32.mrf.mxu1 }
 0x336   : > { %v8139_v9 = vpack.c.bf16 %v1303_v3, %v1299_v63  ;;  %v1423_v12 = vpop.f32.mrf.mxu0 }
 0x337   : > { %v1308_v18 = vpop.f32.mrf.mxu1 }
 0x338   : > { %v1309_v7 = vadd.f32 %v1308_v18, %v8101_v25  ;;  %v6268_v8 = vpop.f32.mrf.mxu0 }
 0x339   : > { %v8142_v13 = vpop.f32.mrf.mxu1 }
 0x33a   : > { %v1426_v14 = vpop.f32.mrf.mxu0 }
 0x33b   : > { %v1312_v30 = vpop.f32.mrf.mxu1 }
 0x33c   : > { %v1313_v5 = vadd.f32 %v1312_v30, %v8101_v25  ;;  %v6271_v32 = vpop.f32.mrf.mxu0 }
 0x33d   : > { %v8146_v28 = vpop.f32.mrf.mxu1  ;;  %v1448_v11 = vadd.f32 %v6271_v32, %v8153_v24 }
 0x33e   : > { %v8148_v21 = vpack.c.bf16 %v1313_v5, %v1309_v7  ;;  %v1439_v47 = vpop.f32.mrf.mxu0  ;;  %v1435_v7 = vadd.f32 %v6268_v8, %v8153_v24  ;;  %v1427_v8 = vadd.f32 %v1426_v14, %v8153_v24  ;;  %v1416_v14 = vadd.f32 %v8125_v52, %v8153_v24 }
 0x33f   : > { %v1318_v29 = vpop.f32.mrf.mxu1  ;;  %v1440_v59 = vadd.f32 %v1439_v47, %v8153_v24  ;;  %v1432_v47 = vadd.f32 %v6267_v4, %v8153_v24  ;;  %v1419_v4 = vadd.f32 %v6264_v0, %v8153_v24  ;;  %v1411_v0 = vadd.f32 %v1410_v17, %v8153_v24 }
 0x340   : > { %v1319_v34 = vadd.f32 %v1318_v29, %v8101_v25  ;;  %v6272_v35 = vpop.f32.mrf.mxu0 }
 0x341   : > { %v1451_v41 = vadd.f32 %v6272_v35, %v8153_v24  ;;  %v8158_v48 = vpop.f32.mrf.mxu1 }
 0x342   : > { %v1442_v50 = vpop.f32.mrf.mxu0 }
 0x343   : > { %v8161_v63 = vpack.c.bf16 %v1451_v41, %v1448_v11  ;;  %v1443_v2 = vadd.f32 %v1442_v50, %v8153_v24  ;;  %v1322_v3 = vpop.f32.mrf.mxu1  ;;  %v8177_v11 = vpack.c.bf16 %v1435_v7, %v1432_v47  ;;  %v1424_v50 = vadd.f32 %v1423_v12, %v8153_v24 }
 0x344   : > { %v1323_v18 = vadd.f32 %v1322_v3, %v8101_v25  ;;  %v10795_v7 = vsub.s32 1, %v8090_v58  ;;  %v8418_v58 = vld [vmem:[%s10919_s18 + $0x58] sm:$0xff] }
 0x345   : > { %v8166_v30 = vpack.c.bf16 %v1443_v2, %v1440_v59  ;;  %6305 = vmatprep.subr.bf16.mxu0 %v8161_v63  ;;  %v8169_v5 = vpop.f32.mrf.mxu1  ;;  %v8185_v2 = vpack.c.bf16 %v1427_v8, %v1424_v50 }
 0x346   : > { %v8171_v32 = vpack.c.bf16 %v1323_v18, %v1319_v34  ;;  %6306 = vmatpush3.bf16.msra.mxu0 %v8161_v63  ;;  %v8205_v50 = vrot.slane %v8096_v15, %v10795_v7  ;;  %v1400_v15 = vadd.f32 %v8107_v36, %v8153_v24  ;;  %v1392_v36 = vadd.f32 %v8113_v40, %v8153_v24 }
 0x347   : > { %6307 = vmatprep.subr.bf16.mxu0 %v8166_v30  ;;  %v1328_v29 = vpop.f32.mrf.mxu1 }
 0x348   : > { %v1329_v35 = vadd.f32 %v1328_v29, %v8101_v25  ;;  %v8195_v29 = vpack.c.bf16 %v1419_v4, %v1416_v14 }
 0x349   : > { %v1330_v41 = vpop.f32.mrf.mxu1 }
 0x34a   : > { %6308 = vmatpush3.bf16.msra.mxu0 %v8166_v30 }
 0x34b   : > { %6309 = vmatprep.subr.bf16.mxu0 %v8177_v11  ;;  %v1332_v34 = vpop.f32.mrf.mxu1 }
 0x34c   : > { %v1333_v59 = vadd.f32 %v1332_v34, %v8101_v25 }
 0x34d   : > { %v1334_v3 = vpop.f32.mrf.mxu1 }
 0x34e   : > { %v8187_v18 = vpack.c.bf16 %v1333_v59, %v1329_v35  ;;  %6310 = vmatpush3.bf16.msra.mxu0 %v8177_v11  ;;  %v1408_v35 = vadd.f32 %v8131_v56, %v8153_v24  ;;  %v1403_v59 = vadd.f32 %v8116_v44, %v8153_v24  ;;  %v1335_v40 = vadd.f32 %v1334_v3, %v8205_v50 }
 0x34f   : > { %6311 = vmatprep.subr.bf16.mxu0 %v8185_v2  ;;  %v1338_v12 = vpop.f32.mrf.mxu1  ;;  %v1315_v3 = vadd.f32 %v8146_v28, %v8205_v50  ;;  %v1295_v28 = vadd.f32 %v8127_v53, %v8205_v50 }
 0x350   : > { %v1339_v47 = vadd.f32 %v1338_v12, %v8101_v25  ;;  %v8210_v17 = vpack.c.bf16 %v1411_v0, %v1408_v35  ;;  %v8223_v0 = vpack.c.bf16 %v1403_v59, %v1400_v15 }
 0x351   : > { %v1340_v8 = vpop.f32.mrf.mxu1 }
 0x352   : > { %6312 = vmatpush3.bf16.msra.mxu0 %v8185_v2  ;;  %v1341_v14 = vadd.f32 %v1340_v8, %v8205_v50  ;;  %10913 = vst [vmem:[#allocation37_spill] sm:$0xff] %v8223_v0 }
 0x353   : > { %6313 = vmatprep.subr.bf16.mxu0 %v8195_v29  ;;  %v1342_v52 = vpop.f32.mrf.mxu1 }
 0x354   : > { %v1343_v34 = vadd.f32 %v1342_v52, %v8101_v25 }
 0x355   : > { %v1344_v4 = vpop.f32.mrf.mxu1 }
 0x356   : > { %v8213_v12 = vpack.c.bf16 %v1343_v34, %v1339_v47  ;;  %v1345_v56 = vadd.f32 %v1344_v4, %v8205_v50  ;;  %6314 = vmatpush3.bf16.msra.mxu0 %v8195_v29  ;;  %v1395_v47 = vadd.f32 %v8122_v10, %v8153_v24  ;;  %v1331_v24 = vadd.f32 %v1330_v41, %v8205_v50 }
 0x357   : > { %6315 = vmatprep.subr.bf16.mxu0 %v8210_v17  ;;  %v1348_v52 = vpop.f32.mrf.mxu1 }
 0x358   : > { %v8220_v7 = vpack.c.bf16 %v1345_v56, %v1341_v14  ;;  %v1349_v44 = vadd.f32 %v1348_v52, %v8101_v25  ;;  %v8234_v59 = vpack.c.bf16 %v1395_v47, %v1392_v36  ;;  %v8255_v52 = vpack.c.bf16 %v1335_v40, %v1331_v24 }
 0x359   : > { %v1350_v8 = vpop.f32.mrf.mxu1  ;;  %v1325_v47 = vadd.f32 %v8169_v5, %v8205_v50  ;;  %v1305_v5 = vadd.f32 %v8137_v6, %v8205_v50  ;;  %v1285_v6 = vadd.f32 %v8109_v38, %v8205_v50  ;;  %v1281_v40 = vadd.f32 %v8103_v27, %v8205_v50  ;;  %v8334_v38 = vld [vmem:[%s10919_s18 + $0x10] sm:$0xff] }
 0x35a   : > { %6316 = vmatpush3.bf16.msra.mxu0 %v8210_v17  ;;  %1933 = vrot.lane.b32.xlu1 %v8220_v7, %s7601_s3  ;;  %10914 = vst [vmem:[#allocation38_spill] sm:$0xff] %v8234_v59  ;;  %v1351_v10 = vadd.f32 %v1350_v8, %v8205_v50  ;;  %10916 = vst [vmem:[#allocation40_spill] sm:$0xff] %v8255_v52  ;;  %v1321_v8 = vadd.f32 %v8158_v48, %v8205_v50  ;;  %v1535_v41 = vsel %vm1494_vm1, %v8255_v52, 0 }
 0x35b   : > { %6317 = vmatprep.subr.bf16.mxu0 %v8223_v0  ;;  %v1352_v35 = vpop.f32.mrf.mxu1  ;;  %v8305_v24 = vpack.c.bf16 %v1285_v6, %v1281_v40  ;;  %v8377_v40 = vld [vmem:[%s10919_s18 + $0x20] sm:$0xff] }
 0x35c   : > { %v1353_v34 = vadd.f32 %v1352_v35, %v8101_v25  ;;  %v8265_v36 = vpack.c.bf16 %v1325_v47, %v1321_v8  ;;  %v1311_v35 = vadd.f32 %v8142_v13, %v8205_v50  ;;  %v8342_v8 = vld [vmem:[%s10919_s18] sm:$0xff]  ;;  %10921 = vst [vmem:[#allocation44_spill] sm:$0xff] %v8377_v40 }
 0x35d   : > { %v1354_v4 = vpop.f32.mrf.mxu1  ;;  %v1520_v53 = vsel %vm1494_vm1, %v8305_v24, 0 }
 0x35e   : > { %v8237_v14 = vpack.c.bf16 %v1353_v34, %v1349_v44  ;;  %v1355_v56 = vadd.f32 %v1354_v4, %v8205_v50  ;;  %6318 = vmatpush3.bf16.msra.mxu0 %v8223_v0  ;;  %v1538_v44 = vsel %vm1494_vm1, %v8220_v7, 0  ;;  %v8275_v34 = vpack.c.bf16 %v1315_v3, %v1311_v35 }
 0x35f   : > { %6319 = vmatprep.subr.bf16.mxu0 %v8234_v59  ;;  %v1532_v48 = vsel %vm1494_vm1, %v8265_v36, 0  ;;  %v1301_v4 = vadd.f32 %v8134_v62, %v8205_v50 }
 0x360   : > { %v8242_v15 = vpack.c.bf16 %v1355_v56, %v1351_v10  ;;  %10917 = vst [vmem:[#allocation41_spill] sm:$0xff] %v8275_v34  ;;  %v1529_v13 = vsel %vm1494_vm1, %v8275_v34, 0  ;;  %v1291_v56 = vadd.f32 %v8120_v46, %v8205_v50 }
 0x361   : > { %v8285_v10 = vpack.c.bf16 %v1305_v5, %v1301_v4  ;;  %v8359_v4 = vld [vmem:[%s10919_s18 + $0x30] sm:$0xff] }
 0x362   : > { %10915 = vst [vmem:[#allocation39_spill] sm:$0xff] %v8242_v15  ;;  %6320 = vmatpush3.bf16.msra.mxu0 %v8234_v59  ;;  %1935 = vrot.lane.b32.xlu0 %v8242_v15, %s7601_s3  ;;  %v1541_v25 = vsel %vm1494_vm1, %v8242_v15, 0  ;;  %10920 = vst [vmem:[#allocation43_spill] sm:$0xff] %v8359_v4 }
 0x363   : > { %6577 = vmatprep.subr.msk.bf16.mxu1 %vm1494_vm1, %v8242_v15  ;;  %10918 = vst [vmem:[#allocation42_spill] sm:$0xff] %v8285_v10  ;;  %v1526_v62 = vsel %vm1494_vm1, %v8285_v10, 0 }
 0x364   : > { %6274 = vmatpush3.bf16.xpose.msra.mxu1 %v1541_v25  ;;  %v8295_v25 = vpack.c.bf16 %v1295_v28, %v1291_v56 }
 0x365   : > { %6578 = vmatprep.subr.msk.bf16.mxu1 %vm1494_vm1, %v8220_v7 }
 0x366   : > { %v1523_v46 = vsel %vm1494_vm1, %v8295_v25, 0 }
 0x36c   : > { %6276 = vmatpush3.bf16.xpose.msra.mxu1 %v1538_v44 }
 0x36d   : > { %6579 = vmatprep.subr.msk.bf16.mxu1 %vm1494_vm1, %v8255_v52 }
 0x374   : > { %6278 = vmatpush3.bf16.xpose.msra.mxu1 %v1535_v41  ;;  %v8347_v41 = vld [vmem:[%s10919_s18 + $0x18] sm:$0xff] }
 0x375   : > { %6580 = vmatprep.subr.msk.bf16.mxu1 %vm1494_vm1, %v8265_v36 }
 0x37c   : > { %6280 = vmatpush3.bf16.xpose.msra.mxu1 %v1532_v48 }
 0x37d   : > { %6581 = vmatprep.subr.msk.bf16.mxu1 %vm1494_vm1, %v8275_v34 }
 0x384   : > { %6282 = vmatpush3.bf16.xpose.msra.mxu1 %v1529_v13  ;;  %v8364_v13 = vld [vmem:[%s10919_s18 + $0x8] sm:$0xff] }
 0x385   : > { %6582 = vmatprep.subr.msk.bf16.mxu1 %vm1494_vm1, %v8285_v10 }
 0x38c   : > { %6284 = vmatpush3.bf16.xpose.msra.mxu1 %v1526_v62 }
 0x38d   : > { %6583 = vmatprep.subr.msk.bf16.mxu1 %vm1494_vm1, %v8295_v25 }
 0x394   : > { %6286 = vmatpush3.bf16.xpose.msra.mxu1 %v1523_v46  ;;  %v8382_v46 = vld [vmem:[%s10919_s18 + $0x38] sm:$0xff] }
 0x395   : > { %6584 = vmatprep.subr.msk.bf16.mxu1 %vm1494_vm1, %v8305_v24 }
 0x39c   : > { %6288 = vmatpush3.bf16.xpose.msra.mxu1 %v1520_v53 }
 0x3a3   : > { %6290 = vmatmul.mubr.msk.bf16.vlgmr.msra.gmra.mxu1 %vm1494_vm1, %v8129_v54 }
 0x3a4   : > { %6293 = vmatprep.mubr.msk.bf16.mxu1 %vm1494_vm1, %v8139_v9 }
 0x3ab   : > { %6294 = vmatmul.mubr.msk.bf16.gmra.mxu1 %vm1494_vm1, %v8148_v21 }
 0x3ac   : > { %6297 = vmatprep.mubr.msk.bf16.mxu1 %vm1494_vm1, %v8171_v32 }
 0x3b3   : > { %6298 = vmatmul.mubr.msk.bf16.gmra.mxu1 %vm1494_vm1, %v8187_v18 }
 0x3b4   : > { %6301 = vmatprep.mubr.msk.bf16.mxu1 %vm1494_vm1, %v8213_v12 }
 0x3bb   : > { %6302 = vmatmul.mubr.msk.bf16.gmra.mxu1 %vm1494_vm1, %v8237_v14 }
 0x3cc   : > { %v8479_v31 = vpop.permute.xlu1 %1933 }
 0x3d4   : > { %v8327_v27 = vpop.permute.xlu0 %1935 }
 0x3d5   : > { %6585 = vmatprep.subr.msk.bf16.mxu0 %vm1494_vm1, %v8327_v27 }
 0x463   : > { %v6291_v50 = vpop.f32.mrf.mxu1 }
 0x464   : > { %v8337_v44 = vadd.f32 %v6291_v50, %v8334_v38 }
 0x465   : > { %v1577_v47 = vpop.f32.mrf.mxu1 }
 0x466   : > { %1644 = vmax.xlane.f32.xlu0 %v8337_v44  ;;  %v8351_v35 = vadd.f32 %v1577_v47, %v8342_v8 }
 0x467   : > { %v6292_v3 = vpop.f32.mrf.mxu1 }
 0x468   : > { %v8354_v48 = vadd.f32 %v6292_v3, %v8347_v41 }
 0x469   : > { %v1580_v5 = vpop.f32.mrf.mxu1 }
 0x46a   : > { %1646 = vmax.xlane.f32.xlu1 %v8354_v48  ;;  %1640 = vmax.xlane.f32.xlu0 %v8351_v35  ;;  %v8372_v62 = vadd.f32 %v1580_v5, %v8364_v13  ;;  %v8395_v5 = vld [vmem:[%s10919_s18 + $0x50] sm:$0xff] }
 0x46b   : > { %v6295_v28 = vpop.f32.mrf.mxu1  ;;  %10922 = vst [vmem:[#allocation45_spill] sm:$0xff] %v8395_v5 }
 0x46c   : > { %v8369_v56 = vadd.f32 %v6295_v28, %v8359_v4  ;;  %v8400_v28 = vld [vmem:[%s10919_s18 + $0x28] sm:$0xff] }
 0x46d   : > { %v1593_v6 = vpop.f32.mrf.mxu1 }
 0x46e   : > { %1642 = vmax.xlane.f32.xlu1 %v8372_v62  ;;  %1652 = vmax.xlane.f32.xlu0 %v8369_v56  ;;  %v8387_v50 = vadd.f32 %v1593_v6, %v8377_v40 }
 0x46f   : > { %v6296_v53 = vpop.f32.mrf.mxu1 }
 0x470   : > { %v8390_v47 = vadd.f32 %v6296_v53, %v8382_v46 }
 0x471   : > { %v1596_v3 = vpop.f32.mrf.mxu1 }
 0x472   : > { %1654 = vmax.xlane.f32.xlu1 %v8390_v47  ;;  %1648 = vmax.xlane.f32.xlu0 %v8387_v50  ;;  %v8408_v53 = vadd.f32 %v1596_v3, %v8400_v28 }
 0x473   : > { %v6299_v6 = vpop.f32.mrf.mxu1 }
 0x474   : > { %v8405_v19 = vadd.f32 %v6299_v6, %v8395_v5 }
 0x475   : > { %v1609_v22 = vpop.f32.mrf.mxu1 }
 0x476   : > { %1650 = vmax.xlane.f32.xlu1 %v8408_v53  ;;  %1660 = vmax.xlane.f32.xlu0 %v8405_v19  ;;  %v8423_v61 = vadd.f32 %v1609_v22, %v8413_v1 }
 0x477   : > { %v6300_v6 = vpop.f32.mrf.mxu1 }
 0x478   : > { %v8426_v3 = vadd.f32 %v6300_v6, %v8418_v58 }
 0x479   : > { %v1612_v60 = vpop.f32.mrf.mxu1 }
 0x47a   : > { %1662 = vmax.xlane.f32.xlu1 %v8426_v3  ;;  %1656 = vmax.xlane.f32.xlu0 %v8423_v61  ;;  %v8444_v6 = vadd.f32 %v1612_v60, %v8436_v55  ;;  %v8464_v60 = vld [vmem:[%s10919_s18 + $0x78] sm:$0xff] }
 0x47b   : > { %v6303_v22 = vpop.f32.mrf.mxu1  ;;  %10926 = vst [vmem:[#allocation49_spill] sm:$0xff] %v8464_v60 }
 0x47c   : > { %v8441_v51 = vadd.f32 %v6303_v22, %v8431_v57 }
 0x47d   : > { %v1625_v49 = vpop.f32.mrf.mxu1 }
 0x47e   : > { %1658 = vmax.xlane.f32.xlu1 %v8444_v6  ;;  %1668 = vmax.xlane.f32.xlu0 %v8441_v51  ;;  %v8454_v43 = vadd.f32 %v1625_v49, %v8449_v45  ;;  %v8472_v49 = vld [vmem:[%s10919_s18 + $0x68] sm:$0xff] }
 0x47f   : > { %v6304_v22 = vpop.f32.mrf.mxu1  ;;  %10927 = vst [vmem:[#allocation50_spill] sm:$0xff] %v8472_v49 }
 0x480   : > { %v8467_v42 = vadd.f32 %v6304_v22, %v8464_v60 }
 0x481   : > { %v1628_v37 = vpop.f32.mrf.mxu1 }
 0x482   : > { %1664 = vmax.xlane.f32.xlu0 %v8454_v43  ;;  %v8476_v33 = vadd.f32 %v1628_v37, %v8472_v49 }
 0x48f   : > { %1929 = vrot.lane.b32.xlu1 %v8265_v36, %s7601_s3 }
 0x498   : > { %1931 = vrot.lane.b32.xlu0 %v8255_v52, %s7601_s3 }
 0x4b3   : > { %1670 = vmax.xlane.f32.xlu1 %v8467_v42 }
 0x4b7   : > { %1666 = vmax.xlane.f32.xlu1 %v8476_v33 }
 0x4ef   : > { %v1645_v23 = vpop.xlane.xlu0 %1644 }
 0x4f0   : > { %v1674_v26 = vsub.f32 %v8337_v44, %v1645_v23 }
 0x4f2   : > { %v1692_v22 = vmul.f32 1.442695, %v1674_v26 }
 0x4f3   : > { %v1647_v16 = vpop.xlane.xlu1 %1646  ;;  %v1641_v20 = vpop.xlane.xlu0 %1640 }
 0x4f4   : > { %6981 = vpow2.f32 %v1692_v22  ;;  %v1675_v52 = vsub.f32 %v8354_v48, %v1647_v16  ;;  %v1672_v15 = vsub.f32 %v8351_v35, %v1641_v20 }
 0x4f6   : > { %v1694_v60 = vmul.f32 1.442695, %v1675_v52  ;;  %v1688_v45 = vmul.f32 1.442695, %v1672_v15 }
 0x4f7   : > { %v1643_v57 = vpop.xlane.xlu1 %1642  ;;  %v1653_v20 = vpop.xlane.xlu0 %1652 }
 0x4f8   : > { %6983 = vpow2.f32 %v1694_v60  ;;  %v1673_v37 = vsub.f32 %v8372_v62, %v1643_v57  ;;  %v1678_v44 = vsub.f32 %v8369_v56, %v1653_v20 }
 0x4f9   : > { %6985 = vpow2.f32 %v1688_v45 }
 0x4fa   : > { %v1690_v49 = vmul.f32 1.442695, %v1673_v37  ;;  %v1700_v60 = vmul.f32 1.442695, %v1678_v44 }
 0x4fb   : > { %v1649_v45 = vpop.xlane.xlu0 %1648  ;;  %v1655_v15 = vpop.xlane.xlu1 %1654 }
 0x4fc   : > { %6987 = vpow2.f32 %v1690_v49  ;;  %v1676_v48 = vsub.f32 %v8387_v50, %v1649_v45  ;;  %v1679_v37 = vsub.f32 %v8390_v47, %v1655_v15 }
 0x4fd   : > { %6989 = vpow2.f32 %v1700_v60 }
 0x4fe   : > { %v1696_v5 = vmul.f32 1.442695, %v1676_v48  ;;  %v1702_v4 = vmul.f32 1.442695, %v1679_v37 }
 0x4ff   : > { %v1661_v57 = vpop.xlane.xlu0 %1660  ;;  %v1651_v35 = vpop.xlane.xlu1 %1650 }
 0x500   : > { %v1677_v49 = vsub.f32 %v8408_v53, %v1651_v35  ;;  %6991 = vpow2.f32 %v1696_v5  ;;  %v1682_v56 = vsub.f32 %v8405_v19, %v1661_v57 }
 0x501   : > { %v8485_v1 = vpop.eup %6981 }
 0x502   : > { %1724 = vadd.xlane.f32.xlu0 %v8485_v1  ;;  %v1708_v53 = vmul.f32 1.442695, %v1682_v56 }
 0x503   : > { %v1657_v52 = vpop.xlane.xlu0 %1656  ;;  %v1663_v22 = vpop.xlane.xlu1 %1662 }
 0x504   : > { %v1680_v44 = vsub.f32 %v8423_v61, %v1657_v52  ;;  %v1683_v15 = vsub.f32 %v8426_v3, %v1663_v22 }
 0x505   : > { %v8488_v23 = vpop.eup %6983 }
 0x506   : > { %v8490_v26 = vpop.eup %6985  ;;  %1726 = vadd.xlane.f32.xlu1 %v8488_v23  ;;  %v1710_v19 = vmul.f32 1.442695, %v1683_v15 }
 0x507   : > { %1720 = vadd.xlane.f32.xlu0 %v8490_v26  ;;  %v1669_v62 = vpop.xlane.xlu0 %1668  ;;  %v1659_v20 = vpop.xlane.xlu1 %1658 }
 0x508   : > { %v1686_v40 = vsub.f32 %v8441_v51, %v1669_v62  ;;  %v1704_v51 = vmul.f32 1.442695, %v1680_v44 }
 0x509   : > { %v8494_v16 = vpop.eup %6987 }
 0x50a   : > { %1722 = vadd.xlane.f32.xlu1 %v8494_v16  ;;  %v1716_v50 = vmul.f32 1.442695, %v1686_v40  ;;  %v8512_v5 = vpop.eup %6989 }
 0x50b   : > { %v8510_v35 = vpop.permute.xlu1 %1929 }
 0x51b   : > { %1925 = vrot.lane.b32.xlu1 %v8285_v10, %s7601_s3  ;;  %v1698_v10 = vmul.f32 1.442695, %v1677_v49 }
 0x51d   : > { %1927 = vrot.lane.b32.xlu0 %v8275_v34, %s7601_s3  ;;  %v1665_v34 = vpop.xlane.xlu0 %1664  ;;  %6993 = vpow2.f32 %v1698_v10 }
 0x51e   : > { %v1684_v45 = vsub.f32 %v8454_v43, %v1665_v34  ;;  %6995 = vpow2.f32 %v1702_v4  ;;  %v1681_v43 = vsub.f32 %v8444_v6, %v1659_v20  ;;  %v8517_v34 = vpop.eup %6991 }
 0x51f   : > { %6997 = vpow2.f32 %v1716_v50 }
 0x520   : > { %v1712_v47 = vmul.f32 1.442695, %v1684_v45  ;;  %6999 = vpow2.f32 %v1708_v53  ;;  %v1706_v57 = vmul.f32 1.442695, %v1681_v43 }
 0x521   : > { %v1932_v20 = vpop.permute.xlu0 %1931 }
 0x522   : > { %7001 = vpow2.f32 %v1712_v47 }
 0x523   : > { %7003 = vpow2.f32 %v1704_v51 }
 0x524   : > { %7005 = vpow2.f32 %v1710_v19 }
 0x52a   : > { %v8519_v4 = vpop.eup %6993 }
 0x52b   : > { %v8524_v48 = vpop.eup %6995 }
 0x52c   : > { %v8526_v6 = vpop.eup %6997 }
 0x52d   : > { %v8530_v62 = vpop.eup %6999 }
 0x52f   : > { %v8532_v60 = vpop.eup %7001 }
 0x53c   : > { %1732 = vadd.xlane.f32.xlu0 %v8512_v5  ;;  %v1671_v10 = vpop.xlane.xlu1 %1670 }
 0x53d   : > { %v1687_v61 = vsub.f32 %v8467_v42, %v1671_v10 }
 0x53f   : > { %v1718_v40 = vmul.f32 1.442695, %v1687_v61  ;;  %1728 = vadd.xlane.f32.xlu1 %v8517_v34 }
 0x540   : > { %1730 = vadd.xlane.f32.xlu0 %v8519_v4  ;;  %v1667_v3 = vpop.xlane.xlu1 %1666 }
 0x541   : > { %7007 = vpow2.f32 %v1718_v40  ;;  %v1685_v52 = vsub.f32 %v8476_v33, %v1667_v3  ;;  %v8536_v33 = vpop.eup %7003 }
 0x542   : > { %7009 = vpow2.f32 %v1706_v57  ;;  %v8539_v49 = vpop.eup %7005 }
 0x543   : > { %1734 = vadd.xlane.f32.xlu1 %v8524_v48  ;;  %v1714_v42 = vmul.f32 1.442695, %v1685_v52  ;;  %v1983_v52 = vsel %vm1494_vm1, %v8327_v27, 0 }
 0x544   : > { %1748 = vadd.xlane.f32.xlu0 %v8526_v6 }
 0x545   : > { %7011 = vpow2.f32 %v1714_v42 }
 0x547   : > { %1740 = vadd.xlane.f32.xlu1 %v8530_v62 }
 0x548   : > { %1744 = vadd.xlane.f32.xlu0 %v8532_v60 }
 0x54b   : > { %1736 = vadd.xlane.f32.xlu1 %v8536_v33 }
 0x54e   : > { %v8541_v22 = vpop.eup %7007 }
 0x54f   : > { %1742 = vadd.xlane.f32.xlu1 %v8539_v49  ;;  %1750 = vadd.xlane.f32.xlu0 %v8541_v22  ;;  %v8545_v37 = vpop.eup %7009 }
 0x552   : > { %v8548_v56 = vpop.eup %7011 }
 0x553   : > { %1738 = vadd.xlane.f32.xlu1 %v8545_v37 }
 0x557   : > { %1746 = vadd.xlane.f32.xlu1 %v8548_v56 }
 0x565   : > { %1923 = vrot.lane.b32.xlu0 %v8295_v25, %s7601_s3 }
 0x568   : > { %1921 = vrot.lane.b32.xlu1 %v8305_v24, %s7601_s3 }
 0x569   : > { %1897 = vrot.lane.b32.xlu0 %v8111_v39, %s7601_s3 }
 0x56c   : > { %1899 = vrot.lane.b32.xlu1 %v8129_v54, %s7601_s3 }
 0x56d   : > { %1901 = vrot.lane.b32.xlu0 %v8139_v9, %s7601_s3 }
 0x570   : > { %1903 = vrot.lane.b32.xlu1 %v8148_v21, %s7601_s3 }
 0x571   : > { %1905 = vrot.lane.b32.xlu0 %v8171_v32, %s7601_s3 }
 0x574   : > { %1907 = vrot.lane.b32.xlu1 %v8187_v18, %s7601_s3 }
 0x575   : > { %1909 = vrot.lane.b32.xlu0 %v8213_v12, %s7601_s3 }
 0x578   : > { %1911 = vrot.lane.b32.xlu1 %v8237_v14, %s7601_s3 }
 0x579   : > { %2256 = vrot.lane.b32.xlu0 %v8161_v63, %s7601_s3 }
 0x57c   : > { %2254 = vrot.lane.b32.xlu1 %v8166_v30, %s7601_s3 }
 0x57d   : > { %2252 = vrot.lane.b32.xlu0 %v8177_v11, %s7601_s3 }
 0x580   : > { %2246 = vrot.lane.b32.xlu1 %v8210_v17, %s7601_s3 }
 0x581   : > { %2250 = vrot.lane.b32.xlu0 %v8185_v2, %s7601_s3 }
 0x584   : > { %2242 = vrot.lane.b32.xlu1 %v8234_v59, %s7601_s3 }
 0x585   : > { %2248 = vrot.lane.b32.xlu0 %v8195_v29, %s7601_s3 }
 0x58b   : > { %v1725_v50 = vpop.xlane.xlu0 %1724 }
 0x58f   : > { %v1727_v45 = vpop.xlane.xlu1 %1726 }
 0x590   : > { %v1721_v53 = vpop.xlane.xlu0 %1720  ;;  %7013 = vrcp.f32 %v1727_v45 }
 0x591   : > { %7015 = vrcp.f32 %v1721_v53 }
 0x592   : > { %7017 = vrcp.f32 %v1725_v50 }
 0x593   : > { %v1723_v44 = vpop.xlane.xlu1 %1722 }
 0x594   : > { %7019 = vrcp.f32 %v1723_v44  ;;  %v1928_v27 = vpop.permute.xlu0 %1927 }
 0x59d   : > { %v7014_v47 = vpop.eup %7013 }
 0x59e   : > { %v7016_v15 = vpop.eup %7015  ;;  %v1771_v10 = vmul.f32 %v7014_v47, %v8488_v23  ;;  %v1980_v23 = vsel %vm1494_vm1, %v8479_v31, 0 }
 0x59f   : > { %v7018_v51 = vpop.eup %7017  ;;  %v1768_v43 = vmul.f32 %v7016_v15, %v8490_v26  ;;  %v1977_v26 = vsel %vm1494_vm1, %v1932_v20, 0 }
 0x5a0   : > { %v1770_v40 = vmul.f32 %v7018_v51, %v8485_v1  ;;  %v1974_v1 = vsel %vm1494_vm1, %v8510_v35, 0 }
 0x5a1   : > { %v7020_v19 = vpop.eup %7019 }
 0x5a2   : > { %v1769_v61 = vmul.f32 %v7020_v19, %v8494_v16  ;;  %v1785_v57 = vpack.c.bf16 %v1771_v10, %v1770_v40  ;;  %v1926_v16 = vpop.permute.xlu1 %1925 }
 0x5a4   : > { %v1784_v3 = vpack.c.bf16 %v1769_v61, %v1768_v43 }
 0x5a6   : > { %6321 = vmatprep.mubr.bf16.mxu0 %v1784_v3 }
 0x5a7   : > { %6322 = vmatmul.mubr.bf16.vlgmr.msra.gmra.mxu0 %v1785_v57 }
 0x5a8   : > { %6338 = vmatpush3.bf16.xpose.msra.mxu0 %v1983_v52 }
 0x5a9   : > { %6586 = vmatprep.subr.msk.bf16.mxu0 %vm1494_vm1, %v8479_v31  ;;  %v1971_v31 = vsel %vm1494_vm1, %v1928_v27, 0 }
 0x5b0   : > { %6340 = vmatpush3.bf16.xpose.msra.mxu0 %v1980_v23 }
 0x5b1   : > { %6587 = vmatprep.subr.msk.bf16.mxu0 %vm1494_vm1, %v1932_v20 }
 0x5b8   : > { %6342 = vmatpush3.bf16.xpose.msra.mxu0 %v1977_v26 }
 0x5b9   : > { %6588 = vmatprep.subr.msk.bf16.mxu0 %vm1494_vm1, %v8510_v35  ;;  %v1968_v35 = vsel %vm1494_vm1, %v1926_v16, 0 }
 0x5c0   : > { %6344 = vmatpush3.bf16.xpose.msra.mxu0 %v1974_v1 }
 0x5c1   : > { %6589 = vmatprep.subr.msk.bf16.mxu0 %vm1494_vm1, %v1928_v27 }
 0x5c5   : > { %v1733_v42 = vpop.xlane.xlu0 %1732 }
 0x5c8   : > { %6346 = vmatpush3.bf16.xpose.msra.mxu0 %v1971_v31  ;;  %v1729_v50 = vpop.xlane.xlu1 %1728 }
 0x5c9   : > { %7021 = vrcp.f32 %v1729_v50  ;;  %6590 = vmatprep.subr.msk.bf16.mxu0 %vm1494_vm1, %v1926_v16  ;;  %v1731_v20 = vpop.xlane.xlu0 %1730 }
 0x5ca   : > { %7023 = vrcp.f32 %v1731_v20 }
 0x5cb   : > { %7025 = vrcp.f32 %v1733_v42 }
 0x5cc   : > { %v1735_v45 = vpop.xlane.xlu1 %1734 }
 0x5cd   : > { %7027 = vrcp.f32 %v1735_v45  ;;  %v1749_v53 = vpop.xlane.xlu0 %1748 }
 0x5d0   : > { %6348 = vmatpush3.bf16.xpose.msra.mxu0 %v1968_v35  ;;  %v1741_v44 = vpop.xlane.xlu1 %1740 }
 0x5d1   : > { %v1745_v47 = vpop.xlane.xlu0 %1744 }
 0x5d4   : > { %v1737_v15 = vpop.xlane.xlu1 %1736 }
 0x5d6   : > { %v7022_v51 = vpop.eup %7021 }
 0x5d7   : > { %v7024_v19 = vpop.eup %7023  ;;  %v1772_v10 = vmul.f32 %v7022_v51, %v8517_v34 }
 0x5d8   : > { %v7026_v43 = vpop.eup %7025  ;;  %v1743_v61 = vpop.xlane.xlu1 %1742  ;;  %v1773_v3 = vmul.f32 %v7024_v19, %v8519_v4 }
 0x5d9   : > { %v1751_v40 = vpop.xlane.xlu0 %1750  ;;  %7029 = vrcp.f32 %v1743_v61  ;;  %v1774_v23 = vmul.f32 %v7026_v43, %v8512_v5 }
 0x5da   : > { %v7028_v57 = vpop.eup %7027  ;;  %v1786_v52 = vpack.c.bf16 %v1773_v3, %v1772_v10  ;;  %7031 = vrcp.f32 %v1737_v15 }
 0x5db   : > { %v1775_v26 = vmul.f32 %v7028_v57, %v8524_v48  ;;  %7033 = vrcp.f32 %v1741_v44 }
 0x5dc   : > { %6325 = vmatprep.mubr.bf16.mxu0 %v1786_v52  ;;  %v1739_v1 = vpop.xlane.xlu1 %1738 }
 0x5dd   : > { %v1924_v27 = vpop.permute.xlu0 %1923  ;;  %7035 = vrcp.f32 %v1739_v1  ;;  %v1787_v16 = vpack.c.bf16 %v1775_v26, %v1774_v23 }
 0x5de   : > { %6591 = vmatprep.subr.msk.bf16.mxu0 %vm1494_vm1, %v1924_v27  ;;  %v1965_v34 = vsel %vm1494_vm1, %v1924_v27, 0  ;;  %7037 = vrcp.f32 %v1745_v47 }
 0x5df   : > { %6350 = vmatpush3.bf16.xpose.msra.mxu0 %v1965_v34 }
 0x5e0   : > { %6326 = vmatmul.mubr.bf16.gmra.mxu0 %v1787_v16  ;;  %v1747_v4 = vpop.xlane.xlu1 %1746 }
 0x5e1   : > { %v1898_v42 = vpop.permute.xlu0 %1897  ;;  %7039 = vrcp.f32 %v1747_v4 }
 0x5e2   : > { %7041 = vrcp.f32 %v1751_v40 }
 0x5e3   : > { %7043 = vrcp.f32 %v1749_v53 }
 0x5e4   : > { %v1922_v5 = vpop.permute.xlu1 %1921 }
 0x5e5   : > { %v1902_v48 = vpop.permute.xlu0 %1901  ;;  %6592 = vmatprep.subr.msk.bf16.mxu0 %vm1494_vm1, %v1922_v5  ;;  %v1962_v31 = vsel %vm1494_vm1, %v1922_v5, 0 }
 0x5e6   : > { %v7030_v50 = vpop.eup %7029 }
 0x5e7   : > { %6352 = vmatpush3.bf16.xpose.msra.mxu0 %v1962_v31  ;;  %v7032_v20 = vpop.eup %7031  ;;  %v1779_v47 = vmul.f32 %v7030_v50, %v8539_v49 }
 0x5e8   : > { %v1900_v45 = vpop.permute.xlu1 %1899  ;;  %v7034_v44 = vpop.eup %7033  ;;  %v1776_v51 = vmul.f32 %v7032_v20, %v8536_v33 }
 0x5e9   : > { %v1906_v35 = vpop.permute.xlu0 %1905  ;;  %v1778_v61 = vmul.f32 %v7034_v44, %v8530_v62 }
 0x5ea   : > { %v7036_v15 = vpop.eup %7035 }
 0x5eb   : > { %v1777_v19 = vmul.f32 %v7036_v15, %v8545_v37  ;;  %v7038_v53 = vpop.eup %7037  ;;  %v1789_v57 = vpack.c.bf16 %v1779_v47, %v1778_v61 }
 0x5ec   : > { %v1904_v10 = vpop.permute.xlu1 %1903  ;;  %v1780_v23 = vmul.f32 %v7038_v53, %v8532_v60 }
 0x5ed   : > { %v1910_v43 = vpop.permute.xlu0 %1909  ;;  %v1788_v40 = vpack.c.bf16 %v1777_v19, %v1776_v51 }
 0x5ee   : > { %v7040_v3 = vpop.eup %7039 }
 0x5ef   : > { %v7042_v52 = vpop.eup %7041  ;;  %6329 = vmatprep.mubr.bf16.mxu0 %v1788_v40  ;;  %v1781_v26 = vmul.f32 %v7040_v3, %v8548_v56 }
 0x5f0   : > { %v1908_v1 = vpop.permute.xlu1 %1907  ;;  %6330 = vmatmul.mubr.bf16.gmra.mxu0 %v1789_v57  ;;  %v7044_v33 = vpop.eup %7043  ;;  %v1783_v27 = vmul.f32 %v7042_v52, %v8541_v22 }
 0x5f1   : > { %v2257_v49 = vpop.permute.xlu0 %2256  ;;  %v1790_v37 = vpack.c.bf16 %v1781_v26, %v1780_v23  ;;  %v1782_v34 = vmul.f32 %v7044_v33, %v8526_v6 }
 0x5f2   : > { %6369 = vmatprep.subr.bf16.mxu1 %v2257_v49 }
 0x5f3   : > { %6370 = vmatpush3.bf16.msra.mxu1 %v2257_v49  ;;  %6333 = vmatprep.mubr.bf16.mxu0 %v1790_v37  ;;  %v1791_v4 = vpack.c.bf16 %v1783_v27, %v1782_v34 }
 0x5f4   : > { %v1912_v62 = vpop.permute.xlu1 %1911 }
 0x5f5   : > { %v2253_v16 = vpop.permute.xlu0 %2252 }
 0x5f8   : > { %v2255_v5 = vpop.permute.xlu1 %2254  ;;  %6334 = vmatmul.mubr.bf16.gmra.mxu0 %v1791_v4  ;;  %v10945_v4 = vld [vmem:[#allocation44_spill] sm:$0xff] }
 0x5f9   : > { %6353 = vmatprep.mubr.msk.bf16.mxu0 %vm1494_vm1, %v1898_v42  ;;  %6371 = vmatprep.subr.bf16.mxu1 %v2255_v5  ;;  %v2251_v60 = vpop.permute.xlu0 %2250 }
 0x5fa   : > { %6372 = vmatpush3.bf16.msra.mxu1 %v2255_v5 }
 0x5fb   : > { %6373 = vmatprep.subr.bf16.mxu1 %v2253_v16 }
 0x5fc   : > { %v2247_v6 = vpop.permute.xlu1 %2246 }
 0x5fd   : > { %v2249_v22 = vpop.permute.xlu0 %2248 }
 0x5fe   : > { %6374 = vmatpush3.bf16.msra.mxu1 %v2253_v16 }
 0x5ff   : > { %6375 = vmatprep.subr.bf16.mxu1 %v2251_v60 }
 0x600   : > { %6354 = vmatmul.mubr.msk.bf16.vlgmr.msra.gmra.mxu0 %vm1494_vm1, %v1900_v45 }
 0x601   : > { %6357 = vmatprep.mubr.msk.bf16.mxu0 %vm1494_vm1, %v1902_v48 }
 0x602   : > { %6376 = vmatpush3.bf16.msra.mxu1 %v2251_v60 }
 0x603   : > { %6377 = vmatprep.subr.bf16.mxu1 %v2249_v22 }
 0x606   : > { %6378 = vmatpush3.bf16.msra.mxu1 %v2249_v22 }
 0x607   : > { %6379 = vmatprep.subr.bf16.mxu1 %v2247_v6 }
 0x608   : > { %6358 = vmatmul.mubr.msk.bf16.gmra.mxu0 %vm1494_vm1, %v1904_v10 }
 0x609   : > { %6361 = vmatprep.mubr.msk.bf16.mxu0 %vm1494_vm1, %v1906_v35 }
 0x60a   : > { %6380 = vmatpush3.bf16.msra.mxu1 %v2247_v6  ;;  %v10947_v6 = vld [vmem:[#allocation46_spill] sm:$0xff] }
 0x610   : > { %6362 = vmatmul.mubr.msk.bf16.gmra.mxu0 %vm1494_vm1, %v1908_v1 }
 0x611   : > { %6365 = vmatprep.mubr.msk.bf16.mxu0 %vm1494_vm1, %v1910_v43 }
 0x618   : > { %6366 = vmatmul.mubr.msk.bf16.gmra.mxu0 %vm1494_vm1, %v1912_v62 }
 0x667   : > { %v8629_v56 = vpop.f32.mrf.mxu0 }
 0x668   : > { %10928 = vst [vmem:[#allocation51_spill] sm:$0xff] %v8629_v56  ;;  %v9001_v56 = vld [vmem:[%s10919_s18 + $0x20] sm:$0xff] }
 0x669   : > { %v8631_v42 = vpop.f32.mrf.mxu0 }
 0x66a   : > { %10929 = vst [vmem:[#allocation52_spill] sm:$0xff] %v8631_v42 }
 0x66b   : > { %v8633_v48 = vpop.f32.mrf.mxu0 }
 0x66c   : > { %10930 = vst [vmem:[#allocation53_spill] sm:$0xff] %v8633_v48 }
 0x66d   : > { %v8635_v31 = vpop.f32.mrf.mxu0 }
 0x66e   : > { %10931 = vst [vmem:[#allocation54_spill] sm:$0xff] %v8635_v31 }
 0x6a0   : > { %v8637_v50 = vpop.f32.mrf.mxu0 }
 0x6a1   : > { %10932 = vst [vmem:[#allocation55_spill] sm:$0xff] %v8637_v50 }
 0x6a2   : > { %v8639_v20 = vpop.f32.mrf.mxu0 }
 0x6a3   : > { %10933 = vst [vmem:[#allocation56_spill] sm:$0xff] %v8639_v20 }
 0x6a4   : > { %v8641_v45 = vpop.f32.mrf.mxu0 }
 0x6a5   : > { %10934 = vst [vmem:[#allocation57_spill] sm:$0xff] %v8641_v45 }
 0x6a6   : > { %v8643_v35 = vpop.f32.mrf.mxu0 }
 0x6a7   : > { %10935 = vst [vmem:[#allocation58_spill] sm:$0xff] %v8643_v35 }
 0x6b0   : > { %v8645_v44 = vpop.f32.mrf.mxu0 }
 0x6b1   : > { %10936 = vst [vmem:[#allocation59_spill] sm:$0xff] %v8645_v44 }
 0x6b2   : > { %v8647_v15 = vpop.f32.mrf.mxu0 }
 0x6b3   : > { %10937 = vst [vmem:[#allocation60_spill] sm:$0xff] %v8647_v15 }
 0x6b4   : > { %v8649_v47 = vpop.f32.mrf.mxu0 }
 0x6b5   : > { %10938 = vst [vmem:[#allocation61_spill] sm:$0xff] %v8649_v47 }
 0x6b6   : > { %v8651_v51 = vpop.f32.mrf.mxu0 }
 0x6b7   : > { %10939 = vst [vmem:[#allocation62_spill] sm:$0xff] %v8651_v51 }
 0x6b8   : > { %v8653_v19 = vpop.f32.mrf.mxu0 }
 0x6b9   : > { %10940 = vst [vmem:[#allocation63_spill] sm:$0xff] %v8653_v19 }
 0x6ba   : > { %v8655_v53 = vpop.f32.mrf.mxu0 }
 0x6bb   : > { %10941 = vst [vmem:[#allocation64_spill] sm:$0xff] %v8655_v53 }
 0x6bc   : > { %v8657_v10 = vpop.f32.mrf.mxu0 }
 0x6bd   : > { %10942 = vst [vmem:[#allocation65_spill] sm:$0xff] %v8657_v10 }
 0x6be   : > { %v8659_v43 = vpop.f32.mrf.mxu0 }
 0x6bf   : > { %10943 = vst [vmem:[#allocation66_spill] sm:$0xff] %v8659_v43 }
 0x6c0   : > { %v6355_v61 = vpop.f32.mrf.mxu0 }
 0x6c1   : > { %v2028_v40 = vadd.f32 %v6355_v61, %v8334_v38 }
 0x6c2   : > { %v2019_v3 = vpop.f32.mrf.mxu0 }
 0x6c3   : > { %2086 = vmax.xlane.f32.xlu0 %v2028_v40  ;;  %v2020_v52 = vadd.f32 %v2019_v3, %v8342_v8 }
 0x6c4   : > { %v6356_v57 = vpop.f32.mrf.mxu0 }
 0x6c5   : > { %v2031_v49 = vadd.f32 %v6356_v57, %v8347_v41  ;;  %v10948_v57 = vld [vmem:[#allocation47_spill] sm:$0xff] }
 0x6c6   : > { %v2022_v23 = vpop.f32.mrf.mxu0 }
 0x6c7   : > { %2082 = vmax.xlane.f32.xlu0 %v2020_v52  ;;  %v2023_v26 = vadd.f32 %v2022_v23, %v8364_v13 }
 0x6c8   : > { %v6359_v1 = vpop.f32.mrf.mxu0 }
 0x6c9   : > { %2084 = vmax.xlane.f32.xlu1 %v2023_v26 }
 0x6ca   : > { %v2035_v33 = vpop.f32.mrf.mxu0 }
 0x6cb   : > { %2088 = vmax.xlane.f32.xlu0 %v2031_v49  ;;  %v8689_v5 = vadd.f32 %v2035_v33, %v10945_v4  ;;  %v10949_v33 = vld [vmem:[#allocation48_spill] sm:$0xff] }
 0x6cc   : > { %v6360_v37 = vpop.f32.mrf.mxu0  ;;  %v10953_v4 = vld [vmem:[#allocation40_spill] sm:$0xff] }
 0x6cd   : > { %v8666_v27 = vadd.f32 %v6360_v37, %v8382_v46 }
 0x6ce   : > { %v2038_v38 = vpop.f32.mrf.mxu0 }
 0x6cf   : > { %2096 = vmax.xlane.f32.xlu1 %v8666_v27  ;;  %v8670_v8 = vadd.f32 %v2038_v38, %v8400_v28  ;;  %v10950_v38 = vld [vmem:[#allocation49_spill] sm:$0xff] }
 0x6d0   : > { %v6363_v62 = vpop.f32.mrf.mxu0 }
 0x6d2   : > { %v2051_v34 = vpop.f32.mrf.mxu0 }
 0x6d3   : > { %2092 = vmax.xlane.f32.xlu1 %v8670_v8  ;;  %v8697_v61 = vadd.f32 %v2051_v34, %v10947_v6  ;;  %v10951_v34 = vld [vmem:[#allocation50_spill] sm:$0xff] }
 0x6d4   : > { %v6364_v13 = vpop.f32.mrf.mxu0 }
 0x6d5   : > { %v8674_v41 = vadd.f32 %v6364_v13, %v8418_v58  ;;  %v10944_v58 = vld [vmem:[#allocation43_spill] sm:$0xff] }
 0x6d6   : > { %v2054_v16 = vpop.f32.mrf.mxu0  ;;  %v2044_v28 = vadd.f32 %v6359_v1, %v10944_v58  ;;  %v10952_v58 = vld [vmem:[#allocation39_spill] sm:$0xff] }
 0x6d7   : > { %2104 = vmax.xlane.f32.xlu1 %v8674_v41  ;;  %v8678_v46 = vadd.f32 %v2054_v16, %v8436_v55  ;;  %v10946_v55 = vld [vmem:[#allocation45_spill] sm:$0xff] }
 0x6d8   : > { %v8693_v60 = vadd.f32 %v6363_v62, %v10946_v55  ;;  %v6367_v22 = vpop.f32.mrf.mxu0  ;;  %v10954_v55 = vld [vmem:[#allocation41_spill] sm:$0xff] }
 0x6d9   : > { %v8701_v23 = vadd.f32 %v6367_v22, %v10948_v57 }
 0x6da   : > { %v2067_v3 = vpop.f32.mrf.mxu0 }
 0x6db   : > { %2100 = vmax.xlane.f32.xlu1 %v8678_v46  ;;  %v8705_v37 = vadd.f32 %v2067_v3, %v10949_v33  ;;  %v2243_v3 = vpop.permute.xlu1 %2242 }
 0x6dc   : > { %v6368_v1 = vpop.f32.mrf.mxu0 }
 0x6dd   : > { %v8708_v62 = vadd.f32 %v6368_v1, %v10950_v38 }
 0x6de   : > { %v2070_v13 = vpop.f32.mrf.mxu0 }
 0x6df   : > { %v8713_v16 = vadd.f32 %v2070_v13, %v10951_v34 }
 0x6e1   : > { %2244 = vrot.lane.b32.xlu0 %v8223_v0, %s7601_s3 }
 0x6ec   : > { %2391 = vrot.lane.b32.xlu1 %v8220_v7, %s10881_s19 }
 0x6f0   : > { %2387 = vrot.lane.b32.xlu1 %v8265_v36, %s10881_s19 }
 0x700   : > { %2094 = vmax.xlane.f32.xlu0 %v2044_v28 }
 0x704   : > { %2090 = vmax.xlane.f32.xlu0 %v8689_v5 }
 0x708   : > { %2102 = vmax.xlane.f32.xlu0 %v8693_v60 }
 0x70c   : > { %2098 = vmax.xlane.f32.xlu0 %v8697_v61 }
 0x710   : > { %2110 = vmax.xlane.f32.xlu0 %v8701_v23 }
 0x714   : > { %2112 = vmax.xlane.f32.xlu1 %v8708_v62  ;;  %2106 = vmax.xlane.f32.xlu0 %v8705_v37 }
 0x718   : > { %2108 = vmax.xlane.f32.xlu1 %v8713_v16 }
 0x72a   : > { %2393 = vrot.lane.b32.xlu0 %v10952_v58, %s10881_s19 }
 0x72e   : > { %2389 = vrot.lane.b32.xlu0 %v10953_v4, %s10881_s19 }
 0x732   : > { %2385 = vrot.lane.b32.xlu0 %v10954_v55, %s10881_s19 }
 0x74c   : > { %v2087_v22 = vpop.xlane.xlu0 %2086 }
 0x74d   : > { %v2116_v6 = vsub.f32 %v2028_v40, %v2087_v22 }
 0x74f   : > { %v2134_v57 = vmul.f32 1.442695, %v2116_v6 }
 0x750   : > { %v2083_v1 = vpop.xlane.xlu0 %2082 }
 0x751   : > { %7045 = vpow2.f32 %v2134_v57  ;;  %v2114_v33 = vsub.f32 %v2020_v52, %v2083_v1 }
 0x752   : > { %v2085_v38 = vpop.xlane.xlu1 %2084 }
 0x753   : > { %v2130_v13 = vmul.f32 1.442695, %v2114_v33  ;;  %v2115_v53 = vsub.f32 %v2023_v26, %v2085_v38 }
 0x754   : > { %v2089_v34 = vpop.xlane.xlu0 %2088 }
 0x755   : > { %7047 = vpow2.f32 %v2130_v13  ;;  %v2117_v43 = vsub.f32 %v2031_v49, %v2089_v34  ;;  %v2132_v15 = vmul.f32 1.442695, %v2115_v53 }
 0x757   : > { %v2136_v19 = vmul.f32 1.442695, %v2117_v43 }
 0x758   : > { %v2245_v10 = vpop.permute.xlu0 %2244 }
 0x759   : > { %7049 = vpow2.f32 %v2136_v19  ;;  %6381 = vmatprep.subr.bf16.mxu1 %v2245_v10  ;;  %v2097_v19 = vpop.xlane.xlu1 %2096 }
 0x75a   : > { %6382 = vmatpush3.bf16.msra.mxu1 %v2245_v10  ;;  %7051 = vpow2.f32 %v2132_v15  ;;  %v10955_v15 = vld [vmem:[#allocation42_spill] sm:$0xff]  ;;  %v2121_v57 = vsub.f32 %v8666_v27, %v2097_v19 }
 0x75b   : > { %6383 = vmatprep.subr.bf16.mxu1 %v2243_v3 }
 0x75c   : > { %v2144_v51 = vmul.f32 1.442695, %v2121_v57 }
 0x75d   : > { %v2093_v53 = vpop.xlane.xlu1 %2092 }
 0x75e   : > { %v8722_v40 = vpop.eup %7045  ;;  %6384 = vmatpush3.bf16.msra.mxu1 %v2243_v3  ;;  %v2119_v26 = vsub.f32 %v8670_v8, %v2093_v53 }
 0x75f   : > { %2166 = vadd.xlane.f32.xlu1 %v8722_v40 }
 0x760   : > { %v2140_v1 = vmul.f32 1.442695, %v2119_v26 }
 0x761   : > { %v2105_v10 = vpop.xlane.xlu1 %2104 }
 0x762   : > { %v8725_v52 = vpop.eup %7047 }
 0x763   : > { %2162 = vadd.xlane.f32.xlu1 %v8725_v52 }
 0x765   : > { %v2101_v33 = vpop.xlane.xlu1 %2100 }
 0x766   : > { %v8728_v22 = vpop.eup %7049 }
 0x767   : > { %2168 = vadd.xlane.f32.xlu1 %v8728_v22  ;;  %v8731_v43 = vpop.eup %7051 }
 0x769   : > { %v8740_v20 = vpop.permute.xlu1 %2391 }
 0x76b   : > { %2164 = vadd.xlane.f32.xlu1 %v8731_v43 }
 0x77c   : > { %2383 = vrot.lane.b32.xlu1 %v10955_v15, %s10881_s19 }
 0x789   : > { %v2095_v49 = vpop.xlane.xlu0 %2094 }
 0x78a   : > { %v2120_v6 = vsub.f32 %v2044_v28, %v2095_v49  ;;  %v2125_v28 = vsub.f32 %v8674_v41, %v2105_v10 }
 0x78c   : > { %v2142_v3 = vmul.f32 1.442695, %v2120_v6  ;;  %v2152_v26 = vmul.f32 1.442695, %v2125_v28  ;;  %v2123_v6 = vsub.f32 %v8678_v46, %v2101_v33 }
 0x78d   : > { %v2091_v38 = vpop.xlane.xlu0 %2090 }
 0x78e   : > { %7053 = vpow2.f32 %v2142_v3  ;;  %v2118_v13 = vsub.f32 %v8689_v5, %v2091_v38  ;;  %v8744_v5 = vpop.permute.xlu1 %2387 }
 0x78f   : > { %7055 = vpow2.f32 %v2140_v1 }
 0x790   : > { %v2138_v34 = vmul.f32 1.442695, %v2118_v13 }
 0x791   : > { %v2103_v44 = vpop.xlane.xlu0 %2102 }
 0x792   : > { %7057 = vpow2.f32 %v2138_v34  ;;  %v2124_v47 = vsub.f32 %v8693_v60, %v2103_v44 }
 0x793   : > { %7059 = vpow2.f32 %v2144_v51 }
 0x794   : > { %v2150_v8 = vmul.f32 1.442695, %v2124_v47 }
 0x795   : > { %v2099_v27 = vpop.xlane.xlu0 %2098 }
 0x796   : > { %7061 = vpow2.f32 %v2150_v8  ;;  %v2122_v19 = vsub.f32 %v8697_v61, %v2099_v27  ;;  %v2148_v61 = vmul.f32 1.442695, %v2123_v6 }
 0x798   : > { %v2146_v53 = vmul.f32 1.442695, %v2122_v19 }
 0x799   : > { %v2111_v49 = vpop.xlane.xlu0 %2110 }
 0x79a   : > { %7063 = vpow2.f32 %v2146_v53  ;;  %v2128_v44 = vsub.f32 %v8701_v23, %v2111_v49 }
 0x79b   : > { %v8748_v60 = vpop.eup %7053  ;;  %7065 = vpow2.f32 %v2152_v26 }
 0x79c   : > { %v2158_v47 = vmul.f32 1.442695, %v2128_v44  ;;  %2174 = vadd.xlane.f32.xlu0 %v8748_v60  ;;  %v8751_v10 = vpop.eup %7055 }
 0x79d   : > { %v2113_v51 = vpop.xlane.xlu1 %2112  ;;  %v2107_v41 = vpop.xlane.xlu0 %2106 }
 0x79e   : > { %7067 = vpow2.f32 %v2158_v47  ;;  %v2126_v3 = vsub.f32 %v8705_v37, %v2107_v41  ;;  %v2129_v46 = vsub.f32 %v8708_v62, %v2113_v51 }
 0x79f   : > { %v8754_v57 = vpop.eup %7057  ;;  %7069 = vpow2.f32 %v2148_v61 }
 0x7a0   : > { %v2154_v1 = vmul.f32 1.442695, %v2126_v3  ;;  %2172 = vadd.xlane.f32.xlu1 %v8751_v10  ;;  %2170 = vadd.xlane.f32.xlu0 %v8754_v57  ;;  %v8761_v38 = vpop.eup %7059  ;;  %v2160_v34 = vmul.f32 1.442695, %v2129_v46 }
 0x7a1   : > { %v2109_v23 = vpop.xlane.xlu1 %2108  ;;  %v8759_v33 = vpop.permute.xlu0 %2393 }
 0x7a2   : > { %v2127_v13 = vsub.f32 %v8713_v16, %v2109_v23  ;;  %6593 = vmatprep.subr.msk.bf16.mxu1 %vm1494_vm1, %v8759_v33  ;;  %7071 = vpow2.f32 %v2154_v1 }
 0x7a3   : > { %v8766_v37 = vpop.eup %7061 }
 0x7a4   : > { %v2156_v62 = vmul.f32 1.442695, %v2127_v13  ;;  %2176 = vadd.xlane.f32.xlu0 %v8761_v38  ;;  %2182 = vadd.xlane.f32.xlu1 %v8766_v37 }
 0x7a6   : > { %7073 = vpow2.f32 %v2156_v62 }
 0x7a7   : > { %v8770_v8 = vpop.eup %7063  ;;  %7075 = vpow2.f32 %v2160_v34 }
 0x7a8   : > { %2178 = vadd.xlane.f32.xlu1 %v8770_v8  ;;  %v8773_v28 = vpop.eup %7065 }
 0x7ab   : > { %v8775_v16 = vpop.eup %7067 }
 0x7ac   : > { %2184 = vadd.xlane.f32.xlu1 %v8773_v28  ;;  %2190 = vadd.xlane.f32.xlu0 %v8775_v16  ;;  %v8779_v27 = vpop.eup %7069 }
 0x7af   : > { %v8781_v19 = vpop.eup %7071 }
 0x7b0   : > { %2180 = vadd.xlane.f32.xlu1 %v8779_v27  ;;  %2186 = vadd.xlane.f32.xlu0 %v8781_v19 }
 0x7b3   : > { %v8785_v53 = vpop.eup %7073 }
 0x7b4   : > { %v8787_v26 = vpop.eup %7075  ;;  %2188 = vadd.xlane.f32.xlu1 %v8785_v53 }
 0x7b5   : > { %2192 = vadd.xlane.f32.xlu0 %v8787_v26 }
 0x7c5   : > { %2379 = vrot.lane.b32.xlu1 %v8305_v24, %s10881_s19 }
 0x7c9   : > { %2365 = vrot.lane.b32.xlu1 %v8129_v54, %s10881_s19 }
 0x7cb   : > { %2381 = vrot.lane.b32.xlu0 %v8295_v25, %s10881_s19 }
 0x7cd   : > { %2369 = vrot.lane.b32.xlu1 %v8148_v21, %s10881_s19 }
 0x7cf   : > { %2363 = vrot.lane.b32.xlu0 %v8111_v39, %s10881_s19 }
 0x7d1   : > { %2373 = vrot.lane.b32.xlu1 %v8187_v18, %s10881_s19 }
 0x7d3   : > { %2367 = vrot.lane.b32.xlu0 %v8139_v9, %s10881_s19 }
 0x7d5   : > { %2377 = vrot.lane.b32.xlu1 %v8237_v14, %s10881_s19 }
 0x7d7   : > { %2371 = vrot.lane.b32.xlu0 %v8171_v32, %s10881_s19 }
 0x7d9   : > { %2704 = vrot.lane.b32.xlu1 %v8166_v30, %s10881_s19 }
 0x7db   : > { %2375 = vrot.lane.b32.xlu0 %v8213_v12, %s10881_s19 }
 0x7dd   : > { %2696 = vrot.lane.b32.xlu1 %v8210_v17, %s10881_s19 }
 0x7df   : > { %2706 = vrot.lane.b32.xlu0 %v8161_v63, %s10881_s19 }
 0x7e1   : > { %2692 = vrot.lane.b32.xlu1 %v8234_v59, %s10881_s19 }
 0x7e3   : > { %2702 = vrot.lane.b32.xlu0 %v8177_v11, %s10881_s19 }
 0x7e7   : > { %2700 = vrot.lane.b32.xlu0 %v8185_v2, %s10881_s19 }
 0x7e8   : > { %v2167_v49 = vpop.xlane.xlu1 %2166 }
 0x7eb   : > { %2698 = vrot.lane.b32.xlu0 %v8195_v29, %s10881_s19 }
 0x7ec   : > { %v2163_v6 = vpop.xlane.xlu1 %2162 }
 0x7f0   : > { %v2169_v44 = vpop.xlane.xlu1 %2168 }
 0x7f1   : > { %7077 = vrcp.f32 %v2169_v44 }
 0x7f2   : > { %7079 = vrcp.f32 %v2163_v6  ;;  %v2390_v6 = vpop.permute.xlu0 %2389 }
 0x7f3   : > { %7081 = vrcp.f32 %v2167_v49  ;;  %v2441_v49 = vsel %vm1494_vm1, %v8759_v33, 0 }
 0x7f4   : > { %v2165_v47 = vpop.xlane.xlu1 %2164 }
 0x7f5   : > { %7083 = vrcp.f32 %v2165_v47 }
 0x7f8   : > { %v2384_v33 = vpop.permute.xlu1 %2383 }
 0x7fe   : > { %v7078_v51 = vpop.eup %7077 }
 0x7ff   : > { %v7080_v41 = vpop.eup %7079  ;;  %v2213_v46 = vmul.f32 %v7078_v51, %v8728_v22  ;;  %v2438_v22 = vsel %vm1494_vm1, %v8740_v20, 0 }
 0x800   : > { %v7082_v61 = vpop.eup %7081  ;;  %v2210_v1 = vmul.f32 %v7080_v41, %v8725_v52  ;;  %v2432_v52 = vsel %vm1494_vm1, %v8744_v5, 0 }
 0x801   : > { %v2212_v13 = vmul.f32 %v7082_v61, %v8722_v40  ;;  %v2435_v40 = vsel %vm1494_vm1, %v2390_v6, 0 }
 0x802   : > { %v7084_v3 = vpop.eup %7083 }
 0x803   : > { %v2211_v23 = vmul.f32 %v7084_v3, %v8731_v43  ;;  %v2227_v62 = vpack.c.bf16 %v2213_v46, %v2212_v13  ;;  %v2386_v43 = vpop.permute.xlu0 %2385 }
 0x805   : > { %v2226_v34 = vpack.c.bf16 %v2211_v23, %v2210_v1 }
 0x807   : > { %6385 = vmatprep.mubr.bf16.mxu1 %v2226_v34 }
 0x808   : > { %6386 = vmatmul.mubr.bf16.vlgmr.msra.gmra.mxu1 %v2227_v62 }
 0x809   : > { %6402 = vmatpush3.bf16.xpose.msra.mxu1 %v2441_v49 }
 0x80a   : > { %6594 = vmatprep.subr.msk.bf16.mxu1 %vm1494_vm1, %v8740_v20  ;;  %v2429_v20 = vsel %vm1494_vm1, %v2386_v43, 0 }
 0x811   : > { %6404 = vmatpush3.bf16.xpose.msra.mxu1 %v2438_v22 }
 0x812   : > { %6595 = vmatprep.subr.msk.bf16.mxu1 %vm1494_vm1, %v2390_v6 }
 0x819   : > { %6406 = vmatpush3.bf16.xpose.msra.mxu1 %v2435_v40 }
 0x81a   : > { %6596 = vmatprep.subr.msk.bf16.mxu1 %vm1494_vm1, %v8744_v5  ;;  %v2426_v5 = vsel %vm1494_vm1, %v2384_v33, 0 }
 0x821   : > { %6408 = vmatpush3.bf16.xpose.msra.mxu1 %v2432_v52 }
 0x822   : > { %6597 = vmatprep.subr.msk.bf16.mxu1 %vm1494_vm1, %v2386_v43 }
 0x825   : > { %v2175_v44 = vpop.xlane.xlu0 %2174 }
 0x829   : > { %6410 = vmatpush3.bf16.xpose.msra.mxu1 %v2429_v20  ;;  %v2173_v47 = vpop.xlane.xlu1 %2172  ;;  %v2171_v51 = vpop.xlane.xlu0 %2170 }
 0x82a   : > { %7085 = vrcp.f32 %v2173_v47  ;;  %6598 = vmatprep.subr.msk.bf16.mxu1 %vm1494_vm1, %v2384_v33 }
 0x82b   : > { %7087 = vrcp.f32 %v2171_v51 }
 0x82c   : > { %7089 = vrcp.f32 %v2175_v44 }
 0x82d   : > { %v2183_v41 = vpop.xlane.xlu1 %2182  ;;  %v2177_v61 = vpop.xlane.xlu0 %2176 }
 0x82e   : > { %7091 = vrcp.f32 %v2177_v61 }
 0x831   : > { %6412 = vmatpush3.bf16.xpose.msra.mxu1 %v2426_v5  ;;  %v2179_v3 = vpop.xlane.xlu1 %2178 }
 0x835   : > { %v2185_v46 = vpop.xlane.xlu1 %2184  ;;  %v2191_v1 = vpop.xlane.xlu0 %2190 }
 0x836   : > { %7093 = vrcp.f32 %v2185_v46 }
 0x837   : > { %v7086_v23 = vpop.eup %7085  ;;  %7095 = vrcp.f32 %v2179_v3 }
 0x838   : > { %v7088_v13 = vpop.eup %7087  ;;  %v2215_v34 = vmul.f32 %v7086_v23, %v8751_v10  ;;  %7097 = vrcp.f32 %v2183_v41 }
 0x839   : > { %v2181_v62 = vpop.xlane.xlu1 %2180  ;;  %v2214_v49 = vmul.f32 %v7088_v13, %v8754_v57  ;;  %v7090_v22 = vpop.eup %7089 }
 0x83a   : > { %7099 = vrcp.f32 %v2181_v62  ;;  %v2187_v6 = vpop.xlane.xlu0 %2186  ;;  %v2216_v33 = vmul.f32 %v7090_v22, %v8748_v60 }
 0x83b   : > { %v2228_v40 = vpack.c.bf16 %v2215_v34, %v2214_v49  ;;  %v7092_v52 = vpop.eup %7091  ;;  %7101 = vrcp.f32 %v2187_v6 }
 0x83c   : > { %v2217_v44 = vmul.f32 %v7092_v52, %v8761_v38 }
 0x83d   : > { %6389 = vmatprep.mubr.bf16.mxu1 %v2228_v40  ;;  %v2189_v43 = vpop.xlane.xlu1 %2188 }
 0x83e   : > { %7103 = vrcp.f32 %v2189_v43  ;;  %v2193_v20 = vpop.xlane.xlu0 %2192  ;;  %v2229_v10 = vpack.c.bf16 %v2217_v44, %v2216_v33 }
 0x83f   : > { %7105 = vrcp.f32 %v2193_v20 }
 0x840   : > { %7107 = vrcp.f32 %v2191_v1  ;;  %6390 = vmatmul.mubr.bf16.gmra.mxu1 %v2229_v10 }
 0x841   : > { %v2380_v47 = vpop.permute.xlu1 %2379 }
 0x842   : > { %v2382_v57 = vpop.permute.xlu0 %2381  ;;  %v2420_v40 = vsel %vm1494_vm1, %v2380_v47, 0 }
 0x843   : > { %6599 = vmatprep.subr.msk.bf16.mxu1 %vm1494_vm1, %v2382_v57  ;;  %v2423_v51 = vsel %vm1494_vm1, %v2382_v57, 0  ;;  %v7094_v41 = vpop.eup %7093 }
 0x844   : > { %6414 = vmatpush3.bf16.xpose.msra.mxu1 %v2423_v51  ;;  %v7096_v61 = vpop.eup %7095  ;;  %v2221_v46 = vmul.f32 %v7094_v41, %v8773_v28 }
 0x845   : > { %6600 = vmatprep.subr.msk.bf16.mxu1 %vm1494_vm1, %v2380_v47  ;;  %v2366_v60 = vpop.permute.xlu1 %2365  ;;  %v7098_v5 = vpop.eup %7097  ;;  %v2218_v1 = vmul.f32 %v7096_v61, %v8770_v8 }
 0x846   : > { %v2364_v38 = vpop.permute.xlu0 %2363  ;;  %v2220_v62 = vmul.f32 %v7098_v5, %v8766_v37 }
 0x847   : > { %v7100_v3 = vpop.eup %7099 }
 0x848   : > { %v2219_v23 = vmul.f32 %v7100_v3, %v8779_v27  ;;  %v7102_v13 = vpop.eup %7101  ;;  %v2231_v52 = vpack.c.bf16 %v2221_v46, %v2220_v62 }
 0x849   : > { %v2370_v34 = vpop.permute.xlu1 %2369  ;;  %v2222_v33 = vmul.f32 %v7102_v13, %v8781_v19 }
 0x84a   : > { %v2368_v49 = vpop.permute.xlu0 %2367  ;;  %v2230_v22 = vpack.c.bf16 %v2219_v23, %v2218_v1 }
 0x84b   : > { %v7104_v6 = vpop.eup %7103 }
 0x84c   : > { %v7106_v43 = vpop.eup %7105  ;;  %6416 = vmatpush3.bf16.xpose.msra.mxu1 %v2420_v40  ;;  %6393 = vmatprep.mubr.bf16.mxu1 %v2230_v22  ;;  %v2223_v28 = vmul.f32 %v7104_v6, %v8785_v53 }
 0x84d   : > { %v2374_v8 = vpop.permute.xlu1 %2373  ;;  %6394 = vmatmul.mubr.bf16.gmra.mxu1 %v2231_v52  ;;  %v7108_v27 = vpop.eup %7107  ;;  %v2225_v37 = vmul.f32 %v7106_v43, %v8787_v26 }
 0x84e   : > { %v2372_v44 = vpop.permute.xlu0 %2371  ;;  %v2232_v20 = vpack.c.bf16 %v2223_v28, %v2222_v33  ;;  %v2224_v10 = vmul.f32 %v7108_v27, %v8775_v16 }
 0x850   : > { %6397 = vmatprep.mubr.bf16.mxu1 %v2232_v20  ;;  %v2233_v51 = vpack.c.bf16 %v2225_v37, %v2224_v10  ;;  %v8914_v37 = vld [vmem:[%s10919_s18 + $0x10] sm:$0xff] }
 0x851   : > { %v2378_v57 = vpop.permute.xlu1 %2377 }
 0x852   : > { %v2376_v47 = vpop.permute.xlu0 %2375 }
 0x855   : > { %6398 = vmatmul.mubr.bf16.gmra.mxu1 %v2233_v51  ;;  %v2705_v19 = vpop.permute.xlu1 %2704  ;;  %v8923_v51 = vld [vmem:[%s10919_s18] sm:$0xff] }
 0x856   : > { %v2707_v41 = vpop.permute.xlu0 %2706  ;;  %6417 = vmatprep.mubr.msk.bf16.mxu1 %vm1494_vm1, %v2364_v38 }
 0x857   : > { %6433 = vmatprep.subr.bf16.mxu0 %v2707_v41 }
 0x858   : > { %6434 = vmatpush3.bf16.msra.mxu0 %v2707_v41 }
 0x859   : > { %6435 = vmatprep.subr.bf16.mxu0 %v2705_v19  ;;  %v2697_v61 = vpop.permute.xlu1 %2696 }
 0x85a   : > { %v2703_v53 = vpop.permute.xlu0 %2702 }
 0x85c   : > { %6436 = vmatpush3.bf16.msra.mxu0 %v2705_v19 }
 0x85d   : > { %6437 = vmatprep.subr.bf16.mxu0 %v2703_v53  ;;  %6418 = vmatmul.mubr.msk.bf16.vlgmr.msra.gmra.mxu1 %vm1494_vm1, %v2366_v60 }
 0x85e   : > { %v2701_v26 = vpop.permute.xlu0 %2700  ;;  %6421 = vmatprep.mubr.msk.bf16.mxu1 %vm1494_vm1, %v2368_v49 }
 0x860   : > { %6438 = vmatpush3.bf16.msra.mxu0 %v2703_v53  ;;  %v8931_v53 = vld [vmem:[%s10919_s18 + $0x8] sm:$0xff] }
 0x861   : > { %6439 = vmatprep.subr.bf16.mxu0 %v2701_v26 }
 0x862   : > { %v2699_v16 = vpop.permute.xlu0 %2698 }
 0x864   : > { %6440 = vmatpush3.bf16.msra.mxu0 %v2701_v26 }
 0x865   : > { %6441 = vmatprep.subr.bf16.mxu0 %v2699_v16  ;;  %6422 = vmatmul.mubr.msk.bf16.gmra.mxu1 %vm1494_vm1, %v2370_v34 }
 0x866   : > { %6425 = vmatprep.mubr.msk.bf16.mxu1 %vm1494_vm1, %v2372_v44 }
 0x868   : > { %6442 = vmatpush3.bf16.msra.mxu0 %v2699_v16 }
 0x869   : > { %6443 = vmatprep.subr.bf16.mxu0 %v2697_v61 }
 0x86c   : > { %6444 = vmatpush3.bf16.msra.mxu0 %v2697_v61  ;;  %v8940_v61 = vld [vmem:[%s10919_s18 + $0x18] sm:$0xff] }
 0x86d   : > { %6426 = vmatmul.mubr.msk.bf16.gmra.mxu1 %vm1494_vm1, %v2374_v8 }
 0x86e   : > { %6429 = vmatprep.mubr.msk.bf16.mxu1 %vm1494_vm1, %v2376_v47 }
 0x875   : > { %6430 = vmatmul.mubr.msk.bf16.gmra.mxu1 %vm1494_vm1, %v2378_v57 }
 0x8c8   : > { %v8869_v60 = vpop.f32.mrf.mxu1 }
 0x8c9   : > { %10956 = vst [vmem:[#allocation43_spill] sm:$0xff] %v8869_v60 }
 0x8ca   : > { %v8871_v5 = vpop.f32.mrf.mxu1 }
 0x8cb   : > { %10957 = vst [vmem:[#allocation44_spill] sm:$0xff] %v8871_v5 }
 0x8cc   : > { %v8873_v38 = vpop.f32.mrf.mxu1 }
 0x8cd   : > { %10958 = vst [vmem:[#allocation45_spill] sm:$0xff] %v8873_v38 }
 0x8ce   : > { %v8877_v46 = vpop.f32.mrf.mxu1 }
 0x8cf   : > { %10959 = vst [vmem:[#allocation46_spill] sm:$0xff] %v8877_v46 }
 0x900   : > { %v8879_v1 = vpop.f32.mrf.mxu1 }
 0x901   : > { %10960 = vst [vmem:[#allocation47_spill] sm:$0xff] %v8879_v1 }
 0x902   : > { %v8881_v23 = vpop.f32.mrf.mxu1 }
 0x903   : > { %10961 = vst [vmem:[#allocation48_spill] sm:$0xff] %v8881_v23 }
 0x904   : > { %v8883_v13 = vpop.f32.mrf.mxu1 }
 0x905   : > { %10962 = vst [vmem:[#allocation49_spill] sm:$0xff] %v8883_v13  ;;  %v2693_v13 = vpop.permute.xlu1 %2692 }
 0x906   : > { %v8887_v62 = vpop.f32.mrf.mxu1 }
 0x907   : > { %10963 = vst [vmem:[#allocation50_spill] sm:$0xff] %v8887_v62 }
 0x90d   : > { %v8889_v49 = vpop.f32.mrf.mxu1 }
 0x90e   : > { %10964 = vst [vmem:[#allocation39_spill] sm:$0xff] %v8889_v49  ;;  %v9037_v49 = vld [vmem:[%s10919_s18 + $0x60] sm:$0xff] }
 0x90f   : > { %v8891_v22 = vpop.f32.mrf.mxu1 }
 0x910   : > { %10965 = vst [vmem:[#allocation40_spill] sm:$0xff] %v8891_v22  ;;  %v9055_v22 = vld [vmem:[%s10919_s18 + $0x68] sm:$0xff] }
 0x911   : > { %v8893_v6 = vpop.f32.mrf.mxu1 }
 0x912   : > { %10966 = vst [vmem:[#allocation41_spill] sm:$0xff] %v8893_v6  ;;  %v9045_v6 = vld [vmem:[%s10919_s18 + $0x78] sm:$0xff] }
 0x913   : > { %v8897_v52 = vpop.f32.mrf.mxu1 }
 0x914   : > { %10967 = vst [vmem:[#allocation42_spill] sm:$0xff] %v8897_v52 }
 0x915   : > { %v8899_v43 = vpop.f32.mrf.mxu1 }
 0x916   : > { %10968 = vst [vmem:[#allocation67_spill] sm:$0xff] %v8899_v43  ;;  %v9028_v43 = vld [vmem:[%s10919_s18 + $0x70] sm:$0xff] }
 0x917   : > { %v8901_v33 = vpop.f32.mrf.mxu1 }
 0x918   : > { %10969 = vst [vmem:[#allocation68_spill] sm:$0xff] %v8901_v33  ;;  %v9019_v33 = vld [vmem:[%s10919_s18 + $0x40] sm:$0xff] }
 0x919   : > { %v8903_v28 = vpop.f32.mrf.mxu1 }
 0x91a   : > { %10970 = vst [vmem:[#allocation69_spill] sm:$0xff] %v8903_v28 }
 0x91b   : > { %v8907_v27 = vpop.f32.mrf.mxu1 }
 0x91c   : > { %10971 = vst [vmem:[#allocation70_spill] sm:$0xff] %v8907_v27 }
 0x91d   : > { %v6419_v20 = vpop.f32.mrf.mxu1 }
 0x91e   : > { %v8917_v10 = vadd.f32 %v8914_v37, %v6419_v20 }
 0x91f   : > { %v2477_v57 = vpop.f32.mrf.mxu1 }
 0x920   : > { %2544 = vmax.xlane.f32.xlu0 %v8917_v10  ;;  %v8926_v41 = vadd.f32 %v8923_v51, %v2477_v57 }
 0x921   : > { %v6420_v47 = vpop.f32.mrf.mxu1 }
 0x922   : > { %v8943_v20 = vadd.f32 %v8940_v61, %v6420_v47  ;;  %v8959_v47 = vld [vmem:[%s10919_s18 + $0x28] sm:$0xff] }
 0x923   : > { %v2480_v19 = vpop.f32.mrf.mxu1 }
 0x924   : > { %v8934_v26 = vadd.f32 %v8931_v53, %v2480_v19  ;;  %2540 = vmax.xlane.f32.xlu0 %v8926_v41  ;;  %v8950_v19 = vld [vmem:[%s10919_s18 + $0x38] sm:$0xff] }
 0x925   : > { %v6423_v16 = vpop.f32.mrf.mxu1 }
 0x926   : > { %2542 = vmax.xlane.f32.xlu1 %v8934_v26 }
 0x927   : > { %v2493_v57 = vpop.f32.mrf.mxu1 }
 0x928   : > { %2546 = vmax.xlane.f32.xlu0 %v8943_v20 }
 0x929   : > { %v6424_v44 = vpop.f32.mrf.mxu1 }
 0x92a   : > { %v8953_v8 = vadd.f32 %v8950_v19, %v6424_v44  ;;  %v8968_v44 = vld [vmem:[%s10919_s18 + $0x58] sm:$0xff] }
 0x92b   : > { %v2496_v40 = vpop.f32.mrf.mxu1 }
 0x92c   : > { %2554 = vmax.xlane.f32.xlu1 %v8953_v8  ;;  %v8962_v3 = vadd.f32 %v8959_v47, %v2496_v40  ;;  %v8977_v40 = vld [vmem:[%s10919_s18 + $0x48] sm:$0xff] }
 0x92d   : > { %v6427_v34 = vpop.f32.mrf.mxu1 }
 0x92f   : > { %v2509_v35 = vpop.f32.mrf.mxu1 }
 0x930   : > { %2550 = vmax.xlane.f32.xlu1 %v8962_v3 }
 0x931   : > { %v6428_v50 = vpop.f32.mrf.mxu1 }
 0x932   : > { %v8971_v45 = vadd.f32 %v8968_v44, %v6428_v50  ;;  %v8992_v50 = vld [vmem:[%s10919_s18 + $0x30] sm:$0xff] }
 0x933   : > { %v2512_v42 = vpop.f32.mrf.mxu1 }
 0x934   : > { %2562 = vmax.xlane.f32.xlu1 %v8971_v45  ;;  %v8980_v31 = vadd.f32 %v8977_v40, %v2512_v42  ;;  %v8995_v42 = vadd.f32 %v8992_v50, %v6423_v16 }
 0x935   : > { %v6431_v48 = vpop.f32.mrf.mxu1 }
 0x937   : > { %v2525_v27 = vpop.f32.mrf.mxu1 }
 0x938   : > { %2558 = vmax.xlane.f32.xlu1 %v8980_v31 }
 0x939   : > { %v6432_v28 = vpop.f32.mrf.mxu1 }
 0x93a   : > { %v9048_v52 = vadd.f32 %v9045_v6, %v6432_v28 }
 0x93e   : > { %2694 = vrot.lane.b32.xlu0 %v8223_v0, %s10881_s19 }
 0x949   : > { %2841 = vrot.lane.b32.xlu1 %v8220_v7, %s7603_s26  ;;  %v9004_v7 = vadd.f32 %v9001_v56, %v2493_v57  ;;  %v9022_v57 = vadd.f32 %v9019_v33, %v2509_v35  ;;  %v9040_v35 = vadd.f32 %v9037_v49, %v2525_v27 }
 0x94d   : > { %2837 = vrot.lane.b32.xlu1 %v8265_v36, %s7603_s26  ;;  %v9010_v36 = vld [vmem:[%s10919_s18 + $0x50] sm:$0xff] }
 0x94e   : > { %v9013_v16 = vadd.f32 %v9010_v36, %v6427_v34  ;;  %v9031_v34 = vadd.f32 %v9028_v43, %v6431_v48  ;;  %v2528_v48 = vpop.f32.mrf.mxu1 }
 0x94f   : > { %v9058_v27 = vadd.f32 %v9055_v22, %v2528_v48 }
 0x95d   : > { %2552 = vmax.xlane.f32.xlu0 %v8995_v42 }
 0x961   : > { %2548 = vmax.xlane.f32.xlu0 %v9004_v7 }
 0x965   : > { %2560 = vmax.xlane.f32.xlu0 %v9013_v16 }
 0x969   : > { %2556 = vmax.xlane.f32.xlu0 %v9022_v57 }
 0x96d   : > { %2568 = vmax.xlane.f32.xlu0 %v9031_v34 }
 0x971   : > { %2570 = vmax.xlane.f32.xlu1 %v9048_v52  ;;  %2564 = vmax.xlane.f32.xlu0 %v9040_v35 }
 0x975   : > { %2566 = vmax.xlane.f32.xlu1 %v9058_v27 }
 0x987   : > { %2843 = vrot.lane.b32.xlu0 %v10952_v58, %s7603_s26 }
 0x98b   : > { %2839 = vrot.lane.b32.xlu0 %v10953_v4, %s7603_s26 }
 0x98f   : > { %2835 = vrot.lane.b32.xlu0 %v10954_v55, %s7603_s26 }
 0x9a9   : > { %v2545_v28 = vpop.xlane.xlu0 %2544 }
 0x9aa   : > { %v2574_v1 = vsub.f32 %v8917_v10, %v2545_v28 }
 0x9ac   : > { %v2592_v62 = vmul.f32 1.442695, %v2574_v1 }
 0x9ad   : > { %v2541_v23 = vpop.xlane.xlu0 %2540 }
 0x9ae   : > { %7109 = vpow2.f32 %v2592_v62  ;;  %v2572_v48 = vsub.f32 %v8926_v41, %v2541_v23 }
 0x9af   : > { %v2543_v46 = vpop.xlane.xlu1 %2542 }
 0x9b0   : > { %v2588_v5 = vmul.f32 1.442695, %v2572_v48  ;;  %v2573_v58 = vsub.f32 %v8934_v26, %v2543_v46 }
 0x9b1   : > { %v2547_v60 = vpop.xlane.xlu0 %2546 }
 0x9b2   : > { %7111 = vpow2.f32 %v2588_v5  ;;  %v2575_v4 = vsub.f32 %v8943_v20, %v2547_v60  ;;  %v2590_v55 = vmul.f32 1.442695, %v2573_v58 }
 0x9b4   : > { %v2594_v38 = vmul.f32 1.442695, %v2575_v4 }
 0x9b5   : > { %v2695_v0 = vpop.permute.xlu0 %2694 }
 0x9b6   : > { %7113 = vpow2.f32 %v2594_v38  ;;  %6445 = vmatprep.subr.bf16.mxu0 %v2695_v0 }
 0x9b7   : > { %6446 = vmatpush3.bf16.msra.mxu0 %v2695_v0  ;;  %7115 = vpow2.f32 %v2590_v55  ;;  %v2555_v0 = vpop.xlane.xlu1 %2554 }
 0x9b8   : > { %6447 = vmatprep.subr.bf16.mxu0 %v2693_v13  ;;  %v2579_v26 = vsub.f32 %v8953_v8, %v2555_v0 }
 0x9ba   : > { %v2602_v55 = vmul.f32 1.442695, %v2579_v26 }
 0x9bb   : > { %v9071_v1 = vpop.eup %7109  ;;  %6448 = vmatpush3.bf16.msra.mxu0 %v2693_v13  ;;  %v2551_v38 = vpop.xlane.xlu1 %2550 }
 0x9bc   : > { %2624 = vadd.xlane.f32.xlu1 %v9071_v1  ;;  %v2577_v13 = vsub.f32 %v8962_v3, %v2551_v38 }
 0x9be   : > { %v2598_v20 = vmul.f32 1.442695, %v2577_v13 }
 0x9bf   : > { %v9074_v23 = vpop.eup %7111  ;;  %v2563_v46 = vpop.xlane.xlu1 %2562 }
 0x9c0   : > { %2620 = vadd.xlane.f32.xlu1 %v9074_v23 }
 0x9c3   : > { %v9077_v5 = vpop.eup %7113  ;;  %v2559_v28 = vpop.xlane.xlu1 %2558 }
 0x9c4   : > { %2626 = vadd.xlane.f32.xlu1 %v9077_v5  ;;  %v9080_v60 = vpop.eup %7115 }
 0x9c7   : > { %v9090_v3 = vpop.permute.xlu1 %2841 }
 0x9c8   : > { %2622 = vadd.xlane.f32.xlu1 %v9080_v60 }
 0x9d9   : > { %2833 = vrot.lane.b32.xlu1 %v10955_v15, %s7603_s26 }
 0x9e6   : > { %v2553_v62 = vpop.xlane.xlu0 %2552 }
 0x9e7   : > { %v2578_v10 = vsub.f32 %v8995_v42, %v2553_v62  ;;  %v2583_v42 = vsub.f32 %v8971_v45, %v2563_v46 }
 0x9e9   : > { %v2600_v41 = vmul.f32 1.442695, %v2578_v10  ;;  %v2610_v62 = vmul.f32 1.442695, %v2583_v42 }
 0x9ea   : > { %v2549_v48 = vpop.xlane.xlu0 %2548 }
 0x9eb   : > { %7117 = vpow2.f32 %v2600_v41  ;;  %v2576_v58 = vsub.f32 %v9004_v7, %v2549_v48  ;;  %v9094_v7 = vpop.permute.xlu1 %2837  ;;  %v2581_v41 = vsub.f32 %v8980_v31, %v2559_v28 }
 0x9ec   : > { %7119 = vpow2.f32 %v2598_v20 }
 0x9ed   : > { %v2596_v4 = vmul.f32 1.442695, %v2576_v58 }
 0x9ee   : > { %v2561_v15 = vpop.xlane.xlu0 %2560 }
 0x9ef   : > { %7121 = vpow2.f32 %v2596_v4  ;;  %v2582_v59 = vsub.f32 %v9013_v16, %v2561_v15 }
 0x9f0   : > { %7123 = vpow2.f32 %v2602_v55 }
 0x9f1   : > { %v2608_v38 = vmul.f32 1.442695, %v2582_v59 }
 0x9f2   : > { %v2557_v8 = vpop.xlane.xlu0 %2556 }
 0x9f3   : > { %7125 = vpow2.f32 %v2608_v38  ;;  %v2580_v0 = vsub.f32 %v9022_v57, %v2557_v8  ;;  %v2606_v57 = vmul.f32 1.442695, %v2581_v41 }
 0x9f5   : > { %v2604_v13 = vmul.f32 1.442695, %v2580_v0 }
 0x9f6   : > { %v2569_v10 = vpop.xlane.xlu0 %2568 }
 0x9f7   : > { %7127 = vpow2.f32 %v2604_v13  ;;  %v2586_v16 = vsub.f32 %v9031_v34, %v2569_v10 }
 0x9f8   : > { %v9098_v26 = vpop.eup %7117  ;;  %7129 = vpow2.f32 %v2610_v62 }
 0x9f9   : > { %v2616_v59 = vmul.f32 1.442695, %v2586_v16  ;;  %2632 = vadd.xlane.f32.xlu0 %v9098_v26  ;;  %v9101_v20 = vpop.eup %7119  ;;  %v2888_v16 = vsel %vm1494_vm1, %v9090_v3, 0 }
 0x9fa   : > { %v2571_v45 = vpop.xlane.xlu1 %2570  ;;  %v2565_v46 = vpop.xlane.xlu0 %2564 }
 0x9fb   : > { %7131 = vpow2.f32 %v2616_v59  ;;  %v2584_v48 = vsub.f32 %v9040_v35, %v2565_v46  ;;  %v2587_v31 = vsub.f32 %v9048_v52, %v2571_v45 }
 0x9fc   : > { %v9104_v58 = vpop.eup %7121  ;;  %7133 = vpow2.f32 %v2606_v57 }
 0x9fd   : > { %v2612_v28 = vmul.f32 1.442695, %v2584_v48  ;;  %2630 = vadd.xlane.f32.xlu1 %v9101_v20  ;;  %2628 = vadd.xlane.f32.xlu0 %v9104_v58  ;;  %v9109_v55 = vpop.eup %7123  ;;  %v2618_v35 = vmul.f32 1.442695, %v2587_v31 }
 0x9fe   : > { %v2567_v34 = vpop.xlane.xlu1 %2566  ;;  %v2844_v4 = vpop.permute.xlu0 %2843 }
 0x9ff   : > { %v2585_v15 = vsub.f32 %v9058_v27, %v2567_v34  ;;  %6601 = vmatprep.subr.msk.bf16.mxu0 %vm1494_vm1, %v2844_v4  ;;  %7135 = vpow2.f32 %v2612_v28  ;;  %v2891_v41 = vsel %vm1494_vm1, %v2844_v4, 0 }
 0xa00   : > { %v9113_v38 = vpop.eup %7125 }
 0xa01   : > { %v2614_v42 = vmul.f32 1.442695, %v2585_v15  ;;  %2634 = vadd.xlane.f32.xlu0 %v9109_v55  ;;  %2640 = vadd.xlane.f32.xlu1 %v9113_v38 }
 0xa03   : > { %7137 = vpow2.f32 %v2614_v42 }
 0xa04   : > { %v9117_v52 = vpop.eup %7127  ;;  %7139 = vpow2.f32 %v2618_v35 }
 0xa05   : > { %2636 = vadd.xlane.f32.xlu1 %v9117_v52  ;;  %v9120_v8 = vpop.eup %7129 }
 0xa08   : > { %v9122_v27 = vpop.eup %7131 }
 0xa09   : > { %2642 = vadd.xlane.f32.xlu1 %v9120_v8  ;;  %2648 = vadd.xlane.f32.xlu0 %v9122_v27  ;;  %v9126_v0 = vpop.eup %7133 }
 0xa0c   : > { %v9128_v13 = vpop.eup %7135 }
 0xa0d   : > { %2638 = vadd.xlane.f32.xlu1 %v9126_v0  ;;  %2644 = vadd.xlane.f32.xlu0 %v9128_v13 }
 0xa10   : > { %v9132_v62 = vpop.eup %7137 }
 0xa11   : > { %v9134_v10 = vpop.eup %7139  ;;  %2646 = vadd.xlane.f32.xlu1 %v9132_v62 }
 0xa12   : > { %2650 = vadd.xlane.f32.xlu0 %v9134_v10 }
 0xa22   : > { %2829 = vrot.lane.b32.xlu1 %v8305_v24, %s7603_s26 }
 0xa26   : > { %2815 = vrot.lane.b32.xlu1 %v8129_v54, %s7603_s26 }
 0xa28   : > { %2831 = vrot.lane.b32.xlu0 %v8295_v25, %s7603_s26 }
 0xa2a   : > { %2819 = vrot.lane.b32.xlu1 %v8148_v21, %s7603_s26 }
 0xa2c   : > { %2813 = vrot.lane.b32.xlu0 %v8111_v39, %s7603_s26 }
 0xa2e   : > { %2823 = vrot.lane.b32.xlu1 %v8187_v18, %s7603_s26 }
 0xa30   : > { %2817 = vrot.lane.b32.xlu0 %v8139_v9, %s7603_s26 }
 0xa32   : > { %2827 = vrot.lane.b32.xlu1 %v8237_v14, %s7603_s26 }
 0xa34   : > { %2821 = vrot.lane.b32.xlu0 %v8171_v32, %s7603_s26 }
 0xa36   : > { %3154 = vrot.lane.b32.xlu1 %v8166_v30, %s7603_s26 }
 0xa38   : > { %2825 = vrot.lane.b32.xlu0 %v8213_v12, %s7603_s26 }
 0xa3c   : > { %3156 = vrot.lane.b32.xlu0 %v8161_v63, %s7603_s26 }
 0xa40   : > { %3152 = vrot.lane.b32.xlu0 %v8177_v11, %s7603_s26 }
 0xa44   : > { %3150 = vrot.lane.b32.xlu0 %v8185_v2, %s7603_s26 }
 0xa45   : > { %v2625_v39 = vpop.xlane.xlu1 %2624 }
 0xa49   : > { %v2621_v54 = vpop.xlane.xlu1 %2620 }
 0xa4d   : > { %v2627_v9 = vpop.xlane.xlu1 %2626 }
 0xa4e   : > { %7141 = vrcp.f32 %v2627_v9 }
 0xa4f   : > { %7143 = vrcp.f32 %v2621_v54 }
 0xa50   : > { %7145 = vrcp.f32 %v2625_v39 }
 0xa51   : > { %v2623_v21 = vpop.xlane.xlu1 %2622 }
 0xa52   : > { %7147 = vrcp.f32 %v2623_v21 }
 0xa55   : > { %v2834_v59 = vpop.permute.xlu1 %2833 }
 0xa5b   : > { %v7142_v30 = vpop.eup %7141 }
 0xa5c   : > { %v7144_v32 = vpop.eup %7143  ;;  %v2671_v63 = vmul.f32 %v7142_v30, %v9077_v5  ;;  %v2840_v5 = vpop.permute.xlu0 %2839 }
 0xa5d   : > { %v7146_v18 = vpop.eup %7145  ;;  %v2668_v14 = vmul.f32 %v7144_v32, %v9074_v23  ;;  %v2885_v23 = vsel %vm1494_vm1, %v2840_v5, 0 }
 0xa5e   : > { %v2670_v2 = vmul.f32 %v7146_v18, %v9071_v1  ;;  %v2882_v1 = vsel %vm1494_vm1, %v9094_v7, 0 }
 0xa5f   : > { %v7148_v12 = vpop.eup %7147 }
 0xa60   : > { %v2669_v11 = vmul.f32 %v7148_v12, %v9080_v60  ;;  %v2685_v24 = vpack.c.bf16 %v2671_v63, %v2670_v2  ;;  %v2836_v60 = vpop.permute.xlu0 %2835 }
 0xa62   : > { %v2684_v25 = vpack.c.bf16 %v2669_v11, %v2668_v14 }
 0xa64   : > { %6449 = vmatprep.mubr.bf16.mxu0 %v2684_v25 }
 0xa65   : > { %6450 = vmatmul.mubr.bf16.vlgmr.msra.gmra.mxu0 %v2685_v24 }
 0xa66   : > { %6466 = vmatpush3.bf16.xpose.msra.mxu0 %v2891_v41 }
 0xa67   : > { %6602 = vmatprep.subr.msk.bf16.mxu0 %vm1494_vm1, %v9090_v3  ;;  %v2879_v3 = vsel %vm1494_vm1, %v2836_v60, 0 }
 0xa6e   : > { %6468 = vmatpush3.bf16.xpose.msra.mxu0 %v2888_v16 }
 0xa6f   : > { %6603 = vmatprep.subr.msk.bf16.mxu0 %vm1494_vm1, %v2840_v5 }
 0xa76   : > { %6470 = vmatpush3.bf16.xpose.msra.mxu0 %v2885_v23 }
 0xa77   : > { %6604 = vmatprep.subr.msk.bf16.mxu0 %vm1494_vm1, %v9094_v7  ;;  %v2876_v7 = vsel %vm1494_vm1, %v2834_v59, 0 }
 0xa7e   : > { %6472 = vmatpush3.bf16.xpose.msra.mxu0 %v2882_v1 }
 0xa7f   : > { %6605 = vmatprep.subr.msk.bf16.mxu0 %vm1494_vm1, %v2836_v60 }
 0xa82   : > { %v2633_v45 = vpop.xlane.xlu0 %2632 }
 0xa86   : > { %6474 = vmatpush3.bf16.xpose.msra.mxu0 %v2879_v3  ;;  %v2631_v46 = vpop.xlane.xlu1 %2630  ;;  %v2629_v57 = vpop.xlane.xlu0 %2628 }
 0xa87   : > { %7149 = vrcp.f32 %v2631_v46  ;;  %6606 = vmatprep.subr.msk.bf16.mxu0 %vm1494_vm1, %v2834_v59 }
 0xa88   : > { %7151 = vrcp.f32 %v2629_v57 }
 0xa89   : > { %7153 = vrcp.f32 %v2633_v45 }
 0xa8a   : > { %v2641_v48 = vpop.xlane.xlu1 %2640  ;;  %v2635_v31 = vpop.xlane.xlu0 %2634 }
 0xa8b   : > { %7155 = vrcp.f32 %v2635_v31 }
 0xa8e   : > { %6476 = vmatpush3.bf16.xpose.msra.mxu0 %v2876_v7  ;;  %v2637_v28 = vpop.xlane.xlu1 %2636 }
 0xa92   : > { %v2643_v34 = vpop.xlane.xlu1 %2642  ;;  %v2649_v4 = vpop.xlane.xlu0 %2648 }
 0xa93   : > { %7157 = vrcp.f32 %v2643_v34 }
 0xa94   : > { %v7150_v15 = vpop.eup %7149  ;;  %7159 = vrcp.f32 %v2637_v28 }
 0xa95   : > { %v7152_v35 = vpop.eup %7151  ;;  %v2673_v42 = vmul.f32 %v7150_v15, %v9101_v20  ;;  %7161 = vrcp.f32 %v2641_v48 }
 0xa96   : > { %v2639_v39 = vpop.xlane.xlu1 %2638  ;;  %v2672_v54 = vmul.f32 %v7152_v35, %v9104_v58  ;;  %v7154_v9 = vpop.eup %7153 }
 0xa97   : > { %7163 = vrcp.f32 %v2639_v39  ;;  %v2645_v21 = vpop.xlane.xlu0 %2644  ;;  %v2674_v12 = vmul.f32 %v7154_v9, %v9098_v26 }
 0xa98   : > { %v2686_v30 = vpack.c.bf16 %v2673_v42, %v2672_v54  ;;  %v7156_v32 = vpop.eup %7155  ;;  %7165 = vrcp.f32 %v2645_v21 }
 0xa99   : > { %v2675_v63 = vmul.f32 %v7156_v32, %v9109_v55 }
 0xa9a   : > { %6453 = vmatprep.mubr.bf16.mxu0 %v2686_v30  ;;  %v2647_v18 = vpop.xlane.xlu1 %2646 }
 0xa9b   : > { %7167 = vrcp.f32 %v2647_v18  ;;  %v2651_v14 = vpop.xlane.xlu0 %2650  ;;  %v2687_v20 = vpack.c.bf16 %v2675_v63, %v2674_v12 }
 0xa9c   : > { %7169 = vrcp.f32 %v2651_v14 }
 0xa9d   : > { %7171 = vrcp.f32 %v2649_v4  ;;  %6454 = vmatmul.mubr.bf16.gmra.mxu0 %v2687_v20 }
 0xa9e   : > { %v2830_v11 = vpop.permute.xlu1 %2829 }
 0xa9f   : > { %v2832_v58 = vpop.permute.xlu0 %2831  ;;  %v2870_v48 = vsel %vm1494_vm1, %v2830_v11, 0 }
 0xaa0   : > { %6607 = vmatprep.subr.msk.bf16.mxu0 %vm1494_vm1, %v2832_v58  ;;  %v2873_v2 = vsel %vm1494_vm1, %v2832_v58, 0  ;;  %v7158_v25 = vpop.eup %7157 }
 0xaa1   : > { %6478 = vmatpush3.bf16.xpose.msra.mxu0 %v2873_v2  ;;  %v7160_v24 = vpop.eup %7159  ;;  %v2679_v5 = vmul.f32 %v7158_v25, %v9120_v8 }
 0xaa2   : > { %6608 = vmatprep.subr.msk.bf16.mxu0 %vm1494_vm1, %v2830_v11  ;;  %v2816_v26 = vpop.permute.xlu1 %2815  ;;  %v7162_v41 = vpop.eup %7161  ;;  %v2676_v23 = vmul.f32 %v7160_v24, %v9117_v52 }
 0xaa3   : > { %v2814_v55 = vpop.permute.xlu0 %2813  ;;  %v2678_v45 = vmul.f32 %v7162_v41, %v9113_v38 }
 0xaa4   : > { %v7164_v16 = vpop.eup %7163 }
 0xaa5   : > { %v2677_v1 = vmul.f32 %v7164_v16, %v9126_v0  ;;  %v7166_v60 = vpop.eup %7165  ;;  %v2689_v31 = vpack.c.bf16 %v2679_v5, %v2678_v45 }
 0xaa6   : > { %v2820_v59 = vpop.permute.xlu1 %2819  ;;  %v2680_v28 = vmul.f32 %v7166_v60, %v9128_v13 }
 0xaa7   : > { %v2818_v3 = vpop.permute.xlu0 %2817  ;;  %v2688_v46 = vpack.c.bf16 %v2677_v1, %v2676_v23 }
 0xaa8   : > { %v7168_v57 = vpop.eup %7167 }
 0xaa9   : > { %v7170_v7 = vpop.eup %7169  ;;  %6480 = vmatpush3.bf16.xpose.msra.mxu0 %v2870_v48  ;;  %6457 = vmatprep.mubr.bf16.mxu0 %v2688_v46  ;;  %v2681_v8 = vmul.f32 %v7168_v57, %v9132_v62 }
 0xaaa   : > { %v2824_v52 = vpop.permute.xlu1 %2823  ;;  %6458 = vmatmul.mubr.bf16.gmra.mxu0 %v2689_v31  ;;  %v7172_v0 = vpop.eup %7171  ;;  %v2683_v38 = vmul.f32 %v7170_v7, %v9134_v10 }
 0xaab   : > { %v2822_v34 = vpop.permute.xlu0 %2821  ;;  %v2690_v4 = vpack.c.bf16 %v2681_v8, %v2680_v28  ;;  %v2682_v15 = vmul.f32 %v7172_v0, %v9122_v27  ;;  %v10972_v27 = vmov 0  }
 0xaad   : > { %6461 = vmatprep.mubr.bf16.mxu0 %v2690_v4  ;;  %v2691_v39 = vpack.c.bf16 %v2683_v38, %v2682_v15 }
 0xaae   : > { %v2828_v35 = vpop.permute.xlu1 %2827 }
 0xaaf   : > { %v2826_v42 = vpop.permute.xlu0 %2825 }
 0xab2   : > { %6462 = vmatmul.mubr.bf16.gmra.mxu0 %v2691_v39  ;;  %v3155_v13 = vpop.permute.xlu1 %3154 }
 0xab3   : > { %v3157_v54 = vpop.permute.xlu0 %3156  ;;  %6481 = vmatprep.mubr.msk.bf16.mxu0 %vm1494_vm1, %v2814_v55 }
 0xab4   : > { %6497 = vmatprep.subr.bf16.mxu1 %v3157_v54 }
 0xab5   : > { %6498 = vmatpush3.bf16.msra.mxu1 %v3157_v54 }
 0xab6   : > { %6499 = vmatprep.subr.bf16.mxu1 %v3155_v13 }
 0xab7   : > { %v3153_v62 = vpop.permute.xlu0 %3152 }
 0xab9   : > { %6500 = vmatpush3.bf16.msra.mxu1 %v3155_v13 }
 0xaba   : > { %6501 = vmatprep.subr.bf16.mxu1 %v3153_v62  ;;  %6482 = vmatmul.mubr.msk.bf16.vlgmr.msra.gmra.mxu0 %vm1494_vm1, %v2816_v26 }
 0xabb   : > { %6485 = vmatprep.mubr.msk.bf16.mxu0 %vm1494_vm1, %v2818_v3  ;;  %v3151_v10 = vpop.permute.xlu0 %3150 }
 0xabd   : > { %6502 = vmatpush3.bf16.msra.mxu1 %v3153_v62 }
 0xabe   : > { %6503 = vmatprep.subr.bf16.mxu1 %v3151_v10 }
 0xac1   : > { %6504 = vmatpush3.bf16.msra.mxu1 %v3151_v10 }
 0xac2   : > { %6486 = vmatmul.mubr.msk.bf16.gmra.mxu0 %vm1494_vm1, %v2820_v59 }
 0xac3   : > { %6489 = vmatprep.mubr.msk.bf16.mxu0 %vm1494_vm1, %v2822_v34 }
 0xaca   : > { %6490 = vmatmul.mubr.msk.bf16.gmra.mxu0 %vm1494_vm1, %v2824_v52 }
 0xacb   : > { %6493 = vmatprep.mubr.msk.bf16.mxu0 %vm1494_vm1, %v2826_v42 }
 0xad2   : > { %6494 = vmatmul.mubr.msk.bf16.gmra.mxu0 %vm1494_vm1, %v2828_v35 }
 0xad3   : > { %4189 = vmatprep.mubr.bf16.mxu0 %v10972_v27 }
 0xb25   : > { %v9210_v9 = vpop.f32.mrf.mxu0 }
 0xb27   : > { %v9212_v21 = vpop.f32.mrf.mxu0 }
 0xb29   : > { %v9214_v30 = vpop.f32.mrf.mxu0 }
 0xb2a   : > { %v6713_v32 = vpack.i.bf16 %v9214_v30, %v9210_v9 }
 0xb2b   : > { %v9218_v18 = vpop.f32.mrf.mxu0 }
 0xb2c   : > { %v6708_v12 = vpack.i.bf16 %v9218_v18, %v9212_v21 }
 0xb5d   : > { %v9222_v63 = vpop.f32.mrf.mxu0 }
 0xb5f   : > { %v9224_v14 = vpop.f32.mrf.mxu0 }
 0xb61   : > { %v9226_v20 = vpop.f32.mrf.mxu0 }
 0xb62   : > { %v6743_v11 = vpack.i.bf16 %v9226_v20, %v9222_v63 }
 0xb63   : > { %v9230_v58 = vpop.f32.mrf.mxu0 }
 0xb64   : > { %v6738_v2 = vpack.i.bf16 %v9230_v58, %v9224_v14 }
 0xb6a   : > { %v9234_v25 = vpop.f32.mrf.mxu0 }
 0xb6c   : > { %v9236_v24 = vpop.f32.mrf.mxu0 }
 0xb6e   : > { %v9238_v26 = vpop.f32.mrf.mxu0 }
 0xb6f   : > { %v6773_v41 = vpack.i.bf16 %v9238_v26, %v9234_v25  ;;  %v10990_v25 = vld [vmem:[#allocation69_spill] sm:$0xff]  ;;  %v10991_v26 = vld [vmem:[#allocation67_spill] sm:$0xff] }
 0xb70   : > { %v9242_v55 = vpop.f32.mrf.mxu0 }
 0xb71   : > { %v6768_v16 = vpack.i.bf16 %v9242_v55, %v9236_v24  ;;  %v10993_v24 = vld [vmem:[#allocation70_spill] sm:$0xff]  ;;  %v10994_v55 = vld [vmem:[#allocation68_spill] sm:$0xff] }
 0xb72   : > { %v9246_v5 = vpop.f32.mrf.mxu0 }
 0xb74   : > { %v9248_v23 = vpop.f32.mrf.mxu0 }
 0xb76   : > { %v9250_v1 = vpop.f32.mrf.mxu0 }
 0xb77   : > { %v6803_v60 = vpack.i.bf16 %v9250_v1, %v9246_v5 }
 0xb78   : > { %v9254_v59 = vpop.f32.mrf.mxu0 }
 0xb79   : > { %v6798_v45 = vpack.i.bf16 %v9254_v59, %v9248_v23 }
 0xb7a   : > { %v6483_v3 = vpop.f32.mrf.mxu0 }
 0xb7b   : > { %v2936_v46 = vadd.f32 %v8914_v37, %v6483_v3 }
 0xb7c   : > { %v2927_v57 = vpop.f32.mrf.mxu0 }
 0xb7d   : > { %2994 = vmax.xlane.f32.xlu0 %v2936_v46  ;;  %v2928_v31 = vadd.f32 %v8923_v51, %v2927_v57 }
 0xb7e   : > { %v6484_v48 = vpop.f32.mrf.mxu0 }
 0xb7f   : > { %v2939_v52 = vadd.f32 %v8940_v61, %v6484_v48 }
 0xb80   : > { %v2930_v7 = vpop.f32.mrf.mxu0 }
 0xb81   : > { %v2931_v28 = vadd.f32 %v8931_v53, %v2930_v7  ;;  %2990 = vmax.xlane.f32.xlu0 %v2928_v31 }
 0xb82   : > { %v6487_v8 = vpop.f32.mrf.mxu0 }
 0xb83   : > { %2992 = vmax.xlane.f32.xlu1 %v2931_v28  ;;  %v2952_v4 = vadd.f32 %v8992_v50, %v6487_v8 }
 0xb84   : > { %v2943_v0 = vpop.f32.mrf.mxu0 }
 0xb85   : > { %2996 = vmax.xlane.f32.xlu0 %v2939_v52  ;;  %v2944_v51 = vadd.f32 %v9001_v56, %v2943_v0 }
 0xb86   : > { %v6488_v34 = vpop.f32.mrf.mxu0 }
 0xb87   : > { %v2955_v37 = vadd.f32 %v8950_v19, %v6488_v34 }
 0xb88   : > { %v2946_v38 = vpop.f32.mrf.mxu0 }
 0xb89   : > { %3002 = vmax.xlane.f32.xlu0 %v2952_v4  ;;  %3004 = vmax.xlane.f32.xlu1 %v2955_v37  ;;  %v2947_v53 = vadd.f32 %v8959_v47, %v2946_v38 }
 0xb8a   : > { %v6491_v15 = vpop.f32.mrf.mxu0 }
 0xb8b   : > { %v9267_v42 = vadd.f32 %v9010_v36, %v6491_v15 }
 0xb8c   : > { %v2959_v35 = vpop.f32.mrf.mxu0 }
 0xb8d   : > { %3000 = vmax.xlane.f32.xlu1 %v2947_v53  ;;  %2998 = vmax.xlane.f32.xlu0 %v2944_v51  ;;  %v9275_v19 = vadd.f32 %v9019_v33, %v2959_v35 }
 0xb8e   : > { %v6492_v61 = vpop.f32.mrf.mxu0 }
 0xb8f   : > { %v9270_v39 = vadd.f32 %v8968_v44, %v6492_v61 }
 0xb90   : > { %v2962_v50 = vpop.f32.mrf.mxu0 }
 0xb91   : > { %3010 = vmax.xlane.f32.xlu0 %v9267_v42  ;;  %3012 = vmax.xlane.f32.xlu1 %v9270_v39  ;;  %v9278_v56 = vadd.f32 %v8977_v40, %v2962_v50 }
 0xb92   : > { %v6495_v47 = vpop.f32.mrf.mxu0 }
 0xb93   : > { %v9283_v36 = vadd.f32 %v9028_v43, %v6495_v47 }
 0xb94   : > { %v2975_v44 = vpop.f32.mrf.mxu0 }
 0xb95   : > { %3008 = vmax.xlane.f32.xlu1 %v9278_v56  ;;  %3006 = vmax.xlane.f32.xlu0 %v9275_v19  ;;  %v9287_v54 = vadd.f32 %v9037_v49, %v2975_v44 }
 0xb96   : > { %v6496_v33 = vpop.f32.mrf.mxu0 }
 0xb97   : > { %v9295_v40 = vadd.f32 %v9045_v6, %v6496_v33 }
 0xb98   : > { %v2978_v43 = vpop.f32.mrf.mxu0 }
 0xb99   : > { %3018 = vmax.xlane.f32.xlu0 %v9283_v36  ;;  %v9299_v13 = vadd.f32 %v9055_v22, %v2978_v43 }
 0xb9d   : > { %3014 = vmax.xlane.f32.xlu0 %v9287_v54 }
 0xba6   : > { %3146 = vrot.lane.b32.xlu1 %v8210_v17, %s7603_s26 }
 0xbb3   : > { %3148 = vrot.lane.b32.xlu0 %v8195_v29, %s7603_s26 }
 0xbca   : > { %3020 = vmax.xlane.f32.xlu1 %v9295_v40 }
 0xbce   : > { %3016 = vmax.xlane.f32.xlu1 %v9299_v13 }
 0xc06   : > { %v2995_v49 = vpop.xlane.xlu0 %2994 }
 0xc07   : > { %v3024_v62 = vsub.f32 %v2936_v46, %v2995_v49 }
 0xc09   : > { %v3042_v10 = vmul.f32 1.442695, %v3024_v62 }
 0xc0a   : > { %v2991_v3 = vpop.xlane.xlu0 %2990 }
 0xc0b   : > { %7173 = vpow2.f32 %v3042_v10  ;;  %v3022_v17 = vsub.f32 %v2928_v31, %v2991_v3 }
 0xc0c   : > { %v2993_v57 = vpop.xlane.xlu1 %2992 }
 0xc0d   : > { %v3038_v29 = vmul.f32 1.442695, %v3022_v17  ;;  %v3023_v6 = vsub.f32 %v2931_v28, %v2993_v57 }
 0xc0e   : > { %v2997_v48 = vpop.xlane.xlu0 %2996 }
 0xc0f   : > { %7175 = vpow2.f32 %v3038_v29  ;;  %v3025_v7 = vsub.f32 %v2939_v52, %v2997_v48  ;;  %v3040_v38 = vmul.f32 1.442695, %v3023_v6 }
 0xc11   : > { %v3044_v8 = vmul.f32 1.442695, %v3025_v7  ;;  %v10973_v7 = vld [vmem:[#allocation38_spill] sm:$0xff] }
 0xc12   : > { %v3005_v0 = vpop.xlane.xlu1 %3004  ;;  %v3003_v34 = vpop.xlane.xlu0 %3002 }
 0xc13   : > { %7177 = vpow2.f32 %v3044_v8  ;;  %v3029_v22 = vsub.f32 %v2955_v37, %v3005_v0  ;;  %v3028_v15 = vsub.f32 %v2952_v4, %v3003_v34  ;;  %v10974_v8 = vld [vmem:[#allocation37_spill] sm:$0xff] }
 0xc14   : > { %7179 = vpow2.f32 %v3040_v38 }
 0xc15   : > { %v3050_v35 = vmul.f32 1.442695, %v3028_v15  ;;  %v3052_v50 = vmul.f32 1.442695, %v3029_v22 }
 0xc16   : > { %v3001_v61 = vpop.xlane.xlu1 %3000  ;;  %v2999_v46 = vpop.xlane.xlu0 %2998 }
 0xc17   : > { %v3026_v47 = vsub.f32 %v2944_v51, %v2999_v46  ;;  %7181 = vpow2.f32 %v3050_v35  ;;  %v3027_v44 = vsub.f32 %v2947_v53, %v3001_v61 }
 0xc18   : > { %v9302_v31 = vpop.eup %7173  ;;  %7183 = vpow2.f32 %v3052_v50 }
 0xc19   : > { %v3046_v33 = vmul.f32 1.442695, %v3026_v47  ;;  %3074 = vadd.xlane.f32.xlu1 %v9302_v31  ;;  %v3048_v43 = vmul.f32 1.442695, %v3027_v44 }
 0xc1a   : > { %v3011_v28 = vpop.xlane.xlu0 %3010  ;;  %v3013_v51 = vpop.xlane.xlu1 %3012 }
 0xc1b   : > { %7185 = vpow2.f32 %v3046_v33  ;;  %v3033_v34 = vsub.f32 %v9270_v39, %v3013_v51  ;;  %v3032_v35 = vsub.f32 %v9267_v42, %v3011_v28 }
 0xc1c   : > { %v9305_v52 = vpop.eup %7175  ;;  %7187 = vpow2.f32 %v3048_v43 }
 0xc1d   : > { %3070 = vadd.xlane.f32.xlu1 %v9305_v52  ;;  %v3060_v15 = vmul.f32 1.442695, %v3033_v34  ;;  %v3058_v50 = vmul.f32 1.442695, %v3032_v35 }
 0xc1e   : > { %v3007_v4 = vpop.xlane.xlu0 %3006  ;;  %v3009_v10 = vpop.xlane.xlu1 %3008 }
 0xc1f   : > { %v3030_v0 = vsub.f32 %v9275_v19, %v3007_v4  ;;  %v3031_v38 = vsub.f32 %v9278_v56, %v3009_v10 }
 0xc20   : > { %v9308_v37 = vpop.eup %7177 }
 0xc21   : > { %3076 = vadd.xlane.f32.xlu1 %v9308_v37  ;;  %v9311_v53 = vpop.eup %7179  ;;  %v3054_v22 = vmul.f32 1.442695, %v3030_v0  ;;  %v3056_v61 = vmul.f32 1.442695, %v3031_v38 }
 0xc22   : > { %v3019_v49 = vpop.xlane.xlu0 %3018  ;;  %v3147_v48 = vpop.permute.xlu1 %3146 }
 0xc23   : > { %7189 = vpow2.f32 %v3054_v22  ;;  %v3036_v39 = vsub.f32 %v9283_v36, %v3019_v49 }
 0xc24   : > { %v9313_v62 = vpop.eup %7181  ;;  %7191 = vpow2.f32 %v3060_v15 }
 0xc25   : > { %3072 = vadd.xlane.f32.xlu1 %v9311_v53  ;;  %3082 = vadd.xlane.f32.xlu0 %v9313_v62  ;;  %v9317_v17 = vpop.eup %7183  ;;  %7193 = vpow2.f32 %v3056_v61  ;;  %v3066_v42 = vmul.f32 1.442695, %v3036_v39 }
 0xc26   : > { %v3015_v3 = vpop.xlane.xlu0 %3014  ;;  %7195 = vpow2.f32 %v3058_v50 }
 0xc27   : > { %v3034_v47 = vsub.f32 %v9287_v54, %v3015_v3  ;;  %v10975_v3 = vld [vmem:[#allocation45_spill] sm:$0xff] }
 0xc28   : > { %v9319_v57 = vpop.eup %7185 }
 0xc29   : > { %3084 = vadd.xlane.f32.xlu0 %v9317_v17  ;;  %3078 = vadd.xlane.f32.xlu1 %v9319_v57  ;;  %v9323_v6 = vpop.eup %7187  ;;  %v3062_v56 = vmul.f32 1.442695, %v3034_v47 }
 0xc2a   : > { %v3149_v29 = vpop.permute.xlu0 %3148 }
 0xc2b   : > { %6505 = vmatprep.subr.bf16.mxu1 %v3149_v29 }
 0xc2c   : > { %6506 = vmatpush3.bf16.msra.mxu1 %v3149_v29  ;;  %v10976_v29 = vld [vmem:[#allocation43_spill] sm:$0xff] }
 0xc2d   : > { %6507 = vmatprep.subr.bf16.mxu1 %v3147_v48  ;;  %3080 = vadd.xlane.f32.xlu0 %v9323_v6 }
 0xc30   : > { %6508 = vmatpush3.bf16.msra.mxu1 %v3147_v48  ;;  %v9338_v28 = vpop.eup %7189  ;;  %v10977_v48 = vpack.i.bf16 %v10975_v3, %v10976_v29 }
 0xc31   : > { %v9341_v54 = vpop.eup %7191 }
 0xc3a   : > { %3142 = vrot.lane.b32.xlu1 %v10973_v7, %s7603_s26  ;;  %v10978_v7 = vld [vmem:[#allocation44_spill] sm:$0xff] }
 0xc43   : > { %3144 = vrot.lane.b32.xlu0 %v10974_v8, %s7603_s26  ;;  %v10979_v8 = vld [vmem:[#allocation46_spill] sm:$0xff] }
 0xc44   : > { %v6698_v0 = vpack.i.bf16 %v10979_v8, %v10978_v7 }
 0xc53   : > { %v3021_v46 = vpop.xlane.xlu1 %3020 }
 0xc54   : > { %v3037_v33 = vsub.f32 %v9295_v40, %v3021_v46  ;;  %v9343_v40 = vpop.eup %7193 }
 0xc55   : > { %v9347_v36 = vpop.eup %7195 }
 0xc56   : > { %v3068_v4 = vmul.f32 1.442695, %v3037_v33 }
 0xc57   : > { %v3017_v44 = vpop.xlane.xlu1 %3016 }
 0xc58   : > { %v3035_v19 = vsub.f32 %v9299_v13, %v3017_v44 }
 0xc5a   : > { %v3064_v43 = vmul.f32 1.442695, %v3035_v19 }
 0xc5c   : > { %7197 = vpow2.f32 %v3064_v43 }
 0xc5d   : > { %7199 = vpow2.f32 %v3062_v56 }
 0xc5e   : > { %3086 = vadd.xlane.f32.xlu1 %v9338_v28  ;;  %7201 = vpow2.f32 %v3068_v4 }
 0xc5f   : > { %7203 = vpow2.f32 %v3066_v42 }
 0xc62   : > { %3088 = vadd.xlane.f32.xlu0 %v9343_v40  ;;  %3092 = vadd.xlane.f32.xlu1 %v9341_v54 }
 0xc66   : > { %3090 = vadd.xlane.f32.xlu0 %v9347_v36 }
 0xc69   : > { %v9350_v13 = vpop.eup %7197 }
 0xc6a   : > { %v9352_v51 = vpop.eup %7199  ;;  %3096 = vadd.xlane.f32.xlu1 %v9350_v13 }
 0xc6b   : > { %3094 = vadd.xlane.f32.xlu0 %v9352_v51  ;;  %v9356_v49 = vpop.eup %7201 }
 0xc6c   : > { %v9358_v10 = vpop.eup %7203 }
 0xc6e   : > { %3100 = vadd.xlane.f32.xlu1 %v9356_v49 }
 0xc6f   : > { %3098 = vadd.xlane.f32.xlu0 %v9358_v10 }
 0xc7f   : > { %6704 = vrot.lane.b32.xlu1 %v10977_v48, %s7603_s26 }
 0xc83   : > { %6709 = vrot.lane.b32.xlu1 %v6708_v12, %s10881_s19 }
 0xc85   : > { %6699 = vrot.lane.b32.xlu0 %v6698_v0, %s7603_s26 }
 0xc87   : > { %6714 = vrot.lane.b32.xlu1 %v6713_v32, %s10881_s19 }
 0xca2   : > { %v3075_v34 = vpop.xlane.xlu1 %3074 }
 0xca6   : > { %v3071_v38 = vpop.xlane.xlu1 %3070 }
 0xca7   : > { %7205 = vrcp.f32 %v3071_v38 }
 0xcaa   : > { %v3077_v22 = vpop.xlane.xlu1 %3076 }
 0xcab   : > { %7207 = vrcp.f32 %v3077_v22 }
 0xcae   : > { %v3073_v15 = vpop.xlane.xlu1 %3072  ;;  %v3083_v35 = vpop.xlane.xlu0 %3082 }
 0xcaf   : > { %7209 = vrcp.f32 %v3073_v15 }
 0xcb0   : > { %7211 = vrcp.f32 %v3075_v34 }
 0xcb2   : > { %v3079_v61 = vpop.xlane.xlu1 %3078  ;;  %v3085_v46 = vpop.xlane.xlu0 %3084 }
 0xcb3   : > { %7213 = vrcp.f32 %v3079_v61 }
 0xcb4   : > { %7215 = vrcp.f32 %v3085_v46  ;;  %v7206_v18 = vpop.eup %7205 }
 0xcb5   : > { %7217 = vrcp.f32 %v3083_v35  ;;  %v3118_v47 = vmul.f32 %v7206_v18, %v9305_v52 }
 0xcb6   : > { %v3081_v21 = vpop.xlane.xlu0 %3080  ;;  %v3143_v50 = vpop.permute.xlu1 %3142 }
 0xcb7   : > { %7219 = vrcp.f32 %v3081_v21 }
 0xcb8   : > { %v7208_v12 = vpop.eup %7207 }
 0xcb9   : > { %v3121_v33 = vmul.f32 %v7208_v12, %v9308_v37 }
 0xcba   : > { %v3145_v9 = vpop.permute.xlu0 %3144 }
 0xcbb   : > { %6509 = vmatprep.subr.bf16.mxu1 %v3145_v9 }
 0xcbc   : > { %v7210_v30 = vpop.eup %7209  ;;  %6510 = vmatpush3.bf16.msra.mxu1 %v3145_v9 }
 0xcbd   : > { %v7212_v32 = vpop.eup %7211  ;;  %v3119_v44 = vmul.f32 %v7210_v30, %v9311_v53  ;;  %6511 = vmatprep.subr.bf16.mxu1 %v3143_v50 }
 0xcbe   : > { %v3120_v39 = vmul.f32 %v7212_v32, %v9302_v31 }
 0xcbf   : > { %v3134_v19 = vpack.c.bf16 %v3119_v44, %v3118_v47 }
 0xcc0   : > { %6512 = vmatpush3.bf16.msra.mxu1 %v3143_v50  ;;  %v7214_v56 = vpop.eup %7213  ;;  %v3135_v43 = vpack.c.bf16 %v3121_v33, %v3120_v39  ;;  %v6866_v39 = vld [vmem:[%s10780_s9 + $0x10] sm:$0xff]  }
 0xcc1   : > { %6513 = vmatprep.mubr.bf16.mxu1 %v3134_v19  ;;  %v7216_v4 = vpop.eup %7215  ;;  %v3122_v29 = vmul.f32 %v7214_v56, %v9319_v57  ;;  %v6867_v56 = vld [vmem:[%s10780_s9 + $0x8] sm:$0xff]  }
 0xcc2   : > { %v7218_v42 = vpop.eup %7217  ;;  %v3125_v53 = vmul.f32 %v7216_v4, %v9317_v17 }
 0xcc3   : > { %6514 = vmatmul.mubr.bf16.vlgmr.msra.gmra.mxu1 %v3135_v43  ;;  %v3124_v37 = vmul.f32 %v7218_v42, %v9313_v62  ;;  %v6868_v43 = vld [vmem:[%s10780_s9] sm:$0xff]  }
 0xcc4   : > { %v7220_v3 = vpop.eup %7219 }
 0xcc5   : > { %v3123_v52 = vmul.f32 %v7220_v3, %v9323_v6  ;;  %v3137_v7 = vpack.c.bf16 %v3125_v53, %v3124_v37 }
 0xcc7   : > { %v3136_v48 = vpack.c.bf16 %v3123_v52, %v3122_v29 }
 0xcc9   : > { %6517 = vmatprep.mubr.bf16.mxu1 %v3136_v48 }
 0xccb   : > { %6518 = vmatmul.mubr.bf16.gmra.mxu1 %v3137_v7  ;;  %v10980_v7 = vld [vmem:[#allocation48_spill] sm:$0xff] }
 0xce7   : > { %v3087_v31 = vpop.xlane.xlu1 %3086 }
 0xce8   : > { %7221 = vrcp.f32 %v3087_v31  ;;  %v10981_v31 = vld [vmem:[#allocation50_spill] sm:$0xff] }
 0xceb   : > { %v3093_v8 = vpop.xlane.xlu1 %3092  ;;  %v3089_v0 = vpop.xlane.xlu0 %3088 }
 0xcec   : > { %7223 = vrcp.f32 %v3089_v0  ;;  %v10982_v0 = vld [vmem:[#allocation49_spill] sm:$0xff] }
 0xced   : > { %7225 = vrcp.f32 %v3093_v8  ;;  %v6728_v8 = vpack.i.bf16 %v10981_v31, %v10980_v7 }
 0xcef   : > { %v3091_v34 = vpop.xlane.xlu0 %3090 }
 0xcf0   : > { %7227 = vrcp.f32 %v3091_v34  ;;  %v10983_v34 = vld [vmem:[#allocation47_spill] sm:$0xff] }
 0xcf3   : > { %v3097_v38 = vpop.xlane.xlu1 %3096 }
 0xcf4   : > { %7229 = vrcp.f32 %v3097_v38  ;;  %v3095_v57 = vpop.xlane.xlu0 %3094  ;;  %v10984_v38 = vpack.i.bf16 %v10982_v0, %v10983_v34 }
 0xcf5   : > { %7231 = vrcp.f32 %v3095_v57  ;;  %v7222_v22 = vpop.eup %7221 }
 0xcf6   : > { %v3126_v35 = vmul.f32 %v7222_v22, %v9338_v28 }
 0xcf7   : > { %v3101_v6 = vpop.xlane.xlu1 %3100 }
 0xcf8   : > { %7233 = vrcp.f32 %v3101_v6  ;;  %v3099_v17 = vpop.xlane.xlu0 %3098 }
 0xcf9   : > { %7235 = vrcp.f32 %v3099_v17  ;;  %v7224_v62 = vpop.eup %7223 }
 0xcfa   : > { %v7226_v15 = vpop.eup %7225  ;;  %v3127_v61 = vmul.f32 %v7224_v62, %v9343_v40  ;;  %v10985_v62 = vld [vmem:[#allocation40_spill] sm:$0xff] }
 0xcfb   : > { %v3129_v12 = vmul.f32 %v7226_v15, %v9341_v54  ;;  %v6861_v54 = vld [vmem:[%s10780_s9 + $0x38] sm:$0xff]  }
 0xcfc   : > { %v3138_v21 = vpack.c.bf16 %v3127_v61, %v3126_v35  ;;  %6529 = vmatprep.subr.bf16.mxu1 %v6861_v54  ;;  %v10986_v15 = vld [vmem:[#allocation42_spill] sm:$0xff]  ;;  %v10987_v61 = vld [vmem:[#allocation41_spill] sm:$0xff] }
 0xcfd   : > { %v7228_v46 = vpop.eup %7227  ;;  %6530 = vmatpush3.bf16.msra.mxu1 %v6861_v54  ;;  %v6758_v35 = vpack.i.bf16 %v10986_v15, %v10985_v62 }
 0xcfe   : > { %v3128_v18 = vmul.f32 %v7228_v46, %v9347_v36  ;;  %6521 = vmatprep.mubr.bf16.mxu1 %v3138_v21  ;;  %v10988_v46 = vld [vmem:[#allocation39_spill] sm:$0xff] }
 0xcff   : > { %v10989_v63 = vpack.i.bf16 %v10987_v61, %v10988_v46 }
 0xd00   : > { %v3139_v30 = vpack.c.bf16 %v3129_v12, %v3128_v18 }
 0xd01   : > { %v7230_v9 = vpop.eup %7229 }
 0xd02   : > { %v7232_v32 = vpop.eup %7231  ;;  %v3131_v50 = vmul.f32 %v7230_v9, %v9350_v13  ;;  %6522 = vmatmul.mubr.bf16.gmra.mxu1 %v3139_v30  ;;  %v6862_v13 = vld [vmem:[%s10780_s9 + $0x30] sm:$0xff]  }
 0xd03   : > { %v3130_v47 = vmul.f32 %v7232_v32, %v9352_v51  ;;  %6531 = vmatprep.subr.bf16.mxu1 %v6862_v13  ;;  %v6863_v51 = vld [vmem:[%s10780_s9 + $0x28] sm:$0xff]  }
 0xd04   : > { %6532 = vmatpush3.bf16.msra.mxu1 %v6862_v13 }
 0xd05   : > { %v7234_v44 = vpop.eup %7233  ;;  %v3140_v33 = vpack.c.bf16 %v3131_v50, %v3130_v47  ;;  %6533 = vmatprep.subr.bf16.mxu1 %v6863_v51  ;;  %v6705_v47 = vpop.permute.xlu1 %6704 }
 0xd06   : > { %v7236_v28 = vpop.eup %7235  ;;  %v3133_v40 = vmul.f32 %v7234_v44, %v9356_v49  ;;  %v6864_v49 = vld [vmem:[%s10780_s9 + $0x20] sm:$0xff]  }
 0xd07   : > { %6525 = vmatprep.mubr.bf16.mxu1 %v3140_v33  ;;  %v3132_v19 = vmul.f32 %v7236_v28, %v9358_v10  ;;  %v6865_v10 = vld [vmem:[%s10780_s9 + $0x18] sm:$0xff]   ;;  %v6700_v33 = vpop.permute.xlu0 %6699 }
 0xd08   : > { %6534 = vmatpush3.bf16.msra.mxu1 %v6863_v51  ;;  %v6702_v5 = vunpack.i.h.bf16 %v6700_v33  ;;  %v6701_v1 = vunpack.i.l.bf16 %v6700_v33 }
 0xd09   : > { %v3141_v36 = vpack.c.bf16 %v3133_v40, %v3132_v19  ;;  %6535 = vmatprep.subr.bf16.mxu1 %v6864_v49  ;;  %v6710_v44 = vpop.permute.xlu1 %6709  ;;  %v6707_v40 = vunpack.i.h.bf16 %v6705_v47  ;;  %v6706_v19 = vunpack.i.l.bf16 %v6705_v47 }
 0xd0a   : > { %v6712_v54 = vunpack.i.h.bf16 %v6710_v44  ;;  %v6711_v13 = vunpack.i.l.bf16 %v6710_v44 }
 0xd0b   : > { %6526 = vmatmul.mubr.bf16.gmra.mxu1 %v3141_v36 }
 0xd0c   : > { %6536 = vmatpush3.bf16.msra.mxu1 %v6864_v49 }
 0xd0d   : > { %6537 = vmatprep.subr.bf16.mxu1 %v6865_v10  ;;  %v6715_v28 = vpop.permute.xlu1 %6714 }
 0xd0e   : > { %v6716_v36 = vunpack.i.l.bf16 %v6715_v28 }
 0xd10   : > { %6538 = vmatpush3.bf16.msra.mxu1 %v6865_v10  ;;  %v10997_v10 = vld [vmem:[#allocation51_spill] sm:$0xff] }
 0xd11   : > { %6539 = vmatprep.subr.bf16.mxu1 %v6866_v39 }
 0xd14   : > { %6540 = vmatpush3.bf16.msra.mxu1 %v6866_v39  ;;  %v3457_v39 = vsel %vm1494_vm1, %v10997_v10, %v6706_v19 }
 0xd15   : > { %6541 = vmatprep.subr.bf16.mxu1 %v6867_v56 }
 0xd18   : > { %6542 = vmatpush3.bf16.msra.mxu1 %v6867_v56  ;;  %v10998_v56 = vld [vmem:[#allocation54_spill] sm:$0xff] }
 0xd19   : > { %6543 = vmatprep.subr.bf16.mxu1 %v6868_v43 }
 0xd1c   : > { %6544 = vmatpush3.bf16.msra.mxu1 %v6868_v43  ;;  %v3456_v43 = vsel %vm1494_vm1, %v10998_v56, %v6702_v5 }
 0xd1d   : > { %v3473_v7 = vsel %vm3471_vm2, %v3456_v43, %v6712_v54 }
 0xd83   : > { %v6515_v4 = vpop.f32.mrf.mxu1 }
 0xd85   : > { %v3200_v42 = vpop.f32.mrf.mxu1 }
 0xd87   : > { %v6516_v3 = vpop.f32.mrf.mxu1 }
 0xd88   : > { %v6723_v29 = vpack.i.bf16 %v6516_v3, %v6515_v4  ;;  %v10999_v4 = vld [vmem:[#allocation52_spill] sm:$0xff] }
 0xd89   : > { %v3203_v52 = vpop.f32.mrf.mxu1 }
 0xd8a   : > { %v6718_v53 = vpack.i.bf16 %v3203_v52, %v3200_v42  ;;  %6724 = vrot.lane.b32.xlu1 %v6723_v29, %s7601_s3  ;;  %v3455_v42 = vsel %vm1494_vm1, %v10999_v4, %v6701_v1  ;;  %v3474_v29 = vsel %vm3471_vm2, %v3457_v39, %v6716_v36 }
 0xd8b   : > { %v6519_v48 = vpop.f32.mrf.mxu1 }
 0xd8c   : > { %6719 = vrot.lane.b32.xlu0 %v6718_v53, %s7601_s3 }
 0xd8d   : > { %v3216_v37 = vpop.f32.mrf.mxu1 }
 0xd8e   : > { %6734 = vrot.lane.b32.xlu1 %v10984_v38, %s7603_s26 }
 0xd8f   : > { %v6520_v57 = vpop.f32.mrf.mxu1 }
 0xd90   : > { %6729 = vrot.lane.b32.xlu0 %v6728_v8, %s7603_s26  ;;  %v6753_v17 = vpack.i.bf16 %v6520_v57, %v6519_v48 }
 0xd91   : > { %v3219_v6 = vpop.f32.mrf.mxu1 }
 0xd92   : > { %6744 = vrot.lane.b32.xlu1 %v6743_v11, %s10881_s19  ;;  %v6748_v22 = vpack.i.bf16 %v3219_v6, %v3216_v37  ;;  %v3472_v37 = vsel %vm3471_vm2, %v3455_v42, %v6711_v13 }
 0xd94   : > { %6739 = vrot.lane.b32.xlu0 %v6738_v2, %s10881_s19 }
 0xd96   : > { %6754 = vrot.lane.b32.xlu1 %v6753_v17, %s7601_s3 }
 0xd98   : > { %6749 = vrot.lane.b32.xlu0 %v6748_v22, %s7601_s3 }
 0xd9a   : > { %6764 = vrot.lane.b32.xlu1 %v10989_v63, %s7603_s26 }
 0xd9c   : > { %6759 = vrot.lane.b32.xlu0 %v6758_v35, %s7603_s26 }
 0xd9e   : > { %6774 = vrot.lane.b32.xlu1 %v6773_v41, %s10881_s19  ;;  %v10992_v41 = vpack.i.bf16 %v10990_v25, %v10991_v26  ;;  %v11001_v25 = vld [vmem:[#allocation55_spill] sm:$0xff] }
 0xda0   : > { %6769 = vrot.lane.b32.xlu0 %v6768_v16, %s10881_s19  ;;  %v10995_v16 = vpack.i.bf16 %v10993_v24, %v10994_v55  ;;  %v11003_v24 = vld [vmem:[#allocation56_spill] sm:$0xff] }
 0xdc2   : > { %v6523_v14 = vpop.f32.mrf.mxu1 }
 0xdc4   : > { %v3232_v20 = vpop.f32.mrf.mxu1 }
 0xdc6   : > { %v6524_v11 = vpop.f32.mrf.mxu1 }
 0xdc7   : > { %v6783_v58 = vpack.i.bf16 %v6524_v11, %v6523_v14 }
 0xdc8   : > { %v3235_v2 = vpop.f32.mrf.mxu1 }
 0xdc9   : > { %v6778_v21 = vpack.i.bf16 %v3235_v2, %v3232_v20  ;;  %6784 = vrot.lane.b32.xlu1 %v6783_v58, %s7601_s3 }
 0xdcb   : > { %v6527_v18 = vpop.f32.mrf.mxu1  ;;  %6779 = vrot.lane.b32.xlu0 %v6778_v21, %s7601_s3 }
 0xdcd   : > { %v3248_v12 = vpop.f32.mrf.mxu1  ;;  %6794 = vrot.lane.b32.xlu1 %v10992_v41, %s7603_s26  ;;  %v11002_v41 = vld [vmem:[#allocation58_spill] sm:$0xff] }
 0xdcf   : > { %v6528_v9 = vpop.f32.mrf.mxu1  ;;  %6789 = vrot.lane.b32.xlu0 %v10995_v16, %s7603_s26  ;;  %s5872_s26 = sshll.u32 %s7717_s28, 10 }
 0xdd0   : > { %v6813_v32 = vpack.i.bf16 %v6528_v9, %v6527_v18  ;;  %v11000_v18 = vld [vmem:[#allocation57_spill] sm:$0xff]  ;;  %s10722_s0 = scalar_lea.hbm %s10788_s17, %s5872_s26 }
 0xdd1   : > { %6804 = vrot.lane.b32.xlu1 %v6803_v60, %s10881_s19  ;;  %v3251_v30 = vpop.f32.mrf.mxu1  ;;  %v6717_v60 = vunpack.i.h.bf16 %v6715_v28 }
 0xdd2   : > { %v6808_v50 = vpack.i.bf16 %v3251_v30, %v3248_v12 }
 0xdd3   : > { %6799 = vrot.lane.b32.xlu0 %v6798_v45, %s10881_s19  ;;  %v10996_v45 = vld [vmem:[#allocation53_spill] sm:$0xff] }
 0xdd4   : > { %v3458_v49 = vsel %vm1494_vm1, %v10996_v45, %v6707_v40 }
 0xdd5   : > { %6814 = vrot.lane.b32.xlu1 %v6813_v32, %s7601_s3  ;;  %v3475_v52 = vsel %vm3471_vm2, %v3458_v49, %v6717_v60 }
 0xdd7   : > { %6809 = vrot.lane.b32.xlu0 %v6808_v50, %s7601_s3  ;;  %s10679_s3 = scalar_lea.vmem [#allocation10], %s5674_s24  ;;  %s7522_s24 = sshll.u32 %s7604_s23, 4  ;;  %s7523_s24 = int_to_ptr.vmem [resolvable:$false] %s7522_s24 }
 0xdd8   : > { %s5559_s21 = sshll.u32 %s10679_s3, 4  ;;  %s7524_s26 = scalar_lea.vmem %s7523_s24, 2048  ;;  %s10724_s21 = int_to_ptr.vmem [resolvable:$true] %s5559_s21 }
 0xdd9   : > { %s7518_s28 = scalar_lea.vmem %s10724_s21, 1024  ;;  %p7525_p4 = scmp.lt.s32.totalorder %s10724_s21, %s7523_s24 }
 0xdda   : > { %p7519_p9 = scmp.ne.s32.totalorder %s10724_s21, %s7518_s28  ;;  %p7526_p7 = scmp.lt.s32.totalorder %s7524_s26, %s7518_s28 }
 0xddc   : > { %p7520_p12 = pnand %p7519_p9, %p7734_p5  ;;  %p7527_p8 = por %p7526_p7, %p7525_p4 }
 0xdde   : > { %p7521_p13 = pneg %p7520_p12 }
 0xde0   : > { %p7528_p11 = pnand %p7527_p8, %p7521_p13 }
 0xdfc   : > { %v6725_v51 = vpop.permute.xlu1 %6724 }
 0xdfd   : > { %v6727_v23 = vunpack.i.h.bf16 %v6725_v51  ;;  %v6726_v59 = vunpack.i.l.bf16 %v6725_v51 }
 0xdfe   : > { %v6720_v3 = vpop.permute.xlu0 %6719 }
 0xdff   : > { %v6722_v53 = vunpack.i.h.bf16 %v6720_v3  ;;  %v6721_v48 = vunpack.i.l.bf16 %v6720_v3  ;;  %v3492_v31 = vsel %vm3488_vm3, %v3475_v52, %v6727_v23  ;;  %v3491_v8 = vsel %vm3488_vm3, %v3474_v29, %v6726_v59  ;;  %v11004_v29 = vld [vmem:[#allocation61_spill] sm:$0xff] }
 0xe00   : > { %v6735_v0 = vpop.permute.xlu1 %6734  ;;  %v3506_v17 = vpack.c.bf16 %v3492_v31, %v3491_v8  ;;  %v11007_v31 = vld [vmem:[#allocation60_spill] sm:$0xff] }
 0xe01   : > { %v3489_v34 = vsel %vm3488_vm3, %v3472_v37, %v6721_v48  ;;  %v3490_v38 = vsel %vm3488_vm3, %v3473_v7, %v6722_v53  ;;  %v6737_v62 = vunpack.i.h.bf16 %v6735_v0  ;;  %v6736_v15 = vunpack.i.l.bf16 %v6735_v0  ;;  %v11005_v53 = vld [vmem:[#allocation59_spill] sm:$0xff]  ;;  %v11006_v37 = vld [vmem:[#allocation62_spill] sm:$0xff] }
 0xe02   : > { %v6730_v57 = vpop.permute.xlu0 %6729  ;;  %v3505_v6 = vpack.c.bf16 %v3490_v38, %v3489_v34 }
 0xe03   : > { %v6732_v35 = vunpack.i.h.bf16 %v6730_v57  ;;  %v6731_v61 = vunpack.i.l.bf16 %v6730_v57  ;;  %v3462_v12 = vsel %vm1494_vm1, %v11000_v18, %v6737_v62  ;;  %v3461_v26 = vsel %vm1494_vm1, %v11001_v25, %v6736_v15 }
 0xe04   : > { %v6745_v22 = vpop.permute.xlu1 %6744  ;;  %6545 = vmatprep.mubr.bf16.mxu1 %v3505_v6 }
 0xe05   : > { %6546 = vmatmul.mubr.bf16.vlgmr.msra.gmra.mxu1 %v3506_v17  ;;  %v6747_v63 = vunpack.i.h.bf16 %v6745_v22  ;;  %v6746_v14 = vunpack.i.l.bf16 %v6745_v22  ;;  %v3460_v9 = vsel %vm1494_vm1, %v11002_v41, %v6732_v35  ;;  %v3459_v55 = vsel %vm1494_vm1, %v11003_v24, %v6731_v61 }
 0xe06   : > { %v6740_v46 = vpop.permute.xlu0 %6739 }
 0xe07   : > { %v6742_v20 = vunpack.i.h.bf16 %v6740_v46  ;;  %v6741_v11 = vunpack.i.l.bf16 %v6740_v46  ;;  %v3478_v30 = vsel %vm3471_vm2, %v3461_v26, %v6746_v14  ;;  %v3479_v32 = vsel %vm3471_vm2, %v3462_v12, %v6747_v63 }
 0xe08   : > { %v6755_v58 = vpop.permute.xlu1 %6754 }
 0xe09   : > { %v6757_v2 = vunpack.i.h.bf16 %v6755_v58  ;;  %v6756_v21 = vunpack.i.l.bf16 %v6755_v58  ;;  %v3476_v44 = vsel %vm3471_vm2, %v3459_v55, %v6741_v11  ;;  %v3477_v33 = vsel %vm3471_vm2, %v3460_v9, %v6742_v20 }
 0xe0a   : > { %v6750_v16 = vpop.permute.xlu0 %6749 }
 0xe0b   : > { %v6752_v50 = vunpack.i.h.bf16 %v6750_v16  ;;  %v6751_v47 = vunpack.i.l.bf16 %v6750_v16  ;;  %v3495_v28 = vsel %vm3488_vm3, %v3478_v30, %v6756_v21  ;;  %v3496_v40 = vsel %vm3488_vm3, %v3479_v32, %v6757_v2  ;;  %v11008_v30 = vld [vmem:[#allocation65_spill] sm:$0xff] }
 0xe0c   : > { %v3508_v60 = vpack.c.bf16 %v3496_v40, %v3495_v28  ;;  %v6765_v36 = vpop.permute.xlu1 %6764  ;;  %v11011_v28 = vld [vmem:[#allocation64_spill] sm:$0xff] }
 0xe0d   : > { %v3493_v19 = vsel %vm3488_vm3, %v3476_v44, %v6751_v47  ;;  %v3494_v5 = vsel %vm3488_vm3, %v3477_v33, %v6752_v50  ;;  %v6767_v23 = vunpack.i.h.bf16 %v6765_v36  ;;  %v6766_v59 = vunpack.i.l.bf16 %v6765_v36  ;;  %v11009_v50 = vld [vmem:[#allocation63_spill] sm:$0xff]  ;;  %v11010_v44 = vld [vmem:[#allocation66_spill] sm:$0xff] }
 0xe0e   : > { %v3507_v1 = vpack.c.bf16 %v3494_v5, %v3493_v19  ;;  %v6760_v54 = vpop.permute.xlu0 %6759 }
 0xe0f   : > { %v6762_v45 = vunpack.i.h.bf16 %v6760_v54  ;;  %v6761_v49 = vunpack.i.l.bf16 %v6760_v54  ;;  %v3466_v52 = vsel %vm1494_vm1, %v11004_v29, %v6767_v23  ;;  %v3465_v48 = vsel %vm1494_vm1, %v11005_v53, %v6766_v59  ;;  %v11013_v29 = vld [vmem:[#allocation20_spill] sm:$0xff] }
 0xe10   : > { %6549 = vmatprep.mubr.bf16.mxu1 %v3507_v1  ;;  %v6775_v13 = vpop.permute.xlu1 %6774 }
 0xe11   : > { %6550 = vmatmul.mubr.bf16.gmra.mxu1 %v3508_v60  ;;  %v6777_v10 = vunpack.i.h.bf16 %v6775_v13  ;;  %v6776_v39 = vunpack.i.l.bf16 %v6775_v13  ;;  %v3464_v7 = vsel %vm1494_vm1, %v11006_v37, %v6762_v45  ;;  %v3463_v8 = vsel %vm1494_vm1, %v11007_v31, %v6761_v49  ;;  %v11015_v37 = vld [vmem:[#allocation23_spill] sm:$0xff] }
 0xe12   : > { %v6770_v51 = vpop.permute.xlu0 %6769 }
 0xe13   : > { %v6772_v56 = vunpack.i.h.bf16 %v6770_v51  ;;  %v6771_v43 = vunpack.i.l.bf16 %v6770_v51  ;;  %v3482_v34 = vsel %vm3471_vm2, %v3465_v48, %v6776_v39  ;;  %v3483_v38 = vsel %vm3471_vm2, %v3466_v52, %v6777_v10 }
 0xe15   : > { %v3480_v17 = vsel %vm3471_vm2, %v3463_v8, %v6771_v43  ;;  %v3481_v22 = vsel %vm3471_vm2, %v3464_v7, %v6772_v56  ;;  %v11012_v43 = vld [vmem:[#allocation21_spill] sm:$0xff]  ;;  %v11017_v8 = vld [vmem:[#allocation22_spill] sm:$0xff] }
 0xe3b   : > { %v6785_v4 = vpop.permute.xlu1 %6784 }
 0xe3c   : > { %v6787_v42 = vunpack.i.h.bf16 %v6785_v4  ;;  %v6786_v3 = vunpack.i.l.bf16 %v6785_v4 }
 0xe3d   : > { %v6780_v0 = vpop.permute.xlu0 %6779 }
 0xe3e   : > { %v6782_v57 = vunpack.i.h.bf16 %v6780_v0  ;;  %v6781_v6 = vunpack.i.l.bf16 %v6780_v0  ;;  %v3499_v15 = vsel %vm3488_vm3, %v3482_v34, %v6786_v3  ;;  %v3500_v35 = vsel %vm3488_vm3, %v3483_v38, %v6787_v42  ;;  %v5764_v42 = vld [vmem:[%s10781_s10] ss:$0 sm:$0xff] }
 0xe3f   : > { %v6795_v62 = vpop.permute.xlu1 %6794  ;;  %v3510_v20 = vpack.c.bf16 %v3500_v35, %v3499_v15  ;;  %v11021_v15 = vld [vmem:[#allocation25_spill] sm:$0xff] }
 0xe40   : > { %v3497_v61 = vsel %vm3488_vm3, %v3480_v17, %v6781_v6  ;;  %v3498_v46 = vsel %vm3488_vm3, %v3481_v22, %v6782_v57  ;;  %v6797_v58 = vunpack.i.h.bf16 %v6795_v62  ;;  %v6796_v2 = vunpack.i.l.bf16 %v6795_v62  ;;  %v11020_v17 = vld [vmem:[#allocation24_spill] sm:$0xff] }
 0xe41   : > { %v6790_v63 = vpop.permute.xlu0 %6789  ;;  %v3509_v14 = vpack.c.bf16 %v3498_v46, %v3497_v61 }
 0xe42   : > { %v6792_v21 = vunpack.i.h.bf16 %v6790_v63  ;;  %v6791_v18 = vunpack.i.l.bf16 %v6790_v63  ;;  %v3470_v32 = vsel %vm1494_vm1, %v11008_v30, %v6797_v58  ;;  %v3469_v47 = vsel %vm1494_vm1, %v11009_v50, %v6796_v2  ;;  %v11023_v63 = vld [vmem:[#allocation26_spill] sm:$0xff] }
 0xe43   : > { %v6805_v11 = vpop.permute.xlu1 %6804  ;;  %6553 = vmatprep.mubr.bf16.mxu1 %v3509_v14  ;;  %v11031_v30 = vld [vmem:[#allocation30_spill] sm:$0xff] }
 0xe44   : > { %6554 = vmatmul.mubr.bf16.gmra.mxu1 %v3510_v20  ;;  %v6807_v25 = vunpack.i.h.bf16 %v6805_v11  ;;  %v6806_v26 = vunpack.i.l.bf16 %v6805_v11  ;;  %v3468_v33 = vsel %vm1494_vm1, %v11010_v44, %v6792_v21  ;;  %v3467_v40 = vsel %vm1494_vm1, %v11011_v28, %v6791_v18  ;;  %v11025_v11 = vld [vmem:[#allocation27_spill] sm:$0xff] }
 0xe45   : > { %v6800_v12 = vpop.permute.xlu0 %6799 }
 0xe46   : > { %v6802_v41 = vunpack.i.h.bf16 %v6800_v12  ;;  %v6801_v9 = vunpack.i.l.bf16 %v6800_v12  ;;  %v3486_v5 = vsel %vm3471_vm2, %v3469_v47, %v6806_v26  ;;  %v3487_v1 = vsel %vm3471_vm2, %v3470_v32, %v6807_v25  ;;  %v11028_v25 = vld [vmem:[#allocation28_spill] sm:$0xff]  ;;  %v11033_v47 = vld [vmem:[#allocation31_spill] sm:$0xff] }
 0xe47   : > { %v6815_v24 = vpop.permute.xlu1 %6814 }
 0xe48   : > { %v6817_v55 = vunpack.i.h.bf16 %v6815_v24  ;;  %v6816_v16 = vunpack.i.l.bf16 %v6815_v24  ;;  %v3484_v54 = vsel %vm3471_vm2, %v3467_v40, %v6801_v9  ;;  %v3485_v13 = vsel %vm3471_vm2, %v3468_v33, %v6802_v41  ;;  %v11029_v9 = vld [vmem:[#allocation29_spill] sm:$0xff] }
 0xe49   : > { %v6810_v19 = vpop.permute.xlu0 %6809 }
 0xe4a   : > { %v6812_v60 = vunpack.i.h.bf16 %v6810_v19  ;;  %v6811_v36 = vunpack.i.l.bf16 %v6810_v19  ;;  %v3503_v51 = vsel %vm3488_vm3, %v3486_v5, %v6816_v16  ;;  %v3504_v23 = vsel %vm3488_vm3, %v3487_v1, %v6817_v55  ;;  %v11036_v5 = vld [vmem:[#allocation32_spill] sm:$0xff] }
 0xe4b   : > { %v3512_v10 = vpack.c.bf16 %v3504_v23, %v3503_v51  ;;  %v11039_v23 = vld [vmem:[#allocation34_spill] sm:$0xff] }
 0xe4c   : > { %v3501_v59 = vsel %vm3488_vm3, %v3484_v54, %v6811_v36  ;;  %v3502_v45 = vsel %vm3488_vm3, %v3485_v13, %v6812_v60  ;;  %v11037_v36 = vld [vmem:[#allocation33_spill] sm:$0xff] }
 0xe4d   : > { %v3511_v49 = vpack.c.bf16 %v3502_v45, %v3501_v59 }
 0xe4f   : > { %6557 = vmatprep.mubr.bf16.mxu1 %v3511_v49  ;;  %v11041_v49 = vld [vmem:[#allocation35_spill] sm:$0xff] }
 0xe50   : > { %6558 = vmatmul.mubr.bf16.gmra.mxu1 %v3512_v10 }
 0xe51   : > { %4302 = vmatprep.mubr.bf16.mxu1 %v10972_v27 }
 0xec5   : > { %v6547_v39 = vpop.f32.mrf.mxu1 }
 0xec6   : > { %v3676_v52 = vadd.f32 %v6547_v39, %v11013_v29  ;;  %v6874_v29 = vld [vmem:[%s10784_s13 + $0xec] ss:$16 sps:$4 sm:$0xff]  }
 0xec7   : > { %v3611_v56 = vpop.f32.mrf.mxu1  ;;  %4270 = vmatprep.subr.bf16.mxu1 %v6874_v29  ;;  %v6893_v29 = vld [vmem:[%s10784_s13 + $0x60] ss:$16 sps:$4 sm:$0xff]  }
 0xec8   : > { %v3674_v4 = vadd.f32 %v3611_v56, %v11012_v43  ;;  %v9545_v31 = vadd.f32 %v5764_v42, %v3676_v52  ;;  %v6869_v43 = vld [vmem:[%s10784_s13 + $0xe0] ss:$16 sps:$4 sm:$0xff]  }
 0xec9   : > { %v6548_v3 = vpop.f32.mrf.mxu1 }
 0xeca   : > { %v9541_v53 = vadd.f32 %v5764_v42, %v3674_v4  ;;  %11016 = vst [vmem:[#allocation37_spill] sm:$0xff] %v9545_v31  ;;  %v3677_v0 = vadd.f32 %v6548_v3, %v11017_v8  ;;  %v6871_v4 = vld [vmem:[%s10784_s13 + $0xe4] ss:$16 sps:$4 sm:$0xff]   ;;  %v6872_v3 = vld [vmem:[%s10784_s13 + $0xe8] ss:$16 sps:$4 sm:$0xff]  }
 0xecb   : > { %v3614_v48 = vpop.f32.mrf.mxu1  ;;  %4157 = vmatprep.subr.bf16.mxu0 %v6871_v4  ;;  %4271 = vmatpush1.bf16.msra.mxu1 %v6872_v3  ;;  %v6895_v4 = vld [vmem:[%s10784_s13 + $0x64] ss:$16 sps:$4 sm:$0xff]   ;;  %v6898_v3 = vld [vmem:[%s10784_s13 + $0x6c] ss:$16 sps:$4 sm:$0xff]  }
 0xecc   : > { %11014 = vst [vmem:[#allocation38_spill] sm:$0xff] %v9541_v53  ;;  %v3675_v7 = vadd.f32 %v3614_v48, %v11015_v37  ;;  %3715 = vadd.xlane.f32.xlu0 %v9541_v53  ;;  %v9552_v57 = vadd.f32 %v5764_v42, %v3677_v0  ;;  %4158 = vmatpush1.bf16.msra.mxu0 %v6869_v43  ;;  %v6890_v43 = vld [vmem:[%s10784_s13 + $0x88] ss:$16 sps:$4 sm:$0xff]  }
 0xece   : > { %v9548_v34 = vadd.f32 %v5764_v42, %v3675_v7  ;;  %11019 = vst [vmem:[#allocation43_spill] sm:$0xff] %v9552_v57 }
 0xed0   : > { %11018 = vst [vmem:[#allocation45_spill] sm:$0xff] %v9548_v34  ;;  %3719 = vadd.xlane.f32.xlu0 %v9545_v31  ;;  %3717 = vadd.xlane.f32.xlu1 %v9548_v34 }
 0xed1   : > { %v6551_v38 = vpop.f32.mrf.mxu1 }
 0xed2   : > { %v3680_v35 = vadd.f32 %v6551_v38, %v11021_v15 }
 0xed3   : > { %v3627_v6 = vpop.f32.mrf.mxu1 }
 0xed4   : > { %v3678_v22 = vadd.f32 %v3627_v6, %v11020_v17  ;;  %3721 = vadd.xlane.f32.xlu0 %v9552_v57  ;;  %v9561_v20 = vadd.f32 %v5764_v42, %v3680_v35 }
 0xed5   : > { %v6552_v62 = vpop.f32.mrf.mxu1 }
 0xed6   : > { %v9557_v61 = vadd.f32 %v5764_v42, %v3678_v22  ;;  %11024 = vst [vmem:[#allocation46_spill] sm:$0xff] %v9561_v20  ;;  %v3681_v58 = vadd.f32 %v6552_v62, %v11025_v11 }
 0xed7   : > { %v3630_v46 = vpop.f32.mrf.mxu1 }
 0xed8   : > { %11022 = vst [vmem:[#allocation44_spill] sm:$0xff] %v9557_v61  ;;  %v3679_v14 = vadd.f32 %v3630_v46, %v11023_v63  ;;  %3723 = vadd.xlane.f32.xlu0 %v9557_v61  ;;  %v9568_v21 = vadd.f32 %v5764_v42, %v3681_v58 }
 0xeda   : > { %v9564_v2 = vadd.f32 %v5764_v42, %v3679_v14  ;;  %11027 = vst [vmem:[#allocation50_spill] sm:$0xff] %v9568_v21 }
 0xedc   : > { %11026 = vst [vmem:[#allocation48_spill] sm:$0xff] %v9564_v2  ;;  %3727 = vadd.xlane.f32.xlu0 %v9561_v20  ;;  %3725 = vadd.xlane.f32.xlu1 %v9564_v2 }
 0xee0   : > { %3729 = vadd.xlane.f32.xlu1 %v9568_v21 }
 0xf04   : > { %v6555_v18 = vpop.f32.mrf.mxu1 }
 0xf05   : > { %v3684_v24 = vadd.f32 %v6555_v18, %v11029_v9  ;;  %v6877_v9 = vld [vmem:[%s10784_s13 + $0xc4] ss:$16 sps:$4 sm:$0xff]  }
 0xf06   : > { %v3643_v12 = vpop.f32.mrf.mxu1  ;;  %4159 = vmatprep.subr.bf16.mxu0 %v6877_v9 }
 0xf07   : > { %v3682_v26 = vadd.f32 %v3643_v12, %v11028_v25  ;;  %v9577_v50 = vadd.f32 %v5764_v42, %v3684_v24  ;;  %v6880_v24 = vld [vmem:[%s10784_s13 + $0xcc] ss:$16 sps:$4 sm:$0xff]  }
 0xf08   : > { %v6556_v41 = vpop.f32.mrf.mxu1  ;;  %4272 = vmatprep.subr.bf16.mxu1 %v6880_v24 }
 0xf09   : > { %v9573_v55 = vadd.f32 %v5764_v42, %v3682_v26  ;;  %11032 = vst [vmem:[#allocation47_spill] sm:$0xff] %v9577_v50  ;;  %v3685_v44 = vadd.f32 %v6556_v41, %v11033_v47  ;;  %v6878_v47 = vld [vmem:[%s10784_s13 + $0xc8] ss:$16 sps:$4 sm:$0xff]  }
 0xf0a   : > { %v3646_v16 = vpop.f32.mrf.mxu1  ;;  %4273 = vmatpush1.bf16.msra.mxu1 %v6878_v47 }
 0xf0b   : > { %11030 = vst [vmem:[#allocation49_spill] sm:$0xff] %v9573_v55  ;;  %v3683_v32 = vadd.f32 %v3646_v16, %v11031_v30  ;;  %3731 = vadd.xlane.f32.xlu0 %v9573_v55  ;;  %v9584_v40 = vadd.f32 %v5764_v42, %v3685_v44 }
 0xf0d   : > { %v9580_v33 = vadd.f32 %v5764_v42, %v3683_v32  ;;  %11035 = vst [vmem:[#allocation42_spill] sm:$0xff] %v9584_v40  ;;  %v6875_v32 = vld [vmem:[%s10784_s13 + $0xc0] ss:$16 sps:$4 sm:$0xff]  }
 0xf0e   : > { %4160 = vmatpush1.bf16.msra.mxu0 %v6875_v32 }
 0xf0f   : > { %11034 = vst [vmem:[#allocation40_spill] sm:$0xff] %v9580_v33  ;;  %3735 = vadd.xlane.f32.xlu0 %v9577_v50  ;;  %3733 = vadd.xlane.f32.xlu1 %v9580_v33 }
 0xf10   : > { %v6559_v28 = vpop.f32.mrf.mxu1 }
 0xf11   : > { %v3688_v54 = vadd.f32 %v6559_v28, %v11037_v36 }
 0xf12   : > { %v3659_v19 = vpop.f32.mrf.mxu1 }
 0xf13   : > { %v3686_v1 = vadd.f32 %v3659_v19, %v11036_v5  ;;  %3737 = vadd.xlane.f32.xlu1 %v9584_v40  ;;  %v9593_v45 = vadd.f32 %v5764_v42, %v3688_v54  ;;  %v6881_v54 = vld [vmem:[%s10784_s13 + $0xa0] ss:$16 sps:$4 sm:$0xff]  }
 0xf14   : > { %v6560_v60 = vpop.f32.mrf.mxu1 }
 0xf15   : > { %v9589_v13 = vadd.f32 %v5764_v42, %v3686_v1  ;;  %11040 = vst [vmem:[#allocation39_spill] sm:$0xff] %v9593_v45  ;;  %v3689_v10 = vadd.f32 %v6560_v60, %v11041_v49  ;;  %v6883_v1 = vld [vmem:[%s10784_s13 + $0xa4] ss:$16 sps:$4 sm:$0xff]   ;;  %v6886_v60 = vld [vmem:[%s10784_s13 + $0xac] ss:$16 sps:$4 sm:$0xff]  }
 0xf16   : > { %v3662_v51 = vpop.f32.mrf.mxu1  ;;  %4161 = vmatprep.subr.bf16.mxu0 %v6883_v1  ;;  %4274 = vmatprep.subr.bf16.mxu1 %v6886_v60  ;;  %v6892_v49 = vld [vmem:[%s10784_s13 + $0x8c] ss:$16 sps:$4 sm:$0xff]  }
 0xf17   : > { %11038 = vst [vmem:[#allocation41_spill] sm:$0xff] %v9589_v13  ;;  %v3687_v59 = vadd.f32 %v3662_v51, %v11039_v23  ;;  %3739 = vadd.xlane.f32.xlu0 %v9589_v13  ;;  %v9600_v56 = vadd.f32 %v5764_v42, %v3689_v10  ;;  %v6884_v51 = vld [vmem:[%s10784_s13 + $0xa8] ss:$16 sps:$4 sm:$0xff]   ;;  %4162 = vmatpush1.bf16.msra.mxu0 %v6881_v54  ;;  %v6887_v10 = vld [vmem:[%s10784_s13 + $0x80] ss:$16 sps:$4 sm:$0xff]  }
 0xf18   : > { %4275 = vmatpush1.bf16.msra.mxu1 %v6884_v51 }
 0xf19   : > { %v9596_v39 = vadd.f32 %v5764_v42, %v3687_v59  ;;  %11043 = vst [vmem:[#allocation67_spill] sm:$0xff] %v9600_v56  ;;  %v6889_v59 = vld [vmem:[%s10784_s13 + $0x84] ss:$16 sps:$4 sm:$0xff]   ;;  %4276 = vmatprep.subr.bf16.mxu1 %v6892_v49 }
 0xf1a   : > { %4163 = vmatprep.subr.bf16.mxu0 %v6889_v59 }
 0xf1b   : > { %11042 = vst [vmem:[#allocation69_spill] sm:$0xff] %v9596_v39  ;;  %3743 = vadd.xlane.f32.xlu0 %v9593_v45  ;;  %3741 = vadd.xlane.f32.xlu1 %v9596_v39 }
 0xf1c   : > { %4164 = vmatpush1.bf16.msra.mxu0 %v6887_v10  ;;  %4277 = vmatpush1.bf16.msra.mxu1 %v6890_v43 }
 0xf1d   : > { %4165 = vmatprep.subr.bf16.mxu0 %v6895_v4  ;;  %4278 = vmatprep.subr.bf16.mxu1 %v6898_v3 }
 0xf1f   : > { %3745 = vadd.xlane.f32.xlu1 %v9600_v56 }
 0xf20   : > { %4166 = vmatpush1.bf16.msra.mxu0 %v6893_v29 }
 0xf55   : > { %v3716_v42 = vpop.xlane.xlu0 %3715 }
 0xf56   : > { %v3747_v52 = vmul.f32 0.0078125, %v3716_v42  ;;  %v6896_v42 = vld [vmem:[%s10784_s13 + $0x68] ss:$16 sps:$4 sm:$0xff]  }
 0xf57   : > { %4279 = vmatpush1.bf16.msra.mxu1 %v6896_v42 }
 0xf58   : > { %v9616_v48 = vsub.f32 %v9541_v53, %v3747_v52  ;;  %v6901_v52 = vld [vmem:[%s10784_s13 + $0x44] ss:$16 sps:$4 sm:$0xff]  }
 0xf59   : > { %v3720_v37 = vpop.xlane.xlu0 %3719  ;;  %v3718_v7 = vpop.xlane.xlu1 %3717  ;;  %4167 = vmatprep.subr.bf16.mxu0 %v6901_v52 }
 0xf5a   : > { %v3749_v8 = vmul.f32 0.0078125, %v3720_v37  ;;  %v3748_v0 = vmul.f32 0.0078125, %v3718_v7  ;;  %v3779_v38 = vmul.f32 %v9616_v48, %v9616_v48  ;;  %v6904_v37 = vld [vmem:[%s10784_s13 + $0x4c] ss:$16 sps:$4 sm:$0xff]   ;;  %v6899_v7 = vld [vmem:[%s10784_s13 + $0x40] ss:$16 sps:$4 sm:$0xff]  }
 0xf5b   : > { %4280 = vmatprep.subr.bf16.mxu1 %v6904_v37  ;;  %4168 = vmatpush1.bf16.msra.mxu0 %v6899_v7 }
 0xf5c   : > { %v9621_v6 = vsub.f32 %v9545_v31, %v3749_v8  ;;  %v9624_v17 = vsub.f32 %v9548_v34, %v3748_v0  ;;  %3795 = vadd.xlane.f32.xlu0 %v3779_v38  ;;  %v6902_v8 = vld [vmem:[%s10784_s13 + $0x48] ss:$16 sps:$4 sm:$0xff]   ;;  %v6907_v0 = vld [vmem:[%s10784_s13 + $0x24] ss:$16 sps:$4 sm:$0xff]   ;;  %v6910_v38 = vld [vmem:[%s10784_s13 + $0x2c] ss:$16 sps:$4 sm:$0xff]  }
 0xf5d   : > { %v3722_v22 = vpop.xlane.xlu0 %3721  ;;  %4281 = vmatpush1.bf16.msra.mxu1 %v6902_v8  ;;  %4169 = vmatprep.subr.bf16.mxu0 %v6907_v0 }
 0xf5e   : > { %v3750_v62 = vmul.f32 0.0078125, %v3722_v22  ;;  %v3781_v15 = vmul.f32 %v9621_v6, %v9621_v6  ;;  %v3780_v35 = vmul.f32 %v9624_v17, %v9624_v17  ;;  %v6905_v22 = vld [vmem:[%s10784_s13 + $0x20] ss:$16 sps:$4 sm:$0xff]   ;;  %4282 = vmatprep.subr.bf16.mxu1 %v6910_v38 }
 0xf5f   : > { %4170 = vmatpush1.bf16.msra.mxu0 %v6905_v22 }
 0xf60   : > { %v9631_v46 = vsub.f32 %v9552_v57, %v3750_v62  ;;  %3799 = vadd.xlane.f32.xlu0 %v3781_v15  ;;  %3797 = vadd.xlane.f32.xlu1 %v3780_v35  ;;  %v6908_v62 = vld [vmem:[%s10784_s13 + $0x28] ss:$16 sps:$4 sm:$0xff]   ;;  %v6911_v15 = vld [vmem:[%s10784_s13] ss:$16 sps:$4 sm:$0xff]   ;;  %v6913_v35 = vld [vmem:[%s10784_s13 + $0x4] ss:$16 sps:$4 sm:$0xff]  }
 0xf61   : > { %v3724_v63 = vpop.xlane.xlu0 %3723  ;;  %4283 = vmatpush1.bf16.msra.mxu1 %v6908_v62  ;;  %4171 = vmatprep.subr.bf16.mxu0 %v6913_v35 }
 0xf62   : > { %v3751_v14 = vmul.f32 0.0078125, %v3724_v63  ;;  %v3782_v11 = vmul.f32 %v9631_v46, %v9631_v46  ;;  %v6914_v63 = vld [vmem:[%s10784_s13 + $0x8] ss:$16 sps:$4 sm:$0xff]  }
 0xf63   : > { %4172 = vmatpush1.bf16.msra.mxu0 %v6911_v15 }
 0xf64   : > { %v9636_v58 = vsub.f32 %v9557_v61, %v3751_v14  ;;  %3801 = vadd.xlane.f32.xlu1 %v3782_v11  ;;  %v6916_v14 = vld [vmem:[%s10784_s13 + $0xc] ss:$16 sps:$4 sm:$0xff]  }
 0xf65   : > { %v3728_v18 = vpop.xlane.xlu0 %3727  ;;  %v3726_v12 = vpop.xlane.xlu1 %3725  ;;  %4284 = vmatprep.subr.bf16.mxu1 %v6916_v14 }
 0xf66   : > { %v3753_v25 = vmul.f32 0.0078125, %v3728_v18  ;;  %v3752_v26 = vmul.f32 0.0078125, %v3726_v12  ;;  %v3783_v41 = vmul.f32 %v9636_v58, %v9636_v58  ;;  %4285 = vmatpush1.bf16.msra.mxu1 %v6914_v63 }
 0xf68   : > { %v9647_v16 = vsub.f32 %v9561_v20, %v3753_v25  ;;  %v9650_v30 = vsub.f32 %v9564_v2, %v3752_v26  ;;  %3803 = vadd.xlane.f32.xlu0 %v3783_v41 }
 0xf69   : > { %v3730_v44 = vpop.xlane.xlu1 %3729 }
 0xf6a   : > { %v3754_v28 = vmul.f32 0.0078125, %v3730_v44  ;;  %v3785_v19 = vmul.f32 %v9647_v16, %v9647_v16  ;;  %v3784_v5 = vmul.f32 %v9650_v30, %v9650_v30 }
 0xf6c   : > { %v9669_v36 = vsub.f32 %v9568_v21, %v3754_v28  ;;  %3807 = vadd.xlane.f32.xlu0 %v3785_v19  ;;  %3805 = vadd.xlane.f32.xlu1 %v3784_v5 }
 0xf6e   : > { %v3786_v23 = vmul.f32 %v9669_v36, %v9669_v36 }
 0xf70   : > { %3809 = vadd.xlane.f32.xlu1 %v3786_v23 }
 0xf94   : > { %v3732_v11 = vpop.xlane.xlu0 %3731 }
 0xf95   : > { %v3755_v18 = vmul.f32 0.0078125, %v3732_v11 }
 0xf97   : > { %v9740_v12 = vsub.f32 %v9573_v55, %v3755_v18 }
 0xf98   : > { %v3736_v25 = vpop.xlane.xlu0 %3735  ;;  %v3734_v26 = vpop.xlane.xlu1 %3733 }
 0xf99   : > { %v3757_v41 = vmul.f32 0.0078125, %v3736_v25  ;;  %v3756_v9 = vmul.f32 0.0078125, %v3734_v26  ;;  %v3787_v24 = vmul.f32 %v9740_v12, %v9740_v12 }
 0xf9b   : > { %v9745_v32 = vsub.f32 %v9577_v50, %v3757_v41  ;;  %v9748_v47 = vsub.f32 %v9580_v33, %v3756_v9  ;;  %3811 = vadd.xlane.f32.xlu0 %v3787_v24 }
 0xf9c   : > { %v3738_v44 = vpop.xlane.xlu1 %3737 }
 0xf9d   : > { %v3758_v28 = vmul.f32 0.0078125, %v3738_v44  ;;  %v3789_v19 = vmul.f32 %v9745_v32, %v9745_v32  ;;  %v3788_v5 = vmul.f32 %v9748_v47, %v9748_v47 }
 0xf9f   : > { %v9755_v1 = vsub.f32 %v9584_v40, %v3758_v28  ;;  %3815 = vadd.xlane.f32.xlu0 %v3789_v19  ;;  %3813 = vadd.xlane.f32.xlu1 %v3788_v5 }
 0xfa0   : > { %v3740_v60 = vpop.xlane.xlu0 %3739 }
 0xfa1   : > { %v3759_v54 = vmul.f32 0.0078125, %v3740_v60  ;;  %v3790_v51 = vmul.f32 %v9755_v1, %v9755_v1 }
 0xfa3   : > { %v9760_v23 = vsub.f32 %v9589_v13, %v3759_v54  ;;  %3817 = vadd.xlane.f32.xlu1 %v3790_v51 }
 0xfa4   : > { %v3744_v59 = vpop.xlane.xlu0 %3743  ;;  %v3742_v49 = vpop.xlane.xlu1 %3741 }
 0xfa5   : > { %v3761_v10 = vmul.f32 0.0078125, %v3744_v59  ;;  %v3760_v43 = vmul.f32 0.0078125, %v3742_v49  ;;  %v3791_v4 = vmul.f32 %v9760_v23, %v9760_v23 }
 0xfa7   : > { %v9765_v3 = vsub.f32 %v9593_v45, %v3761_v10  ;;  %v9768_v29 = vsub.f32 %v9596_v39, %v3760_v43  ;;  %3819 = vadd.xlane.f32.xlu0 %v3791_v4  ;;  %v9780_v43 = vld [vmem:[#allocation8] ss:$0 sm:$0xff] }
 0xfa8   : > { %v3746_v42 = vpop.xlane.xlu1 %3745 }
 0xfa9   : > { %v3762_v52 = vmul.f32 0.0078125, %v3746_v42  ;;  %v3793_v37 = vmul.f32 %v9765_v3, %v9765_v3  ;;  %v3792_v7 = vmul.f32 %v9768_v29, %v9768_v29 }
 0xfab   : > { %v9775_v8 = vsub.f32 %v9600_v56, %v3762_v52  ;;  %3823 = vadd.xlane.f32.xlu0 %v3793_v37  ;;  %3821 = vadd.xlane.f32.xlu1 %v3792_v7 }
 0xfad   : > { %v3794_v0 = vmul.f32 %v9775_v8, %v9775_v8 }
 0xfaf   : > { %3825 = vadd.xlane.f32.xlu1 %v3794_v0 }
 0xfe5   : > { %v3796_v38 = vpop.xlane.xlu0 %3795 }
 0xfe6   : > { %v3827_v22 = vmul.f32 0.0078125, %v3796_v38  ;;  %v9787_v38 = vld [vmem:[%s10783_s12] ss:$0 sm:$0xff] }
 0xfe8   : > { %v3843_v62 = vadd.f32 1e-05, %v3827_v22 }
 0xfe9   : > { %v3800_v15 = vpop.xlane.xlu0 %3799  ;;  %v3798_v35 = vpop.xlane.xlu1 %3797 }
 0xfea   : > { %7237 = vrsqrt.f32 %v3843_v62  ;;  %v3829_v63 = vmul.f32 0.0078125, %v3800_v15  ;;  %v3828_v14 = vmul.f32 0.0078125, %v3798_v35 }
 0xfec   : > { %v3844_v11 = vadd.f32 1e-05, %v3828_v14  ;;  %v3845_v18 = vadd.f32 1e-05, %v3829_v63 }
 0xfed   : > { %v3802_v25 = vpop.xlane.xlu1 %3801 }
 0xfee   : > { %v3830_v26 = vmul.f32 0.0078125, %v3802_v25  ;;  %7239 = vrsqrt.f32 %v3844_v11 }
 0xfef   : > { %7241 = vrsqrt.f32 %v3845_v18 }
 0xff0   : > { %v3846_v41 = vadd.f32 1e-05, %v3830_v26 }
 0xff1   : > { %v3804_v9 = vpop.xlane.xlu0 %3803 }
 0xff2   : > { %7243 = vrsqrt.f32 %v3846_v41  ;;  %v3831_v24 = vmul.f32 0.0078125, %v3804_v9 }
 0xff4   : > { %v3847_v44 = vadd.f32 1e-05, %v3831_v24 }
 0xff5   : > { %v3806_v28 = vpop.xlane.xlu1 %3805  ;;  %v3808_v19 = vpop.xlane.xlu0 %3807 }
 0xff6   : > { %v3832_v5 = vmul.f32 0.0078125, %v3806_v28  ;;  %7245 = vrsqrt.f32 %v3847_v44  ;;  %v3833_v59 = vmul.f32 0.0078125, %v3808_v19 }
 0xff7   : > { %v7238_v60 = vpop.eup %7237 }
 0xff8   : > { %v3848_v54 = vadd.f32 1e-05, %v3832_v5  ;;  %v3875_v51 = vmul.f32 %v7238_v60, %v9616_v48  ;;  %v3849_v37 = vadd.f32 1e-05, %v3833_v59 }
 0xff9   : > { %v3810_v49 = vpop.xlane.xlu1 %3809 }
 0xffa   : > { %v3834_v10 = vmul.f32 0.0078125, %v3810_v49  ;;  %7247 = vrsqrt.f32 %v3848_v54  ;;  %v3897_v7 = vmul.f32 %v9780_v43, %v3875_v51 }
 0xffb   : > { %v7240_v4 = vpop.eup %7239 }
 0xffc   : > { %v3850_v42 = vadd.f32 1e-05, %v3834_v10  ;;  %v3876_v52 = vmul.f32 %v7240_v4, %v9624_v17  ;;  %v7242_v0 = vpop.eup %7241  ;;  %v3919_v15 = vadd.f32 %v9787_v38, %v3897_v7 }
 0xffd   : > { %v3877_v35 = vmul.f32 %v7242_v0, %v9621_v6 }
 0xffe   : > { %7249 = vrsqrt.f32 %v3850_v42  ;;  %v3898_v22 = vmul.f32 %v9780_v43, %v3876_v52 }
 0xfff   : > { %v7244_v48 = vpop.eup %7243  ;;  %7251 = vrsqrt.f32 %v3849_v37  ;;  %v3899_v11 = vmul.f32 %v9780_v43, %v3877_v35 }
0x1000   : > { %v3878_v62 = vmul.f32 %v7244_v48, %v9631_v46  ;;  %v3920_v17 = vadd.f32 %v9787_v38, %v3898_v22 }
0x1001   : > { %v3921_v26 = vadd.f32 %v9787_v38, %v3899_v11 }
0x1002   : > { %v3935_v63 = vpack.c.bf16 %v3920_v17, %v3919_v15  ;;  %v3900_v14 = vmul.f32 %v9780_v43, %v3878_v62 }
0x1003   : > { %v7246_v18 = vpop.eup %7245 }
0x1004   : > { %4190 = vmatmul.mubr.bf16.vlgmr.msra.gmra.mxu0 %v3935_v63  ;;  %4303 = vmatmul.mubr.bf16.vlgmr.msra.gmra.mxu1 %v3935_v63  ;;  %v3922_v46 = vadd.f32 %v9787_v38, %v3900_v14  ;;  %v3879_v41 = vmul.f32 %v7246_v18, %v9636_v58 }
0x1005   : > { %4199 = vmatprep.mubr.bf16.mxu0 %v10972_v27  ;;  %4312 = vmatprep.mubr.bf16.mxu1 %v10972_v27 }
0x1006   : > { %v3936_v9 = vpack.c.bf16 %v3922_v46, %v3921_v26  ;;  %v3901_v28 = vmul.f32 %v9780_v43, %v3879_v41 }
0x1007   : > { %v7248_v25 = vpop.eup %7247 }
0x1008   : > { %v3880_v6 = vmul.f32 %v7248_v25, %v9650_v30  ;;  %v3923_v58 = vadd.f32 %v9787_v38, %v3901_v28 }
0x100a   : > { %v3902_v24 = vmul.f32 %v9780_v43, %v3880_v6 }
0x100b   : > { %v7250_v44 = vpop.eup %7249 }
0x100c   : > { %4200 = vmatmul.mubr.bf16.gmra.mxu0 %v3936_v9  ;;  %4313 = vmatmul.mubr.bf16.gmra.mxu1 %v3936_v9  ;;  %v7252_v19 = vpop.eup %7251  ;;  %v3924_v5 = vadd.f32 %v9787_v38, %v3902_v24  ;;  %v3882_v60 = vmul.f32 %v7250_v44, %v9669_v36 }
0x100d   : > { %4209 = vmatprep.mubr.bf16.mxu0 %v10972_v27  ;;  %4322 = vmatprep.mubr.bf16.mxu1 %v10972_v27  ;;  %v3881_v30 = vmul.f32 %v7252_v19, %v9647_v16 }
0x100e   : > { %v3937_v54 = vpack.c.bf16 %v3924_v5, %v3923_v58  ;;  %v3904_v51 = vmul.f32 %v9780_v43, %v3882_v60 }
0x100f   : > { %v3903_v59 = vmul.f32 %v9780_v43, %v3881_v30 }
0x1010   : > { %v3926_v49 = vadd.f32 %v9787_v38, %v3904_v51 }
0x1011   : > { %v3925_v10 = vadd.f32 %v9787_v38, %v3903_v59 }
0x1013   : > { %v3938_v36 = vpack.c.bf16 %v3926_v49, %v3925_v10 }
0x1014   : > { %4210 = vmatmul.mubr.bf16.gmra.mxu0 %v3937_v54  ;;  %4323 = vmatmul.mubr.bf16.gmra.mxu1 %v3937_v54 }
0x1015   : > { %4219 = vmatprep.mubr.bf16.mxu0 %v10972_v27  ;;  %4332 = vmatprep.mubr.bf16.mxu1 %v10972_v27 }
0x101c   : > { %4220 = vmatmul.mubr.bf16.gmra.mxu0 %v3938_v36  ;;  %4333 = vmatmul.mubr.bf16.gmra.mxu1 %v3938_v36 }
0x101d   : > { %4229 = vmatprep.mubr.bf16.mxu0 %v10972_v27  ;;  %4342 = vmatprep.mubr.bf16.mxu1 %v10972_v27 }
0x1024   : > { %v3812_v16 = vpop.xlane.xlu0 %3811 }
0x1025   : > { %v3835_v4 = vmul.f32 0.0078125, %v3812_v16 }
0x1027   : > { %v3851_v42 = vadd.f32 1e-05, %v3835_v4 }
0x1028   : > { %v3816_v52 = vpop.xlane.xlu0 %3815  ;;  %v3814_v37 = vpop.xlane.xlu1 %3813 }
0x1029   : > { %7253 = vrsqrt.f32 %v3851_v42  ;;  %v3837_v7 = vmul.f32 0.0078125, %v3816_v52  ;;  %v3836_v0 = vmul.f32 0.0078125, %v3814_v37 }
0x102b   : > { %v3852_v48 = vadd.f32 1e-05, %v3836_v0  ;;  %v3853_v22 = vadd.f32 1e-05, %v3837_v7 }
0x102c   : > { %v3818_v62 = vpop.xlane.xlu1 %3817 }
0x102d   : > { %v3838_v15 = vmul.f32 0.0078125, %v3818_v62  ;;  %7255 = vrsqrt.f32 %v3852_v48 }
0x102e   : > { %7257 = vrsqrt.f32 %v3853_v22 }
0x102f   : > { %v3854_v17 = vadd.f32 1e-05, %v3838_v15 }
0x1030   : > { %v3820_v35 = vpop.xlane.xlu0 %3819 }
0x1031   : > { %7259 = vrsqrt.f32 %v3854_v17  ;;  %v3839_v63 = vmul.f32 0.0078125, %v3820_v35 }
0x1033   : > { %v3855_v14 = vadd.f32 1e-05, %v3839_v63  ;;  %v6917_v63 = vld [vmem:[%s10786_s15 + $0x78] sm:$0xff]  }
0x1034   : > { %v3822_v11 = vpop.xlane.xlu1 %3821  ;;  %v3824_v18 = vpop.xlane.xlu0 %3823  ;;  %6091 = vmatprep.subr.bf16.mxu0 %v6917_v63 }
0x1035   : > { %v3840_v46 = vmul.f32 0.0078125, %v3822_v11  ;;  %7261 = vrsqrt.f32 %v3855_v14  ;;  %v3841_v41 = vmul.f32 0.0078125, %v3824_v18 }
0x1036   : > { %v7254_v25 = vpop.eup %7253 }
0x1037   : > { %v3856_v26 = vadd.f32 1e-05, %v3840_v46  ;;  %v3883_v9 = vmul.f32 %v7254_v25, %v9740_v12  ;;  %v3857_v19 = vadd.f32 1e-05, %v3841_v41  ;;  %v6919_v46 = vld [vmem:[%s10786_s15 + $0x70] sm:$0xff]   ;;  %v6923_v25 = vld [vmem:[%s10786_s15 + $0x28] sm:$0xff]  }
0x1038   : > { %v3826_v6 = vpop.xlane.xlu1 %3825  ;;  %v6925_v41 = vld [vmem:[%s10786_s15 + $0x60] sm:$0xff]  }
0x1039   : > { %v3842_v24 = vmul.f32 0.0078125, %v3826_v6  ;;  %7263 = vrsqrt.f32 %v3856_v26  ;;  %v3905_v60 = vmul.f32 %v9780_v43, %v3883_v9  ;;  %v9872_v26 = vld [vmem:[%s10786_s15 + $0xb8] sm:$0xff]   ;;  %v9881_v6 = vld [vmem:[%s10786_s15 + $0xf0] sm:$0xff]   ;;  %v6927_v9 = vld [vmem:[%s10786_s15 + $0x20] sm:$0xff]  }
0x103a   : > { %v7256_v44 = vpop.eup %7255 }
0x103b   : > { %v3858_v28 = vadd.f32 1e-05, %v3842_v24  ;;  %v3884_v5 = vmul.f32 %v7256_v44, %v9748_v47  ;;  %v7258_v58 = vpop.eup %7257  ;;  %v3927_v59 = vadd.f32 %v9787_v38, %v3905_v60  ;;  %v9889_v24 = vld [vmem:[%s10786_s15 + $0xb0] sm:$0xff]   ;;  %v6929_v44 = vld [vmem:[%s10786_s15 + $0x58] sm:$0xff]  }
0x103c   : > { %v3885_v49 = vmul.f32 %v7258_v58, %v9745_v32  ;;  %v6933_v60 = vld [vmem:[%s10786_s15 + $0x50] sm:$0xff]   ;;  %v9917_v58 = vld [vmem:[%s10786_s15 + $0xe0] sm:$0xff]  }
0x103d   : > { %7265 = vrsqrt.f32 %v3858_v28  ;;  %v3906_v54 = vmul.f32 %v9780_v43, %v3884_v5  ;;  %v9899_v28 = vld [vmem:[%s10786_s15 + $0xe8] sm:$0xff]  }
0x103e   : > { %v7260_v30 = vpop.eup %7259  ;;  %7267 = vrsqrt.f32 %v3857_v19  ;;  %v3907_v47 = vmul.f32 %v9780_v43, %v3885_v49  ;;  %v6931_v19 = vld [vmem:[%s10786_s15 + $0x18] sm:$0xff]   ;;  %v9907_v5 = vld [vmem:[%s10786_s15 + $0xa8] sm:$0xff]  }
0x103f   : > { %v3886_v51 = vmul.f32 %v7260_v30, %v9755_v1  ;;  %v3928_v12 = vadd.f32 %v9787_v38, %v3906_v54  ;;  %v6935_v30 = vld [vmem:[%s10786_s15 + $0x10] sm:$0xff]   ;;  %v9925_v54 = vld [vmem:[%s10786_s15 + $0xa0] sm:$0xff]   ;;  %v9943_v49 = vld [vmem:[%s10786_s15 + $0x98] sm:$0xff]  }
0x1040   : > { %v3929_v42 = vadd.f32 %v9787_v38, %v3907_v47  ;;  %11044 = vst [vmem:[#allocation70_spill] sm:$0xff] %v9925_v54  ;;  %11046 = vst [vmem:[#allocation53_spill] sm:$0xff] %v9943_v49  ;;  %v6943_v47 = vld [vmem:[%s10786_s15] sm:$0xff]  }
0x1041   : > { %v3939_v10 = vpack.c.bf16 %v3928_v12, %v3927_v59  ;;  %v3908_v36 = vmul.f32 %v9780_v43, %v3886_v51  ;;  %v6937_v51 = vld [vmem:[%s10786_s15 + $0x48] sm:$0xff]   ;;  %v9935_v59 = vld [vmem:[%s10786_s15 + $0xd8] sm:$0xff]  }
0x1042   : > { %v7262_v16 = vpop.eup %7261  ;;  %11045 = vst [vmem:[#allocation68_spill] sm:$0xff] %v9935_v59  ;;  %v6939_v12 = vld [vmem:[%s10786_s15 + $0x8] sm:$0xff]  }
0x1043   : > { %4230 = vmatmul.mubr.bf16.gmra.mxu0 %v3939_v10  ;;  %4343 = vmatmul.mubr.bf16.gmra.mxu1 %v3939_v10  ;;  %v3930_v1 = vadd.f32 %v9787_v38, %v3908_v36  ;;  %v3887_v52 = vmul.f32 %v7262_v16, %v9760_v23  ;;  %v6941_v10 = vld [vmem:[%s10786_s15 + $0x40] sm:$0xff]   ;;  %v9953_v36 = vld [vmem:[%s10786_s15 + $0xd0] sm:$0xff]  }
0x1044   : > { %4239 = vmatprep.mubr.bf16.mxu0 %v10972_v27  ;;  %4352 = vmatprep.mubr.bf16.mxu1 %v10972_v27  ;;  %11047 = vst [vmem:[#allocation51_spill] sm:$0xff] %v9953_v36  ;;  %v9961_v16 = vld [vmem:[%s10786_s15 + $0x90] sm:$0xff]  }
0x1045   : > { %v3940_v37 = vpack.c.bf16 %v3930_v1, %v3929_v42  ;;  %v3909_v48 = vmul.f32 %v9780_v43, %v3887_v52  ;;  %11048 = vst [vmem:[#allocation54_spill] sm:$0xff] %v9961_v16  ;;  %v9968_v1 = vld [vmem:[%s10786_s15 + $0xc8] sm:$0xff]   ;;  %v9980_v42 = vld [vmem:[%s10786_s15 + $0xc0] sm:$0xff]  }
0x1046   : > { %v7264_v4 = vpop.eup %7263  ;;  %11049 = vst [vmem:[#allocation52_spill] sm:$0xff] %v9968_v1  ;;  %11051 = vst [vmem:[#allocation55_spill] sm:$0xff] %v9980_v42  ;;  %v6948_v52 = vld [vmem:[%s10786_s15 + $0x80] sm:$0xff]  }
0x1047   : > { %v3888_v32 = vmul.f32 %v7264_v4, %v9768_v29  ;;  %v3931_v23 = vadd.f32 %v9787_v38, %v3909_v48  ;;  %v9973_v4 = vld [vmem:[%s10786_s15 + $0x88] sm:$0xff]  }
0x1048   : > { %11050 = vst [vmem:[#allocation57_spill] sm:$0xff] %v9973_v4 }
0x1049   : > { %v3910_v7 = vmul.f32 %v9780_v43, %v3888_v32  ;;  %v3975_v32 = vld [vmem:[%s10785_s14] sm:$0xf] }
0x104a   : > { %v7266_v0 = vpop.eup %7265 }
0x104b   : > { %4240 = vmatmul.mubr.bf16.gmra.mxu0 %v3940_v37  ;;  %4353 = vmatmul.mubr.bf16.gmra.mxu1 %v3940_v37  ;;  %v7268_v22 = vpop.eup %7267  ;;  %v3932_v62 = vadd.f32 %v9787_v38, %v3910_v7  ;;  %v3890_v15 = vmul.f32 %v7266_v0, %v9775_v8  ;;  %v11052_v37 = vld [vmem:[#allocation36_spill] sm:$0xff] }
0x104c   : > { %4249 = vmatprep.mubr.bf16.mxu0 %v10972_v27  ;;  %4362 = vmatprep.mubr.bf16.mxu1 %v10972_v27  ;;  %v3889_v29 = vmul.f32 %v7268_v22, %v9765_v3  ;;  %v6918_v3 = vld [vmem:[%s10786_s15 + $0x38] sm:$0xff]   ;;  %v11053_v7 = vsub.s32 0, %v11052_v37  ;;  %v11054_v48 = vsub.s32 2, %v11052_v37 }
0x104d   : > { %v3941_v17 = vpack.c.bf16 %v3932_v62, %v3931_v23  ;;  %v3912_v35 = vmul.f32 %v9780_v43, %v3890_v15  ;;  %6092 = vmatpush3.bf16.msra.mxu0 %v6918_v3  ;;  %v3991_v62 = vsub.s32 3, %v11052_v37  ;;  %v11055_v15 = vsub.s32 1, %v11052_v37 }
0x104e   : > { %v3911_v14 = vmul.f32 %v9780_v43, %v3889_v29  ;;  %v6920_v43 = vld [vmem:[%s10786_s15 + $0x30] sm:$0xff]   ;;  %6093 = vmatprep.subr.bf16.mxu0 %v6919_v46  ;;  %v9991_v0 = vrot.slane %v3975_v32, %v11053_v7  ;;  %v9995_v22 = vrot.slane %v3975_v32, %v11054_v48 }
0x104f   : > { %v3934_v8 = vadd.f32 %v9787_v38, %v3912_v35  ;;  %v10000_v23 = vrot.slane %v3975_v32, %v11055_v15 }
0x1050   : > { %v3933_v11 = vadd.f32 %v9787_v38, %v3911_v14  ;;  %v6922_v38 = vld [vmem:[%s10786_s15 + $0xf8] sm:$0xff]   ;;  %v10008_v14 = vrot.slane %v3975_v32, %v3991_v62 }
0x1051   : > { %6094 = vmatpush3.bf16.msra.mxu0 %v6920_v43  ;;  %6561 = vmatprep.subr.bf16.mxu1 %v6922_v38 }
0x1052   : > { %v3942_v18 = vpack.c.bf16 %v3934_v8, %v3933_v11  ;;  %6569 = vmatpush3.bf16.msra.mxu1 %v9872_v26 }
0x1053   : > { %4250 = vmatmul.mubr.bf16.gmra.mxu0 %v3941_v17  ;;  %4363 = vmatmul.mubr.bf16.gmra.mxu1 %v3941_v17 }
0x1054   : > { %4259 = vmatprep.mubr.bf16.mxu0 %v10972_v27  ;;  %4372 = vmatprep.mubr.bf16.mxu1 %v10972_v27  ;;  %v6921_v27 = vld [vmem:[%s10786_s15 + $0x68] sm:$0xff]  }
0x1055   : > { %6095 = vmatprep.subr.bf16.mxu0 %v6921_v27  ;;  %6562 = vmatprep.subr.bf16.mxu1 %v9881_v6 }
0x1056   : > { %6096 = vmatpush3.bf16.msra.mxu0 %v6923_v25  ;;  %6570 = vmatpush3.bf16.msra.mxu1 %v9889_v24 }
0x1057   : > { %6097 = vmatprep.subr.bf16.mxu0 %v6925_v41  ;;  %6563 = vmatprep.subr.bf16.mxu1 %v9899_v28 }
0x105a   : > { %6098 = vmatpush3.bf16.msra.mxu0 %v6927_v9  ;;  %6571 = vmatpush3.bf16.msra.mxu1 %v9907_v5 }
0x105b   : > { %4260 = vmatmul.mubr.bf16.gmra.mxu0 %v3942_v18  ;;  %4373 = vmatmul.mubr.bf16.gmra.mxu1 %v3942_v18 }
0x105c   : > { %6099 = vmatprep.subr.bf16.mxu0 %v6929_v44  ;;  %6564 = vmatprep.subr.bf16.mxu1 %v9917_v58 }
0x105e   : > { %6100 = vmatpush3.bf16.msra.mxu0 %v6931_v19  ;;  %6572 = vmatpush3.bf16.msra.mxu1 %v9925_v54 }
0x105f   : > { %6101 = vmatprep.subr.bf16.mxu0 %v6933_v60  ;;  %6565 = vmatprep.subr.bf16.mxu1 %v9935_v59 }
0x1062   : > { %6102 = vmatpush3.bf16.msra.mxu0 %v6935_v30  ;;  %6573 = vmatpush3.bf16.msra.mxu1 %v9943_v49 }
0x1063   : > { %6103 = vmatprep.subr.bf16.mxu0 %v6937_v51  ;;  %6566 = vmatprep.subr.bf16.mxu1 %v9953_v36 }
0x1066   : > { %6104 = vmatpush3.bf16.msra.mxu0 %v6939_v12  ;;  %6574 = vmatpush3.bf16.msra.mxu1 %v9961_v16 }
0x1067   : > { %6105 = vmatprep.subr.bf16.mxu0 %v6941_v10  ;;  %6567 = vmatprep.subr.bf16.mxu1 %v9968_v1 }
0x106a   : > { %6106 = vmatpush3.bf16.msra.mxu0 %v6943_v47  ;;  %6575 = vmatpush3.bf16.msra.mxu1 %v9973_v4 }
0x106b   : > { %6155 = vmatprep.subr.bf16.mxu0 %v6922_v38  ;;  %6568 = vmatprep.subr.bf16.mxu1 %v9980_v42 }
0x106e   : > { %6576 = vmatpush3.bf16.msra.mxu1 %v6948_v52 }
0x10c4   : > { %v4191_v29 = vpop.f32.mrf.mxu0  ;;  %v4304_v17 = vpop.f32.mrf.mxu1 }
0x10c5   : > { %v10003_v35 = vadd.f32 %v4191_v29, %v9991_v0  ;;  %v10006_v63 = vadd.f32 %v4304_v17, %v9995_v22 }
0x10c6   : > { %v4193_v8 = vpop.f32.mrf.mxu0  ;;  %v4306_v3 = vpop.f32.mrf.mxu1 }
0x10c7   : > { %v4383_v11 = vmul.f32 %v10003_v35, %v10003_v35  ;;  %v4385_v18 = vmul.f32 %v10006_v63, %v10006_v63  ;;  %v10015_v46 = vadd.f32 %v4193_v8, %v10000_v23  ;;  %v10022_v9 = vadd.f32 %v4306_v3, %v10008_v14 }
0x10c8   : > { %v4195_v43 = vpop.f32.mrf.mxu0  ;;  %v4308_v27 = vpop.f32.mrf.mxu1 }
0x10c9   : > { %v4447_v38 = vmul.f32 %v4383_v11, %v10003_v35  ;;  %v4449_v25 = vmul.f32 %v4385_v18, %v10006_v63  ;;  %v4384_v41 = vmul.f32 %v10015_v46, %v10015_v46  ;;  %11056 = vst [vmem:[#allocation58_spill] sm:$0xff] %v10022_v9  ;;  %v10025_v44 = vadd.f32 %v4195_v43, %v9991_v0 }
0x10ca   : > { %v10028_v19 = vadd.f32 %v4308_v27, %v9995_v22  ;;  %v4197_v60 = vpop.f32.mrf.mxu0  ;;  %v4310_v30 = vpop.f32.mrf.mxu1  ;;  %v4386_v29 = vmul.f32 %v10022_v9, %v10022_v9 }
0x10cb   : > { %v4511_v51 = vmul.f32 0.044715, %v4447_v38  ;;  %v4513_v12 = vmul.f32 0.044715, %v4449_v25  ;;  %v4448_v10 = vmul.f32 %v4384_v41, %v10015_v46  ;;  %v4387_v47 = vmul.f32 %v10025_v44, %v10025_v44 }
0x10cc   : > { %v4389_v52 = vmul.f32 %v10028_v19, %v10028_v19  ;;  %v10036_v32 = vadd.f32 %v4197_v60, %v10000_v23  ;;  %v4201_v37 = vpop.f32.mrf.mxu0  ;;  %v4314_v7 = vpop.f32.mrf.mxu1  ;;  %v10047_v43 = vadd.f32 %v4310_v30, %v10008_v14 }
0x10cd   : > { %v4575_v48 = vadd.f32 %v4511_v51, %v10003_v35  ;;  %v4577_v62 = vadd.f32 %v4513_v12, %v10006_v63  ;;  %v4512_v15 = vmul.f32 0.044715, %v4448_v10  ;;  %v4451_v17 = vmul.f32 %v4387_v47, %v10025_v44 }
0x10ce   : > { %v4453_v8 = vmul.f32 %v4389_v52, %v10028_v19  ;;  %v4388_v3 = vmul.f32 %v10036_v32, %v10036_v32  ;;  %11057 = vst [vmem:[#allocation56_spill] sm:$0xff] %v10047_v43  ;;  %v4203_v27 = vpop.f32.mrf.mxu0  ;;  %v4316_v51 = vpop.f32.mrf.mxu1  ;;  %v4450_v12 = vmul.f32 %v4386_v29, %v10022_v9  ;;  %v10053_v10 = vadd.f32 %v4201_v37, %v9991_v0 }
0x10cf   : > { %v4639_v11 = vmul.f32 0.7978846, %v4575_v48  ;;  %v4641_v18 = vmul.f32 0.7978846, %v4577_v62  ;;  %v4576_v38 = vadd.f32 %v4512_v15, %v10015_v46  ;;  %v4515_v25 = vmul.f32 0.044715, %v4451_v17 }
0x10d0   : > { %v4517_v41 = vmul.f32 0.044715, %v4453_v8  ;;  %v4452_v60 = vmul.f32 %v4388_v3, %v10036_v32  ;;  %v4390_v48 = vmul.f32 %v10047_v43, %v10047_v43  ;;  %v4391_v62 = vmul.f32 %v10053_v10, %v10053_v10  ;;  %v4205_v17 = vpop.f32.mrf.mxu0  ;;  %v4318_v3 = vpop.f32.mrf.mxu1 }
0x10d1   : > { %7269 = vtanh.f32 %v4639_v11  ;;  %v4579_v47 = vadd.f32 %v4515_v25, %v10025_v44  ;;  %v10062_v15 = vadd.f32 %v4314_v7, %v9995_v22  ;;  %v4640_v29 = vmul.f32 0.7978846, %v4576_v38 }
0x10d2   : > { %7271 = vtanh.f32 %v4641_v18  ;;  %v4581_v30 = vadd.f32 %v4517_v41, %v10028_v19  ;;  %v4516_v52 = vmul.f32 0.044715, %v4452_v60  ;;  %v4455_v18 = vmul.f32 %v4391_v62, %v10053_v10  ;;  %v4207_v62 = vpop.f32.mrf.mxu0 }
0x10d3   : > { %v4643_v8 = vmul.f32 0.7978846, %v4579_v47  ;;  %v4393_v25 = vmul.f32 %v10062_v15, %v10062_v15  ;;  %v10069_v41 = vadd.f32 %v4203_v27, %v10000_v23  ;;  %v4514_v60 = vmul.f32 0.044715, %v4450_v12 }
0x10d4   : > { %v4645_v37 = vmul.f32 0.7978846, %v4581_v30  ;;  %v4580_v11 = vadd.f32 %v4516_v52, %v10036_v32  ;;  %v10072_v7 = vadd.f32 %v4316_v51, %v10008_v14  ;;  %v10075_v38 = vadd.f32 %v4205_v17, %v9991_v0 }
0x10d5   : > { %7273 = vtanh.f32 %v4643_v8  ;;  %v4454_v47 = vmul.f32 %v4390_v48, %v10047_v43  ;;  %v4519_v30 = vmul.f32 0.044715, %v4455_v18  ;;  %v4457_v52 = vmul.f32 %v4393_v25, %v10062_v15  ;;  %v4320_v8 = vpop.f32.mrf.mxu1 }
0x10d6   : > { %7275 = vtanh.f32 %v4645_v37  ;;  %v4392_v27 = vmul.f32 %v10069_v41, %v10069_v41  ;;  %v4394_v12 = vmul.f32 %v10072_v7, %v10072_v7  ;;  %v4395_v51 = vmul.f32 %v10075_v38, %v10075_v38 }
0x10d7   : > { %7277 = vtanh.f32 %v4640_v29  ;;  %v4644_v17 = vmul.f32 0.7978846, %v4580_v11  ;;  %v4583_v37 = vadd.f32 %v4519_v30, %v10053_v10  ;;  %v4521_v34 = vmul.f32 0.044715, %v4457_v52 }
0x10d8   : > { %v10087_v48 = vadd.f32 %v4318_v3, %v9995_v22  ;;  %v4456_v18 = vmul.f32 %v4392_v27, %v10069_v41  ;;  %v4458_v29 = vmul.f32 %v4394_v12, %v10072_v7  ;;  %v4459_v25 = vmul.f32 %v4395_v51, %v10075_v38 }
0x10d9   : > { %v10093_v53 = vadd.f32 %v4207_v62, %v10000_v23  ;;  %v4647_v56 = vmul.f32 0.7978846, %v4583_v37  ;;  %v4585_v45 = vadd.f32 %v4521_v34, %v10062_v15  ;;  %v10099_v30 = vadd.f32 %v4320_v8, %v10008_v14  ;;  %v4211_v34 = vpop.f32.mrf.mxu0 }
0x10da   : > { %v4397_v11 = vmul.f32 %v10087_v48, %v10087_v48  ;;  %v4520_v3 = vmul.f32 0.044715, %v4456_v18  ;;  %v4522_v52 = vmul.f32 0.044715, %v4458_v29  ;;  %v4523_v39 = vmul.f32 0.044715, %v4459_v25 }
0x10db   : > { %v4396_v27 = vmul.f32 %v10093_v53, %v10093_v53  ;;  %7279 = vtanh.f32 %v4647_v56  ;;  %v4649_v12 = vmul.f32 0.7978846, %v4585_v45  ;;  %v4398_v51 = vmul.f32 %v10099_v30, %v10099_v30 }
0x10dc   : > { %v4461_v62 = vmul.f32 %v4397_v11, %v10087_v48  ;;  %v4584_v13 = vadd.f32 %v4520_v3, %v10069_v41  ;;  %v4586_v8 = vadd.f32 %v4522_v52, %v10072_v7  ;;  %v4587_v18 = vadd.f32 %v4523_v39, %v10075_v38  ;;  %v4324_v11 = vpop.f32.mrf.mxu1 }
0x10dd   : > { %v4460_v29 = vmul.f32 %v4396_v27, %v10093_v53  ;;  %7281 = vtanh.f32 %v4649_v12  ;;  %v4462_v45 = vmul.f32 %v4398_v51, %v10099_v30  ;;  %v4518_v33 = vmul.f32 0.044715, %v4454_v47 }
0x10de   : > { %v7270_v37 = vpop.eup %7269  ;;  %v4525_v56 = vmul.f32 0.044715, %v4461_v62  ;;  %v4648_v55 = vmul.f32 0.7978846, %v4584_v13  ;;  %v10112_v21 = vadd.f32 %v4211_v34, %v9991_v0  ;;  %v4650_v20 = vmul.f32 0.7978846, %v4586_v8  ;;  %v4213_v62 = vpop.f32.mrf.mxu0 }
0x10df   : > { %v7272_v25 = vpop.eup %7271  ;;  %v4767_v40 = vadd.f32 1.0, %v7270_v37  ;;  %v4651_v52 = vmul.f32 0.7978846, %v4587_v18  ;;  %7283 = vtanh.f32 %v4644_v17  ;;  %v4524_v27 = vmul.f32 0.044715, %v4460_v29  ;;  %v4326_v47 = vpop.f32.mrf.mxu1 }
0x10e0   : > { %v4769_v50 = vadd.f32 1.0, %v7272_v25  ;;  %v4589_v39 = vadd.f32 %v4525_v56, %v10087_v48  ;;  %v4526_v2 = vmul.f32 0.044715, %v4462_v45  ;;  %v4399_v12 = vmul.f32 %v10112_v21, %v10112_v21  ;;  %v4215_v45 = vpop.f32.mrf.mxu0 }
0x10e1   : > { %v4831_v3 = vmul.f32 0.5, %v4767_v40  ;;  %v10118_v37 = vadd.f32 %v4514_v60, %v10022_v9  ;;  %7285 = vtanh.f32 %v4648_v55  ;;  %v10121_v18 = vadd.f32 %v4518_v33, %v10047_v43 }
0x10e2   : > { %v7274_v51 = vpop.eup %7273  ;;  %v4653_v13 = vmul.f32 0.7978846, %v4589_v39  ;;  %v4833_v40 = vmul.f32 0.5, %v4769_v50  ;;  %7287 = vtanh.f32 %v4651_v52  ;;  %v4463_v60 = vmul.f32 %v4399_v12, %v10112_v21 }
0x10e3   : > { %11058 = vst [vmem:[#allocation61_spill] sm:$0xff] %v10118_v37  ;;  %v7276_v34 = vpop.eup %7275  ;;  %v4771_v8 = vadd.f32 1.0, %v7274_v51  ;;  %11059 = vst [vmem:[#allocation59_spill] sm:$0xff] %v10121_v18  ;;  %v10126_v29 = vmul.f32 %v4831_v3, %v10003_v35  ;;  %7289 = vtanh.f32 %v4650_v20  ;;  %v4588_v55 = vadd.f32 %v4524_v27, %v10093_v53  ;;  %v4328_v20 = vpop.f32.mrf.mxu1 }
0x10e4   : > { %v10123_v17 = vpop.eup %7277  ;;  %v4773_v25 = vadd.f32 1.0, %v7276_v34  ;;  %v4590_v56 = vadd.f32 %v4526_v2, %v10099_v30  ;;  %v10132_v50 = vadd.f32 %v4324_v11, %v9995_v22  ;;  %v10135_v33 = vadd.f32 %v4213_v62, %v10000_v23 }
0x10e5   : > { %7291 = vtanh.f32 %v4653_v13  ;;  %v4527_v39 = vmul.f32 0.044715, %v4463_v60  ;;  %v10138_v35 = vadd.f32 %v4326_v47, %v10008_v14  ;;  %v10141_v3 = vmul.f32 %v4833_v40, %v10006_v63 }
0x10e6   : > { %v4837_v52 = vmul.f32 0.5, %v4773_v25  ;;  %v4835_v27 = vmul.f32 0.5, %v4771_v8  ;;  %v4401_v2 = vmul.f32 %v10132_v50, %v10132_v50  ;;  %v4400_v11 = vmul.f32 %v10135_v33, %v10135_v33  ;;  %v4217_v25 = vpop.f32.mrf.mxu0 }
0x10e7   : > { %11060 = vst [vmem:[#allocation62_spill] sm:$0xff] %v10141_v3  ;;  %v4591_v62 = vadd.f32 %v4527_v39, %v10112_v21  ;;  %v4402_v51 = vmul.f32 %v10138_v35, %v10138_v35  ;;  %v10154_v13 = vadd.f32 %v4215_v45, %v9991_v0  ;;  %v4652_v47 = vmul.f32 0.7978846, %v4588_v55 }
0x10e8   : > { %v10148_v12 = vmul.f32 %v4837_v52, %v10028_v19  ;;  %v7280_v63 = vpop.eup %7279  ;;  %v4465_v34 = vmul.f32 %v4401_v2, %v10132_v50  ;;  %v4464_v40 = vmul.f32 %v4400_v11, %v10135_v33  ;;  %v10159_v8 = vadd.f32 %v4328_v20, %v9995_v22  ;;  %v4330_v19 = vpop.f32.mrf.mxu1 }
0x10e9   : > { %v4775_v60 = vadd.f32 1.0, %v7280_v63  ;;  %v4654_v52 = vmul.f32 0.7978846, %v4590_v56  ;;  %v4466_v39 = vmul.f32 %v4402_v51, %v10138_v35  ;;  %v4403_v55 = vmul.f32 %v10154_v13, %v10154_v13 }
0x10ea   : > { %11061 = vst [vmem:[#allocation60_spill] sm:$0xff] %v10148_v12  ;;  %v7282_v61 = vpop.eup %7281  ;;  %v4529_v45 = vmul.f32 0.044715, %v4465_v34  ;;  %v4528_v57 = vmul.f32 0.044715, %v4464_v40  ;;  %v4405_v2 = vmul.f32 %v10159_v8, %v10159_v8  ;;  %v10169_v20 = vmul.f32 %v4835_v27, %v10025_v44  ;;  %v4221_v40 = vpop.f32.mrf.mxu0 }
0x10eb   : > { %v4777_v11 = vadd.f32 1.0, %v7282_v61  ;;  %v4655_v31 = vmul.f32 0.7978846, %v4591_v62  ;;  %v4530_v43 = vmul.f32 0.044715, %v4466_v39  ;;  %v4467_v63 = vmul.f32 %v4403_v55, %v10154_v13 }
0x10ec   : > { %v4593_v56 = vadd.f32 %v4529_v45, %v10132_v50  ;;  %v4592_v51 = vadd.f32 %v4528_v57, %v10135_v33  ;;  %v4469_v34 = vmul.f32 %v4405_v2, %v10159_v8  ;;  %v10175_v3 = vpop.eup %7283  ;;  %v4839_v12 = vmul.f32 0.5, %v4775_v60  ;;  %v4334_v60 = vpop.f32.mrf.mxu1 }
0x10ed   : > { %v4841_v9 = vmul.f32 0.5, %v4777_v11  ;;  %7293 = vtanh.f32 %v4652_v47  ;;  %v10178_v44 = vadd.f32 %v4217_v25, %v10000_v23  ;;  %v4531_v62 = vmul.f32 0.044715, %v4467_v63 }
0x10ee   : > { %v10180_v61 = vpop.eup %7285  ;;  %7295 = vtanh.f32 %v4654_v52  ;;  %v4657_v27 = vmul.f32 0.7978846, %v4593_v56  ;;  %v10183_v57 = vadd.f32 %v4330_v19, %v10008_v14  ;;  %v4656_v55 = vmul.f32 0.7978846, %v4592_v51  ;;  %v4223_v56 = vpop.f32.mrf.mxu0 }
0x10ef   : > { %v7288_v39 = vpop.eup %7287  ;;  %v4533_v2 = vmul.f32 0.044715, %v4469_v34  ;;  %v4404_v47 = vmul.f32 %v10178_v44, %v10178_v44  ;;  %7297 = vtanh.f32 %v4655_v31  ;;  %v4594_v52 = vadd.f32 %v4530_v43, %v10138_v35 }
0x10f0   : > { %v10189_v25 = vpop.eup %7289  ;;  %v4595_v11 = vadd.f32 %v4531_v62, %v10154_v13  ;;  %v4406_v19 = vmul.f32 %v10183_v57, %v10183_v57  ;;  %v10196_v63 = vmul.f32 %v4839_v12, %v10053_v10  ;;  %v10199_v51 = vmul.f32 %v4841_v9, %v10062_v15  ;;  %v4336_v10 = vpop.f32.mrf.mxu1 }
0x10f1   : > { %v4597_v34 = vadd.f32 %v4533_v2, %v10159_v8  ;;  %v4468_v45 = vmul.f32 %v4404_v47, %v10178_v44  ;;  %v4779_v31 = vadd.f32 1.0, %v7288_v39  ;;  %7299 = vtanh.f32 %v4657_v27  ;;  %v4225_v2 = vpop.f32.mrf.mxu0 }
0x10f2   : > { %v7292_v42 = vpop.eup %7291  ;;  %v4659_v43 = vmul.f32 0.7978846, %v4595_v11  ;;  %v4470_v62 = vmul.f32 %v4406_v19, %v10183_v57  ;;  %7301 = vtanh.f32 %v4656_v55  ;;  %v10205_v37 = vadd.f32 %v4221_v40, %v9991_v0 }
0x10f3   : > { %v4661_v4 = vmul.f32 0.7978846, %v4597_v34  ;;  %v4532_v18 = vmul.f32 0.044715, %v4468_v45  ;;  %v4658_v12 = vmul.f32 0.7978846, %v4594_v52  ;;  %v10208_v15 = vadd.f32 %v4334_v60, %v9995_v22 }
0x10f4   : > { %7303 = vtanh.f32 %v4659_v43  ;;  %v4534_v9 = vmul.f32 0.044715, %v4470_v62  ;;  %v4781_v47 = vadd.f32 1.0, %v7292_v42  ;;  %v4407_v39 = vmul.f32 %v10205_v37, %v10205_v37  ;;  %v4338_v43 = vpop.f32.mrf.mxu1 }
0x10f5   : > { %7305 = vtanh.f32 %v4661_v4  ;;  %v4596_v27 = vadd.f32 %v4532_v18, %v10178_v44  ;;  %v4409_v40 = vmul.f32 %v10208_v15, %v10208_v15  ;;  %v10217_v55 = vadd.f32 %v4223_v56, %v10000_v23 }
0x10f6   : > { %v4598_v45 = vadd.f32 %v4534_v9, %v10183_v57  ;;  %v10220_v52 = vadd.f32 %v4336_v10, %v10008_v14  ;;  %v4843_v60 = vmul.f32 0.5, %v4779_v31  ;;  %v4471_v4 = vmul.f32 %v4407_v39, %v10205_v37  ;;  %v4227_v9 = vpop.f32.mrf.mxu0 }
0x10f7   : > { %11062 = vst [vmem:[#allocation65_spill] sm:$0xff] %v10217_v55  ;;  %v4660_v11 = vmul.f32 0.7978846, %v4596_v27  ;;  %v10224_v42 = vadd.f32 %v4225_v2, %v9991_v0  ;;  %v4473_v19 = vmul.f32 %v4409_v40, %v10208_v15  ;;  %v4408_v34 = vmul.f32 %v10217_v55, %v10217_v55 }
0x10f8   : > { %11063 = vst [vmem:[#allocation63_spill] sm:$0xff] %v10220_v52  ;;  %v4662_v18 = vmul.f32 0.7978846, %v4598_v45  ;;  %v4410_v56 = vmul.f32 %v10220_v52, %v10220_v52  ;;  %v4845_v62 = vmul.f32 0.5, %v4781_v47  ;;  %7307 = vtanh.f32 %v4658_v12 }
0x10f9   : > { %v4535_v10 = vmul.f32 0.044715, %v4471_v4  ;;  %v4411_v31 = vmul.f32 %v10224_v42, %v10224_v42  ;;  %7309 = vtanh.f32 %v4660_v11  ;;  %v4537_v2 = vmul.f32 0.044715, %v4473_v19 }
0x10fa   : > { %v10233_v27 = vpop.eup %7293  ;;  %v4472_v39 = vmul.f32 %v4408_v34, %v10217_v55  ;;  %v4474_v45 = vmul.f32 %v4410_v56, %v10220_v52  ;;  %7311 = vtanh.f32 %v4662_v18  ;;  %v10242_v47 = vadd.f32 %v4338_v43, %v9995_v22 }
0x10fb   : > { %v10237_v40 = vpop.eup %7295  ;;  %v4599_v1 = vadd.f32 %v4535_v10, %v10205_v37  ;;  %v4475_v12 = vmul.f32 %v4411_v31, %v10224_v42  ;;  %v4601_v4 = vadd.f32 %v4537_v2, %v10208_v15  ;;  %v10246_v11 = vadd.f32 %v4227_v9, %v10000_v23 }
0x10fc   : > { %11064 = vst [vmem:[#allocation66_spill] sm:$0xff] %v10242_v47  ;;  %v4536_v16 = vmul.f32 0.044715, %v4472_v39  ;;  %v4538_v36 = vmul.f32 0.044715, %v4474_v45  ;;  %v7298_v19 = vpop.eup %7297  ;;  %v10249_v34 = vmul.f32 %v4843_v60, %v10075_v38  ;;  %v4413_v10 = vmul.f32 %v10242_v47, %v10242_v47  ;;  %v4340_v45 = vpop.f32.mrf.mxu1 }
0x10fd   : > { %11065 = vst [vmem:[#allocation64_spill] sm:$0xff] %v10246_v11  ;;  %v4663_v56 = vmul.f32 0.7978846, %v4599_v1  ;;  %v4539_v18 = vmul.f32 0.044715, %v4475_v12  ;;  %v10254_v31 = vmul.f32 %v4845_v62, %v10087_v48  ;;  %v4412_v1 = vmul.f32 %v10246_v11, %v10246_v11 }
0x10fe   : > { %v4665_v43 = vmul.f32 0.7978846, %v4601_v4  ;;  %v4600_v2 = vadd.f32 %v4536_v16, %v10217_v55  ;;  %v4602_v39 = vadd.f32 %v4538_v36, %v10220_v52  ;;  %v7300_v9 = vpop.eup %7299  ;;  %v4477_v38 = vmul.f32 %v4413_v10, %v10242_v47 }
0x10ff   : > { %7313 = vtanh.f32 %v4663_v56  ;;  %v4603_v49 = vadd.f32 %v4539_v18, %v10224_v42  ;;  %v7302_v60 = vpop.eup %7301  ;;  %v4783_v12 = vadd.f32 1.0, %v7298_v19  ;;  %v4476_v36 = vmul.f32 %v4412_v1, %v10246_v11 }
0x1100   : > { %7315 = vtanh.f32 %v4665_v43  ;;  %v4664_v48 = vmul.f32 0.7978846, %v4600_v2  ;;  %v4666_v62 = vmul.f32 0.7978846, %v4602_v39  ;;  %v4541_v16 = vmul.f32 0.044715, %v4477_v38 }
0x1101   : > { %v7304_v4 = vpop.eup %7303  ;;  %v4667_v59 = vmul.f32 0.7978846, %v4603_v49  ;;  %v10264_v54 = vadd.f32 %v4340_v45, %v10008_v14  ;;  %v4785_v10 = vadd.f32 1.0, %v7300_v9  ;;  %v4768_v52 = vadd.f32 1.0, %v10123_v17 }
0x1102   : > { %v7306_v56 = vpop.eup %7305  ;;  %7317 = vtanh.f32 %v4664_v48  ;;  %v4787_v19 = vadd.f32 1.0, %v7304_v4  ;;  %v4605_v43 = vadd.f32 %v4541_v16, %v10242_v47  ;;  %v4540_v2 = vmul.f32 0.044715, %v4476_v36 }
0x1103   : > { %7319 = vtanh.f32 %v4666_v62  ;;  %v4847_v49 = vmul.f32 0.5, %v4783_v12  ;;  %v4414_v39 = vmul.f32 %v10264_v54, %v10264_v54  ;;  %v4772_v45 = vadd.f32 1.0, %v10175_v3 }
0x1104   : > { %7321 = vtanh.f32 %v4667_v59  ;;  %v4789_v38 = vadd.f32 1.0, %v7306_v56  ;;  %v4669_v1 = vmul.f32 0.7978846, %v4605_v43  ;;  %v4604_v18 = vadd.f32 %v4540_v2, %v10246_v11 }
0x1105   : > { %v4832_v9 = vmul.f32 0.5, %v4768_v52  ;;  %v7308_v48 = vpop.eup %7307  ;;  %v4849_v55 = vmul.f32 0.5, %v4785_v10  ;;  %v4478_v17 = vmul.f32 %v4414_v39, %v10264_v54  ;;  %v4836_v62 = vmul.f32 0.5, %v4772_v45 }
0x1106   : > { %v4776_v4 = vadd.f32 1.0, %v10180_v61  ;;  %v7310_v16 = vpop.eup %7309  ;;  %v4851_v12 = vmul.f32 0.5, %v4787_v19  ;;  %7323 = vtanh.f32 %v4669_v1  ;;  %v4668_v59 = vmul.f32 0.7978846, %v4604_v18 }
0x1107   : > { %v4896_v36 = vmul.f32 %v4832_v9, %v10015_v46  ;;  %v7312_v47 = vpop.eup %7311  ;;  %v4542_v3 = vmul.f32 0.044715, %v4478_v17  ;;  %v4900_v56 = vmul.f32 %v4836_v62, %v10036_v32  ;;  %v4780_v43 = vadd.f32 1.0, %v10233_v27  ;;  %v4231_v32 = vpop.f32.mrf.mxu0 }
0x1108   : > { %v4840_v52 = vmul.f32 0.5, %v4776_v4  ;;  %v4853_v2 = vmul.f32 0.5, %v4789_v38  ;;  %7325 = vtanh.f32 %v4668_v59  ;;  %v4778_v10 = vadd.f32 1.0, %v10189_v25  ;;  %v4344_v59 = vpop.f32.mrf.mxu1 }
0x1109   : > { %v4782_v39 = vadd.f32 1.0, %v10237_v40  ;;  %v4606_v61 = vadd.f32 %v4542_v3, %v10264_v54  ;;  %v4960_v19 = vpack.c.bf16 %v4900_v56, %v4896_v36  ;;  %v4844_v45 = vmul.f32 0.5, %v4780_v43  ;;  %v4233_v43 = vpop.f32.mrf.mxu0 }
0x110a   : > { %v4904_v18 = vmul.f32 %v4840_v52, %v10069_v41  ;;  %v4842_v46 = vmul.f32 0.5, %v4778_v10  ;;  %v4784_v9 = vadd.f32 1.0, %v7302_v60  ;;  %v4788_v17 = vadd.f32 1.0, %v7310_v16  ;;  %v4346_v10 = vpop.f32.mrf.mxu1 }
0x110b   : > { %v4846_v1 = vmul.f32 0.5, %v4782_v39  ;;  %v4670_v27 = vmul.f32 0.7978846, %v4606_v61  ;;  %5286 = vmatprep.mubr.bf16.mxu0 %v4960_v19  ;;  %v4908_v38 = vmul.f32 %v4844_v45, %v10093_v53  ;;  %v4786_v4 = vadd.f32 1.0, %v7308_v48 }
0x110c   : > { %v7314_v62 = vpop.eup %7313  ;;  %v4790_v25 = vadd.f32 1.0, %v7312_v47  ;;  %v11066_v36 = vpack.c.bf16 %v10169_v20, %v10126_v29  ;;  %v4906_v41 = vmul.f32 %v4842_v46, %v10072_v7  ;;  %v4848_v16 = vmul.f32 0.5, %v4784_v9  ;;  %v4348_v45 = vpop.f32.mrf.mxu1 }
0x110d   : > { %v7316_v40 = vpop.eup %7315  ;;  %v4791_v11 = vadd.f32 1.0, %v7314_v62  ;;  %v4910_v60 = vmul.f32 %v4846_v1, %v10099_v30  ;;  %v10290_v3 = vmul.f32 %v4847_v49, %v10112_v21  ;;  %7327 = vtanh.f32 %v4670_v27 }
0x110e   : > { %5287 = vmatmul.mubr.bf16.vlgmr.msra.gmra.mxu0 %v11066_v36  ;;  %v4964_v56 = vpack.c.bf16 %v4908_v38, %v4904_v18  ;;  %v4852_v53 = vmul.f32 0.5, %v4788_v17  ;;  %v10294_v48 = vmul.f32 %v4849_v55, %v10132_v50  ;;  %v10297_v29 = vmul.f32 %v4851_v12, %v10154_v13 }
0x110f   : > { %6156 = vmatpush3.bf16.msra.mxu0 %v9872_v26  ;;  %v7318_v47 = vpop.eup %7317  ;;  %v4966_v20 = vpack.c.bf16 %v4910_v60, %v4906_v41  ;;  %v4850_v7 = vmul.f32 0.5, %v4786_v4  ;;  %v4917_v21 = vmul.f32 %v4853_v2, %v10159_v8  ;;  %v4912_v49 = vmul.f32 %v4848_v16, %v10135_v33 }
0x1110   : > { %6157 = vmatprep.subr.bf16.mxu0 %v9881_v6  ;;  %v7320_v30 = vpop.eup %7319  ;;  %5294 = vmatprep.mubr.bf16.mxu0 %v4964_v56  ;;  %v4916_v26 = vmul.f32 %v4852_v53, %v10178_v44  ;;  %v4854_v52 = vmul.f32 0.5, %v4790_v25  ;;  %v4855_v55 = vmul.f32 0.5, %v4791_v11  ;;  %v4793_v39 = vadd.f32 1.0, %v7316_v40 }
0x1111   : > { %v7322_v50 = vpop.eup %7321  ;;  %5391 = vmatprep.mubr.bf16.mxu1 %v4966_v20  ;;  %v4963_v13 = vpack.c.bf16 %v10249_v34, %v10196_v63  ;;  %v10306_v12 = vadd.f32 %v4231_v32, %v9991_v0  ;;  %v11067_v8 = vpack.c.bf16 %v10254_v31, %v10199_v51  ;;  %v4914_v44 = vmul.f32 %v4850_v7, %v10138_v35  ;;  %v4235_v51 = vpop.f32.mrf.mxu0 }
0x1112   : > { %v4795_v6 = vadd.f32 1.0, %v7322_v50  ;;  %v4968_v33 = vpack.c.bf16 %v4916_v26, %v4912_v49  ;;  %v4918_v2 = vmul.f32 %v4854_v52, %v10183_v57  ;;  %v10317_v63 = vadd.f32 %v4344_v59, %v9995_v22  ;;  %v11070_v52 = vld [vmem:[#allocation70_spill] sm:$0xff]  ;;  %v11072_v50 = vld [vmem:[#allocation64_spill] sm:$0xff] }
0x1113   : > { %5392 = vmatmul.mubr.bf16.vlgmr.msra.gmra.mxu1 %v11067_v8  ;;  %6158 = vmatpush3.bf16.msra.mxu0 %v9889_v24  ;;  %v4415_v11 = vmul.f32 %v10306_v12, %v10306_v12  ;;  %v10320_v34 = vadd.f32 %v4233_v43, %v10000_v23  ;;  %v10323_v61 = vadd.f32 %v4346_v10, %v10008_v14  ;;  %v7324_v35 = vpop.eup %7323  ;;  %v4792_v19 = vadd.f32 1.0, %v7318_v47  ;;  %v4237_v40 = vpop.f32.mrf.mxu0  ;;  %v11071_v10 = vld [vmem:[#allocation66_spill] sm:$0xff]  ;;  %v11073_v8 = vld [vmem:[#allocation68_spill] sm:$0xff] }
0x1114   : > { %6159 = vmatprep.subr.bf16.mxu0 %v9899_v28  ;;  %v4859_v31 = vmul.f32 0.5, %v4795_v6  ;;  %v4970_v57 = vpack.c.bf16 %v4918_v2, %v4914_v44  ;;  %v4794_v24 = vadd.f32 1.0, %v7320_v30  ;;  %v4797_v18 = vadd.f32 1.0, %v7324_v35 }
0x1115   : > { %v4479_v46 = vmul.f32 %v4415_v11, %v10306_v12  ;;  %v4417_v1 = vmul.f32 %v10317_v63, %v10317_v63  ;;  %v4416_v9 = vmul.f32 %v10320_v34, %v10320_v34  ;;  %v7326_v17 = vpop.eup %7325  ;;  %v4857_v32 = vmul.f32 0.5, %v4793_v39  ;;  %v4241_v26 = vpop.f32.mrf.mxu0 }
0x1116   : > { %5295 = vmatmul.mubr.bf16.gmra.mxu0 %v4963_v13  ;;  %5399 = vmatprep.mubr.bf16.mxu1 %v4970_v57  ;;  %v4967_v28 = vpack.c.bf16 %v10297_v29, %v10290_v3  ;;  %v4418_v62 = vmul.f32 %v10323_v61, %v10323_v61  ;;  %v4856_v27 = vmul.f32 0.5, %v4792_v19  ;;  %v4858_v59 = vmul.f32 0.5, %v4794_v24  ;;  %v4350_v3 = vpop.f32.mrf.mxu1 }
0x1117   : > { %5302 = vmatprep.mubr.bf16.mxu0 %v4968_v33  ;;  %v4543_v38 = vmul.f32 0.044715, %v4479_v46  ;;  %v4481_v4 = vmul.f32 %v4417_v1, %v10317_v63  ;;  %v4480_v25 = vmul.f32 %v4416_v9, %v10320_v34  ;;  %6160 = vmatpush3.bf16.msra.mxu0 %v9907_v5  ;;  %v10339_v36 = vmul.f32 %v4855_v55, %v10205_v37  ;;  %v4243_v46 = vpop.f32.mrf.mxu0  ;;  %v11074_v1 = vld [vmem:[#allocation53_spill] sm:$0xff] }
0x1118   : > { %v4861_v41 = vmul.f32 0.5, %v4797_v18  ;;  %v4969_v60 = vpack.c.bf16 %v4917_v21, %v10294_v48  ;;  %v4796_v16 = vadd.f32 1.0, %v7326_v17  ;;  %6161 = vmatprep.subr.bf16.mxu0 %v9917_v58  ;;  %v10344_v56 = vmul.f32 %v4859_v31, %v10224_v42  ;;  %v11068_v42 = vld [vmem:[#allocation65_spill] sm:$0xff]  ;;  %v11069_v21 = vld [vmem:[#allocation63_spill] sm:$0xff]  ;;  %v4354_v6 = vpop.f32.mrf.mxu1 }
0x1119   : > { %v4607_v53 = vadd.f32 %v4543_v38, %v10306_v12  ;;  %v4545_v47 = vmul.f32 0.044715, %v4481_v4  ;;  %v4482_v29 = vmul.f32 %v4418_v62, %v10323_v61  ;;  %v10349_v5 = vmul.f32 %v4857_v32, %v10208_v15  ;;  %v11075_v62 = vld [vmem:[#allocation51_spill] sm:$0xff] }
0x111a   : > { %v4544_v37 = vmul.f32 0.044715, %v4480_v25  ;;  %v4860_v20 = vmul.f32 0.5, %v4796_v16  ;;  %v10352_v48 = vadd.f32 %v4235_v51, %v9991_v0  ;;  %v7328_v7 = vpop.eup %7327  ;;  %v4920_v30 = vmul.f32 %v4856_v27, %v11068_v42 }
0x111b   : > { %5400 = vmatmul.mubr.bf16.gmra.mxu1 %v4969_v60  ;;  %v4671_v43 = vmul.f32 0.7978846, %v4607_v53  ;;  %v4609_v58 = vadd.f32 %v4545_v47, %v10317_v63  ;;  %v4922_v49 = vmul.f32 %v4858_v59, %v11069_v21  ;;  %6162 = vmatpush3.bf16.msra.mxu0 %v11070_v52  ;;  %v4925_v15 = vmul.f32 %v4861_v41, %v11071_v10  ;;  %v11079_v52 = vld [vmem:[#allocation59_spill] sm:$0xff] }
0x111c   : > { %v4924_v55 = vmul.f32 %v4860_v20, %v11072_v50  ;;  %v4798_v39 = vadd.f32 1.0, %v7328_v7  ;;  %v4419_v13 = vmul.f32 %v10352_v48, %v10352_v48  ;;  %6163 = vmatprep.subr.bf16.mxu0 %v11073_v8  ;;  %v4546_v44 = vmul.f32 0.044715, %v4482_v29  ;;  %v11077_v20 = vld [vmem:[#allocation52_spill] sm:$0xff]  ;;  %v11078_v7 = vld [vmem:[#allocation61_spill] sm:$0xff] }
0x111d   : > { %v4673_v33 = vmul.f32 0.7978846, %v4609_v58  ;;  %v4971_v2 = vpack.c.bf16 %v10344_v56, %v10339_v36  ;;  %v10366_v11 = vadd.f32 %v4348_v45, %v9995_v22  ;;  %v4608_v51 = vadd.f32 %v4544_v37, %v10320_v34  ;;  %v11076_v56 = vld [vmem:[#allocation54_spill] sm:$0xff] }
0x111e   : > { %5303 = vmatmul.mubr.bf16.gmra.mxu0 %v4967_v28  ;;  %v4972_v35 = vpack.c.bf16 %v4924_v55, %v4920_v30  ;;  %v4862_v31 = vmul.f32 0.5, %v4798_v39  ;;  %v4483_v57 = vmul.f32 %v4419_v13, %v10352_v48  ;;  %7329 = vtanh.f32 %v4671_v43  ;;  %v4356_v28 = vpop.f32.mrf.mxu1  ;;  %v11080_v13 = vld [vmem:[#allocation57_spill] sm:$0xff] }
0x111f   : > { %v4421_v19 = vmul.f32 %v10366_v11, %v10366_v11  ;;  %v10373_v24 = vadd.f32 %v4237_v40, %v10000_v23  ;;  %v10376_v18 = vadd.f32 %v4350_v3, %v10008_v14  ;;  %6164 = vmatpush3.bf16.msra.mxu0 %v11074_v1  ;;  %v4973_v9 = vpack.c.bf16 %v4925_v15, %v10349_v5  ;;  %v4245_v3 = vpop.f32.mrf.mxu0 }
0x1120   : > { %5310 = vmatprep.mubr.bf16.mxu0 %v4972_v35  ;;  %v4926_v45 = vmul.f32 %v4862_v31, %v10264_v54  ;;  %v4547_v17 = vmul.f32 0.044715, %v4483_v57  ;;  %v10382_v32 = vadd.f32 %v4241_v26, %v9991_v0  ;;  %6165 = vmatprep.subr.bf16.mxu0 %v11075_v62  ;;  %7331 = vtanh.f32 %v4673_v33  ;;  %v4358_v37 = vpop.f32.mrf.mxu1  ;;  %v11081_v35 = vld [vmem:[#allocation55_spill] sm:$0xff] }
0x1121   : > { %v4485_v27 = vmul.f32 %v4421_v19, %v10366_v11  ;;  %v4420_v38 = vmul.f32 %v10373_v24, %v10373_v24  ;;  %v4422_v4 = vmul.f32 %v10376_v18, %v10376_v18  ;;  %v10394_v40 = vadd.f32 %v4354_v6, %v9995_v22  ;;  %v4247_v39 = vpop.f32.mrf.mxu0 }
0x1122   : > { %v4974_v25 = vpack.c.bf16 %v4926_v45, %v4922_v49  ;;  %v4611_v54 = vadd.f32 %v4547_v17, %v10352_v48  ;;  %v4423_v59 = vmul.f32 %v10382_v32, %v10382_v32  ;;  %v10399_v16 = vadd.f32 %v4243_v46, %v10000_v23 }
0x1123   : > { %v4549_v36 = vmul.f32 0.044715, %v4485_v27  ;;  %v4484_v41 = vmul.f32 %v4420_v38, %v10373_v24  ;;  %v4486_v60 = vmul.f32 %v4422_v4, %v10376_v18  ;;  %6166 = vmatpush3.bf16.msra.mxu0 %v11076_v56  ;;  %v4425_v29 = vmul.f32 %v10394_v40, %v10394_v40  ;;  %v4251_v17 = vpop.f32.mrf.mxu0 }
0x1124   : > { %5407 = vmatprep.mubr.bf16.mxu1 %v4974_v25  ;;  %v4675_v53 = vmul.f32 0.7978846, %v4611_v54  ;;  %v4487_v47 = vmul.f32 %v4423_v59, %v10382_v32  ;;  %v10406_v5 = vadd.f32 %v4356_v28, %v10008_v14  ;;  %6167 = vmatprep.subr.bf16.mxu0 %v11077_v20  ;;  %v4642_v43 = vmul.f32 0.7978846, %v11078_v7  ;;  %v7413_v28 = vld [vmem:[%s10786_s15 + $0x80] sm:$0xff]  }
0x1125   : > { %v4610_v58 = vadd.f32 %v4546_v44, %v10323_v61  ;;  %5408 = vmatmul.mubr.bf16.gmra.mxu1 %v4973_v9  ;;  %v4613_v42 = vadd.f32 %v4549_v36, %v10366_v11  ;;  %v4424_v30 = vmul.f32 %v10399_v16, %v10399_v16  ;;  %v4548_v21 = vmul.f32 0.044715, %v4484_v41 }
0x1126   : > { %5311 = vmatmul.mubr.bf16.gmra.mxu0 %v4971_v2  ;;  %7333 = vtanh.f32 %v4675_v53  ;;  %v4551_v49 = vmul.f32 0.044715, %v4487_v47  ;;  %v4489_v26 = vmul.f32 %v4425_v29, %v10394_v40  ;;  %v4646_v10 = vmul.f32 0.7978846, %v11079_v52  ;;  %v4360_v2 = vpop.f32.mrf.mxu1  ;;  %v4253_v29 = vpop.f32.mrf.mxu0 }
0x1127   : > { %v4677_v15 = vmul.f32 0.7978846, %v4613_v42  ;;  %v4550_v50 = vmul.f32 0.044715, %v4486_v60  ;;  %v4426_v55 = vmul.f32 %v10406_v5, %v10406_v5  ;;  %6168 = vmatpush3.bf16.msra.mxu0 %v11080_v13  ;;  %v4672_v6 = vmul.f32 0.7978846, %v4608_v51 }
0x1128   : > { %v4615_v8 = vadd.f32 %v4551_v49, %v10382_v32  ;;  %v4553_v33 = vmul.f32 0.044715, %v4489_v26  ;;  %v10421_v44 = vadd.f32 %v4245_v3, %v9991_v0  ;;  %6169 = vmatprep.subr.bf16.mxu0 %v11081_v35  ;;  %v4674_v31 = vmul.f32 0.7978846, %v4610_v58  ;;  %v4364_v4 = vpop.f32.mrf.mxu1 }
0x1129   : > { %7335 = vtanh.f32 %v4677_v15  ;;  %v4488_v57 = vmul.f32 %v4424_v30, %v10399_v16  ;;  %v4612_v19 = vadd.f32 %v4548_v21, %v10373_v24  ;;  %v4614_v1 = vadd.f32 %v4550_v50, %v10376_v18 }
0x112a   : > { %7337 = vtanh.f32 %v4642_v43  ;;  %v4617_v46 = vadd.f32 %v4553_v33, %v10394_v40  ;;  %v4427_v51 = vmul.f32 %v10421_v44, %v10421_v44  ;;  %v4490_v45 = vmul.f32 %v4426_v55, %v10406_v5  ;;  %v4366_v43 = vpop.f32.mrf.mxu1 }
0x112b   : > { %7339 = vtanh.f32 %v4646_v10  ;;  %v10432_v9 = vadd.f32 %v4358_v37, %v9995_v22  ;;  %6170 = vmatpush3.bf16.msra.mxu0 %v7413_v28  ;;  %v7330_v62 = vpop.eup %7329  ;;  %v4679_v27 = vmul.f32 0.7978846, %v4615_v8  ;;  %v4552_v25 = vmul.f32 0.044715, %v4488_v57 }
0x112c   : > { %7341 = vtanh.f32 %v4672_v6  ;;  %v4491_v38 = vmul.f32 %v4427_v51, %v10421_v44  ;;  %v4676_v59 = vmul.f32 0.7978846, %v4612_v19  ;;  %v4681_v36 = vmul.f32 0.7978846, %v4617_v46 }
0x112d   : > { %7343 = vtanh.f32 %v4674_v31  ;;  %v7332_v54 = vpop.eup %7331  ;;  %v4429_v60 = vmul.f32 %v10432_v9, %v10432_v9  ;;  %v4799_v3 = vadd.f32 1.0, %v7330_v62  ;;  %v4678_v56 = vmul.f32 0.7978846, %v4614_v1 }
0x112e   : > { %v4555_v41 = vmul.f32 0.044715, %v4491_v38  ;;  %v4554_v53 = vmul.f32 0.044715, %v4490_v45  ;;  %v10441_v47 = vadd.f32 %v4247_v39, %v10000_v23  ;;  %7345 = vtanh.f32 %v4679_v27  ;;  %v4255_v45 = vpop.f32.mrf.mxu0  ;;  %v4368_v38 = vpop.f32.mrf.mxu1 }
0x112f   : > { %v4493_v20 = vmul.f32 %v4429_v60, %v10432_v9  ;;  %v10446_v7 = vadd.f32 %v4360_v2, %v10008_v14  ;;  %v4616_v58 = vadd.f32 %v4552_v25, %v10399_v16  ;;  %v10452_v30 = vadd.f32 %v4251_v17, %v9991_v0 }
0x1130   : > { %v4619_v37 = vadd.f32 %v4555_v41, %v10421_v44  ;;  %v4428_v42 = vmul.f32 %v10441_v47, %v10441_v47  ;;  %v10455_v21 = vadd.f32 %v4364_v4, %v9995_v22  ;;  %7347 = vtanh.f32 %v4681_v36 }
0x1131   : > { %v4557_v49 = vmul.f32 0.044715, %v4493_v20  ;;  %v4430_v26 = vmul.f32 %v10446_v7, %v10446_v7  ;;  %v10460_v52 = vadd.f32 %v4253_v29, %v10000_v23  ;;  %v4431_v50 = vmul.f32 %v10452_v30, %v10452_v30 }
0x1132   : > { %v4492_v15 = vmul.f32 %v4428_v42, %v10441_v47  ;;  %v4433_v55 = vmul.f32 %v10455_v21, %v10455_v21  ;;  %v10468_v39 = vadd.f32 %v4366_v43, %v10008_v14  ;;  %v4801_v13 = vadd.f32 1.0, %v7332_v54 }
0x1133   : > { %v7334_v10 = vpop.eup %7333  ;;  %v4618_v6 = vadd.f32 %v4554_v53, %v10406_v5  ;;  %v4683_v8 = vmul.f32 0.7978846, %v4619_v37  ;;  %v4494_v33 = vmul.f32 %v4430_v26, %v10446_v7  ;;  %v4621_v35 = vadd.f32 %v4557_v49, %v10432_v9  ;;  %v4370_v26 = vpop.f32.mrf.mxu1 }
0x1134   : > { %v4803_v2 = vadd.f32 1.0, %v7334_v10  ;;  %v4556_v31 = vmul.f32 0.044715, %v4492_v15  ;;  %v4495_v57 = vmul.f32 %v4431_v50, %v10452_v30  ;;  %7349 = vtanh.f32 %v4676_v59 }
0x1135   : > { %v4558_v46 = vmul.f32 0.044715, %v4494_v33  ;;  %v4497_v51 = vmul.f32 %v4433_v55, %v10455_v21  ;;  %v4432_v1 = vmul.f32 %v10460_v52, %v10460_v52  ;;  %7351 = vtanh.f32 %v4678_v56 }
0x1136   : > { %v7336_v19 = vpop.eup %7335  ;;  %v4680_v62 = vmul.f32 0.7978846, %v4616_v58  ;;  %v4434_v27 = vmul.f32 %v10468_v39, %v10468_v39  ;;  %v4863_v25 = vmul.f32 0.5, %v4799_v3  ;;  %v4865_v54 = vmul.f32 0.5, %v4801_v13  ;;  %v4257_v3 = vpop.f32.mrf.mxu0 }
0x1137   : > { %v10477_v17 = vpop.eup %7337  ;;  %v4805_v28 = vadd.f32 1.0, %v7336_v19  ;;  %v4682_v59 = vmul.f32 0.7978846, %v4618_v6  ;;  %v4620_v36 = vadd.f32 %v4556_v31, %v10441_v47  ;;  %v4867_v60 = vmul.f32 0.5, %v4803_v2 }
0x1138   : > { %v10481_v4 = vpop.eup %7339  ;;  %7353 = vtanh.f32 %v4683_v8  ;;  %v4685_v53 = vmul.f32 0.7978846, %v4621_v35  ;;  %v4559_v29 = vmul.f32 0.044715, %v4495_v57  ;;  %v4622_v56 = vadd.f32 %v4558_v46, %v10446_v7 }
0x1139   : > { %v10484_v41 = vpop.eup %7341  ;;  %v4561_v20 = vmul.f32 0.044715, %v4497_v51  ;;  %v4496_v43 = vmul.f32 %v4432_v1, %v10460_v52  ;;  %v10491_v58 = vadd.f32 %v4255_v45, %v9991_v0  ;;  %v4869_v42 = vmul.f32 0.5, %v4805_v28  ;;  %v4374_v51 = vpop.f32.mrf.mxu1 }
0x113a   : > { %v10486_v37 = vpop.eup %7343  ;;  %7355 = vtanh.f32 %v4680_v62  ;;  %v4498_v49 = vmul.f32 %v4434_v27, %v10468_v39  ;;  %v10495_v10 = vmul.f32 %v4863_v25, %v10306_v12  ;;  %v10498_v15 = vmul.f32 %v4865_v54, %v10317_v63  ;;  %v4261_v63 = vpop.f32.mrf.mxu0 }
0x113b   : > { %7357 = vtanh.f32 %v4682_v59  ;;  %v4684_v50 = vmul.f32 0.7978846, %v4620_v36  ;;  %v7346_v55 = vpop.eup %7345  ;;  %v10501_v13 = vmul.f32 %v4867_v60, %v10352_v48  ;;  %v4623_v6 = vadd.f32 %v4559_v29, %v10452_v30 }
0x113c   : > { %7359 = vtanh.f32 %v4685_v53  ;;  %v4435_v8 = vmul.f32 %v10491_v58, %v10491_v58  ;;  %v4686_v33 = vmul.f32 0.7978846, %v4622_v56  ;;  %v4625_v2 = vadd.f32 %v4561_v20, %v10455_v21  ;;  %v4263_v60 = vpop.f32.mrf.mxu0 }
0x113d   : > { %v4560_v12 = vmul.f32 0.044715, %v4496_v43  ;;  %v10508_v35 = vadd.f32 %v4368_v38, %v9995_v22  ;;  %v7348_v31 = vpop.eup %7347  ;;  %v10511_v57 = vmul.f32 %v4869_v42, %v10366_v11  ;;  %v4562_v48 = vmul.f32 0.044715, %v4498_v49 }
0x113e   : > { %v4499_v19 = vmul.f32 %v4435_v8, %v10491_v58  ;;  %v10515_v46 = vadd.f32 %v4257_v3, %v10000_v23  ;;  %v4807_v1 = vadd.f32 1.0, %v7346_v55  ;;  %7361 = vtanh.f32 %v4684_v50 }
0x113f   : > { %v4437_v45 = vmul.f32 %v10508_v35, %v10508_v35  ;;  %v10520_v28 = vadd.f32 %v4370_v26, %v10008_v14  ;;  %v4687_v62 = vmul.f32 0.7978846, %v4623_v6  ;;  %v10525_v38 = vadd.f32 %v4261_v63, %v9991_v0 }
0x1140   : > { %v4563_v27 = vmul.f32 0.044715, %v4499_v19  ;;  %v4436_v11 = vmul.f32 %v10515_v46, %v10515_v46  ;;  %v4624_v25 = vadd.f32 %v4560_v12, %v10460_v52  ;;  %v10532_v36 = vadd.f32 %v4374_v51, %v9995_v22  ;;  %v4376_v51 = vpop.f32.mrf.mxu1 }
0x1141   : > { %11082 = vst [vmem:[#allocation21_spill] sm:$0xff] %v10525_v38  ;;  %v4501_v54 = vmul.f32 %v4437_v45, %v10508_v35  ;;  %v4438_v59 = vmul.f32 %v10520_v28, %v10520_v28  ;;  %v10534_v53 = vpop.eup %7349  ;;  %v4809_v29 = vadd.f32 1.0, %v7348_v31  ;;  %v4626_v56 = vadd.f32 %v4562_v48, %v10468_v39 }
0x1142   : > { %11083 = vst [vmem:[#allocation20_spill] sm:$0xff] %v10532_v36  ;;  %v4500_v20 = vmul.f32 %v4436_v11, %v10515_v46  ;;  %v4439_v43 = vmul.f32 %v10525_v38, %v10525_v38  ;;  %v10540_v3 = vpop.eup %7351  ;;  %v4627_v42 = vadd.f32 %v4563_v27, %v10491_v58  ;;  %v4441_v50 = vmul.f32 %v10532_v36, %v10532_v36 }
0x1143   : > { %v4565_v49 = vmul.f32 0.044715, %v4501_v54  ;;  %v4502_v26 = vmul.f32 %v4438_v59, %v10520_v28  ;;  %v4689_v55 = vmul.f32 0.7978846, %v4625_v2  ;;  %v10548_v12 = vadd.f32 %v4263_v60, %v10000_v23 }
0x1144   : > { %v4564_v6 = vmul.f32 0.044715, %v4500_v20  ;;  %v4503_v8 = vmul.f32 %v4439_v43, %v10525_v38  ;;  %7363 = vtanh.f32 %v4686_v33  ;;  %v4688_v31 = vmul.f32 0.7978846, %v4624_v25  ;;  %v4265_v33 = vpop.f32.mrf.mxu0 }
0x1145   : > { %v7354_v63 = vpop.eup %7353  ;;  %v4629_v48 = vadd.f32 %v4565_v49, %v10508_v35  ;;  %v4566_v19 = vmul.f32 0.044715, %v4502_v26  ;;  %v4871_v45 = vmul.f32 0.5, %v4807_v1  ;;  %v4690_v27 = vmul.f32 0.7978846, %v4626_v56 }
0x1146   : > { %v4628_v11 = vadd.f32 %v4564_v6, %v10515_v46  ;;  %v4567_v54 = vmul.f32 0.044715, %v4503_v8  ;;  %7365 = vtanh.f32 %v4687_v62  ;;  %v4691_v2 = vmul.f32 0.7978846, %v4627_v42 }
0x1147   : > { %v10552_v59 = vpop.eup %7355  ;;  %v4505_v20 = vmul.f32 %v4441_v50, %v10532_v36  ;;  %v4440_v60 = vmul.f32 %v10548_v12, %v10548_v12  ;;  %v4811_v43 = vadd.f32 1.0, %v7354_v63  ;;  %7367 = vtanh.f32 %v4689_v55  ;;  %v4378_v50 = vpop.f32.mrf.mxu1 }
0x1148   : > { %v10557_v25 = vpop.eup %7357  ;;  %v4693_v49 = vmul.f32 0.7978846, %v4629_v48  ;;  %v10560_v1 = vadd.f32 %v4376_v51, %v10008_v14  ;;  %v10562_v26 = vmul.f32 0.5, %v4809_v29  ;;  %7369 = vtanh.f32 %v4688_v31  ;;  %v4267_v51 = vpop.f32.mrf.mxu0 }
0x1149   : > { %v7360_v56 = vpop.eup %7359  ;;  %v4630_v62 = vadd.f32 %v4566_v19, %v10520_v28  ;;  %v4504_v42 = vmul.f32 %v4440_v60, %v10548_v12  ;;  %v10567_v6 = vmul.f32 %v4871_v45, %v10382_v32  ;;  %7371 = vtanh.f32 %v4690_v27 }
0x114a   : > { %v4692_v8 = vmul.f32 0.7978846, %v4628_v11  ;;  %v4631_v55 = vadd.f32 %v4567_v54, %v10525_v38  ;;  %7373 = vtanh.f32 %v4691_v2  ;;  %v4569_v63 = vmul.f32 0.044715, %v4505_v20  ;;  %v4380_v2 = vpop.f32.mrf.mxu1 }
0x114b   : > { %v4568_v48 = vmul.f32 0.044715, %v4504_v42  ;;  %v4442_v29 = vmul.f32 %v10560_v1, %v10560_v1  ;;  %v10572_v31 = vpop.eup %7361  ;;  %v10574_v19 = vmul.f32 0.5, %v4811_v43  ;;  %v4813_v60 = vadd.f32 1.0, %v7360_v56 }
0x114c   : > { %7375 = vtanh.f32 %v4693_v49  ;;  %v10577_v32 = vadd.f32 %v4265_v33, %v9991_v0  ;;  %v4694_v45 = vmul.f32 0.7978846, %v4630_v62  ;;  %v10582_v54 = vadd.f32 %v4378_v50, %v9995_v22 }
0x114d   : > { %v4632_v27 = vadd.f32 %v4568_v48, %v10548_v12  ;;  %v4506_v11 = vmul.f32 %v4442_v29, %v10560_v1  ;;  %7377 = vtanh.f32 %v4692_v8  ;;  %v4695_v20 = vmul.f32 0.7978846, %v4631_v55 }
0x114e   : > { %11084 = vst [vmem:[#allocation23_spill] sm:$0xff] %v10577_v32  ;;  %v4443_v43 = vmul.f32 %v10577_v32, %v10577_v32  ;;  %v10587_v56 = vadd.f32 %v4267_v51, %v10000_v23  ;;  %v4633_v0 = vadd.f32 %v4569_v63, %v10532_v36  ;;  %v4445_v62 = vmul.f32 %v10582_v54, %v10582_v54 }
0x114f   : > { %v4696_v33 = vmul.f32 0.7978846, %v4632_v27  ;;  %v4570_v49 = vmul.f32 0.044715, %v4506_v11  ;;  %v10596_v50 = vadd.f32 %v4380_v2, %v10008_v14  ;;  %v4800_v8 = vadd.f32 1.0, %v10484_v41 }
0x1150   : > { %v4507_v42 = vmul.f32 %v4443_v43, %v10577_v32  ;;  %v4444_v22 = vmul.f32 %v10587_v56, %v10587_v56  ;;  %7379 = vtanh.f32 %v4694_v45  ;;  %v4509_v55 = vmul.f32 %v4445_v62, %v10582_v54 }
0x1151   : > { %v4634_v23 = vadd.f32 %v4570_v49, %v10560_v1  ;;  %v4804_v63 = vadd.f32 1.0, %v10534_v53  ;;  %v7364_v48 = vpop.eup %7363  ;;  %v4446_v27 = vmul.f32 %v10596_v50, %v10596_v50  ;;  %v4864_v11 = vmul.f32 0.5, %v4800_v8 }
0x1152   : > { %v4571_v29 = vmul.f32 0.044715, %v4507_v42  ;;  %v4508_v51 = vmul.f32 %v4444_v22, %v10587_v56  ;;  %7381 = vtanh.f32 %v4695_v20  ;;  %v4573_v2 = vmul.f32 0.044715, %v4509_v55 }
0x1153   : > { %v4698_v14 = vmul.f32 0.7978846, %v4634_v23  ;;  %v4868_v43 = vmul.f32 0.5, %v4804_v63  ;;  %v7366_v41 = vpop.eup %7365  ;;  %7383 = vtanh.f32 %v4696_v33  ;;  %v4510_v62 = vmul.f32 %v4446_v27, %v10596_v50 }
0x1154   : > { %v4635_v45 = vadd.f32 %v4571_v29, %v10577_v32  ;;  %v4572_v49 = vmul.f32 0.044715, %v4508_v51  ;;  %v7368_v53 = vpop.eup %7367  ;;  %v4637_v42 = vadd.f32 %v4573_v2, %v10582_v54  ;;  %v4928_v22 = vmul.f32 %v4864_v11, %v10320_v34 }
0x1155   : > { %v4932_v36 = vmul.f32 %v4868_v43, %v10373_v24  ;;  %v4802_v8 = vadd.f32 1.0, %v10486_v37  ;;  %v7370_v20 = vpop.eup %7369  ;;  %7385 = vtanh.f32 %v4698_v14  ;;  %v4574_v33 = vmul.f32 0.044715, %v4510_v62 }
0x1156   : > { %v4699_v23 = vmul.f32 0.7978846, %v4635_v45  ;;  %v4636_v55 = vadd.f32 %v4572_v49, %v10587_v56  ;;  %v7372_v63 = vpop.eup %7371  ;;  %v4697_v29 = vmul.f32 0.7978846, %v4633_v0  ;;  %v4701_v51 = vmul.f32 0.7978846, %v4637_v42 }
0x1157   : > { %v4976_v38 = vpack.c.bf16 %v4932_v36, %v4928_v22  ;;  %v4806_v27 = vadd.f32 1.0, %v10540_v3  ;;  %v7374_v32 = vpop.eup %7373  ;;  %v4877_v2 = vmul.f32 0.5, %v4813_v60  ;;  %v4638_v24 = vadd.f32 %v4574_v33, %v10596_v50 }
0x1158   : > { %7387 = vtanh.f32 %v4699_v23  ;;  %v4700_v34 = vmul.f32 0.7978846, %v4636_v55  ;;  %v10616_v37 = vmul.f32 %v10562_v26, %v10394_v40  ;;  %v4866_v14 = vmul.f32 0.5, %v4802_v8 }
0x1159   : > { %v7376_v11 = vpop.eup %7375  ;;  %7389 = vtanh.f32 %v4701_v51  ;;  %5318 = vmatprep.mubr.bf16.mxu0 %v4976_v38  ;;  %v4870_v43 = vmul.f32 0.5, %v4806_v27  ;;  %v4815_v0 = vadd.f32 1.0, %v7366_v41  ;;  %v4702_v36 = vmul.f32 0.7978846, %v4638_v24 }
0x115a   : > { %7391 = vtanh.f32 %v4700_v34  ;;  %v4975_v3 = vpack.c.bf16 %v10501_v13, %v10495_v10  ;;  %v7378_v60 = vpop.eup %7377  ;;  %v4817_v45 = vadd.f32 1.0, %v7368_v53  ;;  %v4930_v49 = vmul.f32 %v4866_v14, %v10323_v61 }
0x115b   : > { %7393 = vtanh.f32 %v4697_v29  ;;  %v4934_v62 = vmul.f32 %v4870_v43, %v10376_v18  ;;  %v4939_v40 = vmul.f32 %v10574_v19, %v10421_v44  ;;  %v4941_v38 = vmul.f32 %v4877_v2, %v10432_v9 }
0x115c   : > { %7395 = vtanh.f32 %v4702_v36  ;;  %5319 = vmatmul.mubr.bf16.gmra.mxu0 %v4975_v3  ;;  %v4808_v26 = vadd.f32 1.0, %v10552_v59  ;;  %v4812_v42 = vadd.f32 1.0, %v10572_v31  ;;  %v4810_v10 = vadd.f32 1.0, %v10557_v25 }
0x115d   : > { %v4978_v41 = vpack.c.bf16 %v4934_v62, %v4930_v49  ;;  %v4814_v13 = vadd.f32 1.0, %v7364_v48  ;;  %v7380_v53 = vpop.eup %7379  ;;  %v4879_v22 = vmul.f32 0.5, %v4815_v0  ;;  %v4819_v61 = vadd.f32 1.0, %v7374_v32 }
0x115e   : > { %v4977_v18 = vpack.c.bf16 %v10511_v57, %v10498_v15  ;;  %v4872_v8 = vmul.f32 0.5, %v4808_v26  ;;  %v10630_v44 = vmul.f32 0.5, %v4817_v45  ;;  %v4876_v9 = vmul.f32 0.5, %v4812_v42 }
0x115f   : > { %5415 = vmatprep.mubr.bf16.mxu1 %v4978_v41  ;;  %v4874_v19 = vmul.f32 0.5, %v4810_v10  ;;  %v4878_v23 = vmul.f32 0.5, %v4814_v13  ;;  %v7382_v59 = vpop.eup %7381  ;;  %v4821_v55 = vadd.f32 1.0, %v7376_v11  ;;  %v4816_v25 = vadd.f32 1.0, %v7370_v20 }
0x1160   : > { %5416 = vmatmul.mubr.bf16.gmra.mxu1 %v4977_v18  ;;  %v4936_v31 = vmul.f32 %v4872_v8, %v10399_v16  ;;  %v4820_v48 = vadd.f32 1.0, %v7378_v60  ;;  %v7384_v33 = vpop.eup %7383  ;;  %v4940_v32 = vmul.f32 %v4876_v9, %v10441_v47  ;;  %v4818_v57 = vadd.f32 1.0, %v7372_v63  ;;  %v11086_v18 = vld [vmem:[#allocation56_spill] sm:$0xff] }
0x1161   : > { %v4938_v29 = vmul.f32 %v4874_v19, %v10406_v5  ;;  %v4942_v15 = vmul.f32 %v4878_v23, %v10446_v7  ;;  %v4883_v51 = vmul.f32 0.5, %v4819_v61  ;;  %v4880_v27 = vmul.f32 0.5, %v4816_v25 }
0x1162   : > { %v4884_v2 = vmul.f32 0.5, %v4820_v48  ;;  %v4822_v34 = vadd.f32 1.0, %v7380_v53  ;;  %v7386_v24 = vpop.eup %7385  ;;  %v4980_v14 = vpack.c.bf16 %v4940_v32, %v4936_v31  ;;  %v4979_v43 = vpack.c.bf16 %v4939_v40, %v10567_v6 }
0x1163   : > { %v4982_v11 = vpack.c.bf16 %v4942_v15, %v4938_v29  ;;  %v4882_v16 = vmul.f32 0.5, %v4818_v57  ;;  %v4944_v20 = vmul.f32 %v4880_v27, %v10460_v52  ;;  %v4824_v36 = vadd.f32 1.0, %v7384_v33 }
0x1164   : > { %v4948_v0 = vmul.f32 %v4884_v2, %v10515_v46  ;;  %v4886_v47 = vmul.f32 0.5, %v4822_v34  ;;  %v4885_v3 = vmul.f32 0.5, %v4821_v55  ;;  %5326 = vmatprep.mubr.bf16.mxu0 %v4980_v14  ;;  %v4981_v7 = vpack.c.bf16 %v4941_v38, %v10616_v37  ;;  %v11088_v34 = vld [vmem:[#allocation21_spill] sm:$0xff] }
0x1165   : > { %v7388_v5 = vpop.eup %7387  ;;  %5423 = vmatprep.mubr.bf16.mxu1 %v4982_v11  ;;  %v4770_v63 = vadd.f32 1.0, %v10477_v17  ;;  %v4774_v60 = vadd.f32 1.0, %v10481_v4  ;;  %5327 = vmatmul.mubr.bf16.gmra.mxu0 %v4979_v43  ;;  %v4946_v49 = vmul.f32 %v4882_v16, %v10468_v39  ;;  %v4826_v46 = vadd.f32 1.0, %v7386_v24  ;;  %v11089_v24 = vld [vmem:[#allocation20_spill] sm:$0xff] }
0x1166   : > { %v7390_v45 = vpop.eup %7389  ;;  %v4984_v6 = vpack.c.bf16 %v4948_v0, %v4944_v20  ;;  %v4950_v52 = vmul.f32 %v4886_v47, %v10520_v28  ;;  %v4943_v40 = vmul.f32 %v4879_v22, %v10452_v30  ;;  %v4947_v26 = vmul.f32 %v4883_v51, %v10491_v58  ;;  %v11085_v28 = vld [vmem:[#allocation58_spill] sm:$0xff] }
0x1167   : > { %v7392_v62 = vpop.eup %7391  ;;  %v4834_v41 = vmul.f32 0.5, %v4770_v63  ;;  %v4838_v42 = vmul.f32 0.5, %v4774_v60  ;;  %v4827_v38 = vadd.f32 1.0, %v7388_v5  ;;  %v4888_v10 = vmul.f32 0.5, %v4824_v36 }
0x1168   : > { %v7394_v37 = vpop.eup %7393  ;;  %5424 = vmatmul.mubr.bf16.gmra.mxu1 %v4981_v7  ;;  %5334 = vmatprep.mubr.bf16.mxu0 %v4984_v6  ;;  %v4986_v17 = vpack.c.bf16 %v4950_v52, %v4946_v49  ;;  %v4828_v4 = vadd.f32 1.0, %v7392_v62  ;;  %v4949_v39 = vmul.f32 %v4885_v3, %v10508_v35  ;;  %v4823_v53 = vadd.f32 1.0, %v7382_v59  ;;  %v10669_v52 = vld [vmem:[%s10787_s16] ss:$0 sm:$0xff] }
0x1169   : > { %v7396_v13 = vpop.eup %7395  ;;  %v4898_v61 = vmul.f32 %v4834_v41, %v11085_v28  ;;  %v4902_v8 = vmul.f32 %v4838_v42, %v11086_v18  ;;  %v4829_v30 = vadd.f32 1.0, %v7390_v45  ;;  %v4890_v9 = vmul.f32 0.5, %v4826_v46 }
0x116a   : > { %5431 = vmatprep.mubr.bf16.mxu1 %v4986_v17  ;;  %v4892_v58 = vmul.f32 0.5, %v4828_v4  ;;  %v4830_v22 = vadd.f32 1.0, %v7396_v13  ;;  %v4945_v19 = vmul.f32 %v10630_v44, %v10455_v21  ;;  %v4825_v23 = vadd.f32 1.0, %v7394_v37  ;;  %v11087_v21 = vld [vmem:[#allocation23_spill] sm:$0xff] }
0x116b   : > { %v4983_v55 = vpack.c.bf16 %v4947_v26, %v4943_v40  ;;  %v4962_v31 = vpack.c.bf16 %v4902_v8, %v4898_v61  ;;  %v4891_v25 = vmul.f32 0.5, %v4827_v38  ;;  %v4952_v48 = vmul.f32 %v4888_v10, %v10548_v12  ;;  %v11093_v8 = vld [vmem:[#allocation37_spill] sm:$0xff] }
0x116c   : > { %v4956_v35 = vmul.f32 %v4892_v58, %v10587_v56  ;;  %v4894_v59 = vmul.f32 0.5, %v4830_v22  ;;  %v4887_v33 = vmul.f32 0.5, %v4823_v53  ;;  %v4985_v32 = vpack.c.bf16 %v4949_v39, %v4945_v19  ;;  %v11094_v58 = vld [vmem:[#allocation43_spill] sm:$0xff] }
0x116d   : > { %v4893_v29 = vmul.f32 0.5, %v4829_v30  ;;  %5335 = vmatmul.mubr.bf16.gmra.mxu0 %v4983_v55  ;;  %v4954_v57 = vmul.f32 %v4890_v9, %v10560_v1  ;;  %v4889_v27 = vmul.f32 0.5, %v4825_v23  ;;  %v4955_v44 = vmul.f32 %v4891_v25, %v11087_v21  ;;  %v11090_v1 = vld [vmem:[#allocation60_spill] sm:$0xff] }
0x116e   : > { %v4988_v15 = vpack.c.bf16 %v4956_v35, %v4952_v48  ;;  %v4958_v51 = vmul.f32 %v4894_v59, %v10596_v50  ;;  %v4951_v12 = vmul.f32 %v4887_v33, %v11088_v34  ;;  %v11091_v50 = vld [vmem:[#allocation62_spill] sm:$0xff]  ;;  %v11095_v21 = vld [vmem:[#allocation44_spill] sm:$0xff] }
0x116f   : > { %v4957_v56 = vmul.f32 %v4893_v29, %v10582_v54  ;;  %v4953_v14 = vmul.f32 %v4889_v27, %v11089_v24  ;;  %v11092_v16 = vpack.c.bf16 %v11090_v1, %v11091_v50 }
0x1170   : > { %5432 = vmatmul.mubr.bf16.gmra.mxu1 %v4985_v32  ;;  %5342 = vmatprep.mubr.bf16.mxu0 %v4988_v15  ;;  %v4990_v2 = vpack.c.bf16 %v4958_v51, %v4954_v57  ;;  %v4987_v11 = vpack.c.bf16 %v4955_v44, %v4951_v12 }
0x1171   : > { %v4989_v43 = vpack.c.bf16 %v4957_v56, %v4953_v14 }
0x1172   : > { %5439 = vmatprep.mubr.bf16.mxu1 %v4990_v2  ;;  %v11096_v2 = vld [vmem:[#allocation48_spill] sm:$0xff] }
0x1175   : > { %5343 = vmatmul.mubr.bf16.gmra.mxu0 %v4987_v11 }
0x1176   : > { %5383 = vmatprep.mubr.bf16.mxu0 %v4962_v31 }
0x1178   : > { %5440 = vmatmul.mubr.bf16.gmra.mxu1 %v4989_v43 }
0x117d   : > { %5384 = vmatmul.mubr.bf16.vlgmr.msra.gmra.mxu0 %v11092_v16 }
0x11ce   : > { %v6107_v20 = vpop.f32.mrf.mxu0 }
0x11d0   : > { %v6108_v0 = vpop.f32.mrf.mxu0 }
0x11d1   : > { %v10662_v47 = vadd.f32 %v6108_v0, %v6107_v20  ;;  %v11097_v0 = vld [vmem:[#allocation46_spill] sm:$0xff] }
0x11d2   : > { %v6110_v36 = vpop.f32.mrf.mxu0 }
0x11d3   : > { %v6177_v5 = vpop.f32.mrf.mxu1 }
0x11d4   : > { %v6111_v3 = vpop.f32.mrf.mxu0 }
0x11d5   : > { %v10664_v54 = vadd.f32 %v6111_v3, %v6110_v36  ;;  %v6178_v7 = vpop.f32.mrf.mxu1 }
0x11d6   : > { %v6113_v63 = vpop.f32.mrf.mxu0  ;;  %v6179_v41 = vadd.f32 %v6178_v7, %v6177_v5  ;;  %v11098_v5 = vld [vmem:[#allocation50_spill] sm:$0xff] }
0x11d7   : > { %v6180_v60 = vpop.f32.mrf.mxu1 }
0x11d8   : > { %v6114_v45 = vpop.f32.mrf.mxu0 }
0x11d9   : > { %v6115_v6 = vadd.f32 %v6114_v45, %v6113_v63  ;;  %v6181_v49 = vpop.f32.mrf.mxu1 }
0x11da   : > { %v6116_v46 = vpop.f32.mrf.mxu0  ;;  %v6182_v10 = vadd.f32 %v6181_v49, %v6180_v60 }
0x11db   : > { %v5297_v62 = vadd.f32 %v6115_v6, %v10669_v52  ;;  %v6183_v40 = vpop.f32.mrf.mxu1 }
0x11dc   : > { %v6117_v26 = vpop.f32.mrf.mxu0 }
0x11dd   : > { %v6118_v42 = vadd.f32 %v6117_v26, %v6116_v46  ;;  %v6184_v37 = vpop.f32.mrf.mxu1  ;;  %v5394_v17 = vadd.f32 %v6179_v41, %v5297_v62 }
0x11de   : > { %v6119_v38 = vpop.f32.mrf.mxu0  ;;  %v6185_v55 = vadd.f32 %v6184_v37, %v6183_v40 }
0x11df   : > { %v5300_v4 = vadd.f32 %v6118_v42, %v10669_v52  ;;  %v6186_v13 = vpop.f32.mrf.mxu1  ;;  %v5450_v30 = vadd.f32 %v5394_v17, %v11093_v8  ;;  %v11099_v8 = vld [vmem:[#allocation49_spill] sm:$0xff] }
0x11e0   : > { %v6120_v39 = vpop.f32.mrf.mxu0 }
0x11e1   : > { %v5397_v53 = vadd.f32 %v6182_v10, %v5300_v4  ;;  %v6121_v28 = vadd.f32 %v6120_v39, %v6119_v38  ;;  %v6187_v18 = vpop.f32.mrf.mxu1 }
0x11e2   : > { %v6122_v61 = vpop.f32.mrf.mxu0  ;;  %v6188_v33 = vadd.f32 %v6187_v18, %v6186_v13 }
0x11e3   : > { %v5451_v22 = vadd.f32 %v5397_v53, %v11094_v58  ;;  %v5305_v9 = vadd.f32 %v6121_v28, %v10669_v52  ;;  %v11100_v58 = vld [vmem:[#allocation40_spill] sm:$0xff] }
0x11e4   : > { %v6123_v19 = vpop.f32.mrf.mxu0 }
0x11e5   : > { %v5881_v23 = vpack.c.bf16 %v5451_v22, %v5450_v30  ;;  %v6124_v31 = vadd.f32 %v6123_v19, %v6122_v61  ;;  %v6189_v48 = vpop.f32.mrf.mxu1  ;;  %v5402_v35 = vadd.f32 %v6185_v55, %v5305_v9 }
0x11e6   : > { %v6125_v25 = vpop.f32.mrf.mxu0 }
0x11e7   : > { %5913 = vst [vmem:[%s10679_s3 + $0x8] sm:$0xff] %v5881_v23   ;;  %v5308_v59 = vadd.f32 %v6124_v31, %v10669_v52  ;;  %v6190_v29 = vpop.f32.mrf.mxu1  ;;  %v5452_v44 = vadd.f32 %v5402_v35, %v11095_v21 }
0x11e8   : > { %v6126_v32 = vpop.f32.mrf.mxu0  ;;  %v6191_v11 = vadd.f32 %v6190_v29, %v6189_v48 }
0x11e9   : > { %v5405_v15 = vadd.f32 %v6188_v33, %v5308_v59  ;;  %v6127_v57 = vadd.f32 %v6126_v32, %v6125_v25  ;;  %v6192_v27 = vpop.f32.mrf.mxu1 }
0x11ea   : > { %v6128_v51 = vpop.f32.mrf.mxu0 }
0x11eb   : > { %v5453_v34 = vadd.f32 %v5405_v15, %v11096_v2  ;;  %v5313_v12 = vadd.f32 %v6127_v57, %v10669_v52  ;;  %v6193_v24 = vpop.f32.mrf.mxu1 }
0x11ec   : > { %v6129_v56 = vpop.f32.mrf.mxu0  ;;  %v6194_v16 = vadd.f32 %v6193_v24, %v6192_v27 }
0x11ed   : > { %v5886_v14 = vpack.c.bf16 %v5453_v34, %v5452_v44  ;;  %v6130_v43 = vadd.f32 %v6129_v56, %v6128_v51  ;;  %v5410_v1 = vadd.f32 %v6191_v11, %v5313_v12  ;;  %v11101_v44 = vld [vmem:[#allocation47_spill] sm:$0xff]  ;;  %v11102_v34 = vld [vmem:[#allocation42_spill] sm:$0xff] }
0x11ef   : > { %5914 = vst [vmem:[%s10679_s3 + $0x10] sm:$0xff] %v5886_v14   ;;  %v5316_v50 = vadd.f32 %v6130_v43, %v10669_v52  ;;  %v5454_v36 = vadd.f32 %v5410_v1, %v11097_v0 }
0x11f1   : > { %v5413_v20 = vadd.f32 %v6194_v16, %v5316_v50 }
0x11f3   : > { %v5455_v3 = vadd.f32 %v5413_v20, %v11098_v5 }
0x11f5   : > { %v5891_v7 = vpack.c.bf16 %v5455_v3, %v5454_v36 }
0x11f7   : > { %5915 = vst [vmem:[%s10679_s3 + $0x18] sm:$0xff] %v5891_v7  }
0x121c   : > { %v6131_v63 = vpop.f32.mrf.mxu0 }
0x121e   : > { %v6132_v60 = vpop.f32.mrf.mxu0 }
0x121f   : > { %v6133_v45 = vadd.f32 %v6132_v60, %v6131_v63 }
0x1220   : > { %v6195_v6 = vpop.f32.mrf.mxu1  ;;  %v6134_v49 = vpop.f32.mrf.mxu0 }
0x1221   : > { %v5321_v40 = vadd.f32 %v6133_v45, %v10669_v52 }
0x1222   : > { %v6196_v46 = vpop.f32.mrf.mxu1  ;;  %v6135_v62 = vpop.f32.mrf.mxu0 }
0x1223   : > { %v6136_v26 = vadd.f32 %v6135_v62, %v6134_v49  ;;  %v6197_v42 = vadd.f32 %v6196_v46, %v6195_v6  ;;  %v11103_v6 = vld [vmem:[#allocation41_spill] sm:$0xff] }
0x1224   : > { %v6198_v41 = vpop.f32.mrf.mxu1  ;;  %v11104_v46 = vld [vmem:[#allocation69_spill] sm:$0xff] }
0x1225   : > { %v5324_v37 = vadd.f32 %v6136_v26, %v10669_v52  ;;  %v6137_v17 = vpop.f32.mrf.mxu0  ;;  %v5418_v4 = vadd.f32 %v6197_v42, %v5321_v40 }
0x1226   : > { %v6199_v38 = vpop.f32.mrf.mxu1 }
0x1227   : > { %v6200_v10 = vadd.f32 %v6199_v38, %v6198_v41  ;;  %v6138_v39 = vpop.f32.mrf.mxu0  ;;  %v5456_v30 = vadd.f32 %v5418_v4, %v11099_v8  ;;  %v5289_v8 = vadd.f32 %v10662_v47, %v10669_v52 }
0x1228   : > { %v6201_v13 = vpop.f32.mrf.mxu1  ;;  %v6139_v28 = vadd.f32 %v6138_v39, %v6137_v17 }
0x1229   : > { %v5421_v53 = vadd.f32 %v6200_v10, %v5324_v37  ;;  %v6140_v18 = vpop.f32.mrf.mxu0 }
0x122a   : > { %v6202_v61 = vpop.f32.mrf.mxu1  ;;  %v5329_v9 = vadd.f32 %v6139_v28, %v10669_v52 }
0x122b   : > { %v5457_v22 = vadd.f32 %v5421_v53, %v11100_v58  ;;  %v6141_v23 = vpop.f32.mrf.mxu0  ;;  %v6203_v31 = vadd.f32 %v6202_v61, %v6201_v13 }
0x122c   : > { %v6204_v19 = vpop.f32.mrf.mxu1  ;;  %v6142_v25 = vadd.f32 %v6141_v23, %v6140_v18  ;;  %v5292_v23 = vadd.f32 %v10664_v54, %v10669_v52 }
0x122d   : > { %v5896_v55 = vpack.c.bf16 %v5457_v22, %v5456_v30  ;;  %v6143_v35 = vpop.f32.mrf.mxu0  ;;  %v5426_v59 = vadd.f32 %v6203_v31, %v5329_v9  ;;  %v11105_v30 = vld [vmem:[#allocation39_spill] sm:$0xff] }
0x122e   : > { %v6205_v48 = vpop.f32.mrf.mxu1  ;;  %v5332_v33 = vadd.f32 %v6142_v25, %v10669_v52  ;;  %v11106_v22 = vld [vmem:[#allocation67_spill] sm:$0xff] }
0x122f   : > { %5916 = vst [vmem:[%s10679_s3 + $0x20] sm:$0xff] %v5896_v55   ;;  %v6206_v32 = vadd.f32 %v6205_v48, %v6204_v19  ;;  %v6144_v15 = vpop.f32.mrf.mxu0  ;;  %v5458_v2 = vadd.f32 %v5426_v59, %v11101_v44  ;;  %v11108_v59 = vld [vmem:[#allocation45_spill] sm:$0xff] }
0x1230   : > { %v6207_v29 = vpop.f32.mrf.mxu1  ;;  %v6145_v51 = vadd.f32 %v6144_v15, %v6143_v35  ;;  %v11107_v35 = vld [vmem:[#allocation38_spill] sm:$0xff] }
0x1231   : > { %v5429_v57 = vadd.f32 %v6206_v32, %v5332_v33  ;;  %v6146_v21 = vpop.f32.mrf.mxu0 }
0x1232   : > { %v6208_v27 = vpop.f32.mrf.mxu1  ;;  %v5337_v56 = vadd.f32 %v6145_v51, %v10669_v52 }
0x1233   : > { %v5459_v12 = vadd.f32 %v5429_v57, %v11102_v34  ;;  %v6147_v14 = vpop.f32.mrf.mxu0  ;;  %v6209_v43 = vadd.f32 %v6208_v27, %v6207_v29 }
0x1234   : > { %v6210_v24 = vpop.f32.mrf.mxu1  ;;  %v6148_v1 = vadd.f32 %v6147_v14, %v6146_v21 }
0x1235   : > { %v5901_v11 = vpack.c.bf16 %v5459_v12, %v5458_v2  ;;  %v6149_v16 = vpop.f32.mrf.mxu0  ;;  %v5434_v20 = vadd.f32 %v6209_v43, %v5337_v56 }
0x1236   : > { %v6211_v50 = vpop.f32.mrf.mxu1  ;;  %v5340_v0 = vadd.f32 %v6148_v1, %v10669_v52 }
0x1237   : > { %5917 = vst [vmem:[%s10679_s3 + $0x28] sm:$0xff] %v5901_v11   ;;  %v6212_v36 = vadd.f32 %v6211_v50, %v6210_v24  ;;  %v6150_v3 = vpop.f32.mrf.mxu0  ;;  %v5460_v49 = vadd.f32 %v5434_v20, %v11103_v6 }
0x1238   : > { %v6213_v5 = vpop.f32.mrf.mxu1  ;;  %v6151_v63 = vadd.f32 %v6150_v3, %v6149_v16 }
0x1239   : > { %v5437_v7 = vadd.f32 %v6212_v36, %v5340_v0  ;;  %v6152_v45 = vpop.f32.mrf.mxu0 }
0x123a   : > { %v6214_v60 = vpop.f32.mrf.mxu1  ;;  %v5345_v40 = vadd.f32 %v6151_v63, %v10669_v52 }
0x123b   : > { %v5461_v62 = vadd.f32 %v5437_v7, %v11104_v46  ;;  %v6153_v41 = vpop.f32.mrf.mxu0  ;;  %v6215_v37 = vadd.f32 %v6214_v60, %v6213_v5 }
0x123c   : > { %v6216_v26 = vpop.f32.mrf.mxu1  ;;  %v6154_v38 = vadd.f32 %v6153_v41, %v6152_v45 }
0x123d   : > { %v5906_v42 = vpack.c.bf16 %v5461_v62, %v5460_v49  ;;  %v6171_v4 = vpop.f32.mrf.mxu0  ;;  %v5442_v10 = vadd.f32 %v6215_v37, %v5345_v40 }
0x123e   : > { %v6217_v17 = vpop.f32.mrf.mxu1  ;;  %v5348_v13 = vadd.f32 %v6154_v38, %v10669_v52 }
0x123f   : > { %5918 = vst [vmem:[%s10679_s3 + $0x30] sm:$0xff] %v5906_v42   ;;  %v6218_v39 = vadd.f32 %v6217_v17, %v6216_v26  ;;  %v6172_v53 = vpop.f32.mrf.mxu0  ;;  %v5462_v58 = vadd.f32 %v5442_v10, %v11105_v30 }
0x1240   : > { %v6173_v61 = vadd.f32 %v6172_v53, %v6171_v4 }
0x1241   : > { %v5445_v28 = vadd.f32 %v6218_v39, %v5348_v13  ;;  %v6174_v18 = vpop.f32.mrf.mxu0 }
0x1242   : > { %v5386_v31 = vadd.f32 %v6173_v61, %v5289_v8 }
0x1243   : > { %v5463_v9 = vadd.f32 %v5445_v28, %v11106_v22  ;;  %v6175_v19 = vpop.f32.mrf.mxu0 }
0x1244   : > { %v6176_v25 = vadd.f32 %v6175_v19, %v6174_v18  ;;  %v5448_v47 = vadd.f32 %v5386_v31, %v11107_v35 }
0x1245   : > { %v5911_v55 = vpack.c.bf16 %v5463_v9, %v5462_v58 }
0x1246   : > { %v5389_v48 = vadd.f32 %v6176_v25, %v5292_v23 }
0x1247   : > { %5919 = vst [vmem:[%s10679_s3 + $0x38] sm:$0xff] %v5911_v55  }
0x1248   : > { %v5449_v33 = vadd.f32 %v5389_v48, %v11108_v59 }
0x124a   : > { %v5876_v32 = vpack.c.bf16 %v5449_v33, %v5448_v47 }
0x124c   : > { %5877 = vst [vmem:[%s10679_s3] sm:$0xff] %v5876_v32  }
0x124d   : > { %7531 = shalt.err (!%p7528_p11)
}
0x124e   : > { %s7532_s29 = scalar_lea.hbm %s10722_s0, 1024  ;;  %s7536_s30 = scalar_lea.hbm %s10788_s17, 8192 }
0x124f   : > { %p7533_p0 = scmp.ne.s32.totalorder %s10722_s0, %s7532_s29  ;;  %p7537_p2 = scmp.lt.s32.totalorder %s10722_s0, %s10788_s17 }
0x1250   : > { %p7538_p10 = scmp.lt.s32.totalorder %s7536_s30, %s7532_s29 }
0x1251   : > { %p7534_p3 = pnand %p7533_p0, %p7734_p5 }
0x1252   : > { %p7539_p9 = por %p7538_p10, %p7537_p2 }
0x1253   : > { %p7535_p1 = pneg %p7534_p3 }
0x1255   : > { %p7540_p12 = pnand %p7539_p9, %p7535_p1 }
0x1257   : > { %7543 = shalt.err (!%p7540_p12)
}
0x1258   : > { %s7605_s28 = smov 4   ;;  %s11109_s24 = smov 64  }
0x1259   : > { %6625 = dma.vmem_to_hbm [thread:$0]  (%p7734_p5), %s10724_s21, 1024, %s10722_s0, %s10729_s20, %s11109_s24, %s11109_s24, %s7605_s28  }
0x125a PF: > { %s11110_s26 = sld [smem:[#allocation15_spill]]  ;;  %p6652_p13 = scmp.ge.s32.totalorder %s7590_s27, 2 }
0x125c   : > { %p6641_p4 = pnand %p6652_p13, %p7738_p6 }
0x125e   : > { %p6642_p7 = pneg %p6641_p4 }
0x1260   : > { %s5574_s19 = sand.u32 1, %s11110_s26  }
0x1261   : > { %s5575_s29 = scalar_lea.sflag [#allocation4], %s5574_s19 }
0x1262   : > { %7573 = dma.done.wait (%p6642_p7), %s5575_s29, 1024  }
0x1263   : > { %7575 = vsyncadd (%p6642_p7), %s5575_s29, 4294966272  ;;  %s11112_s27 = sld [smem:[#allocation17_spill]]  ;;  %s11115_s24 = smov %s7582_s25 }
0x1264   : > { %s11113_s1 = sld [smem:[#allocation16_spill]] }
0x1265   : > { %s11114_s26 = sld [smem:[#allocation18_spill]] }
0x1269   : > { %p30_p8 = scmp.ge.s32.totalorder %s11112_s27, 10  }
0x126a   : > { %s11116_s25 = smov %s11113_s1 }
0x126b   :  { %32 = sbr.rel (!%p30_p8) target bundleno = 10 (0xa), region = 140 }
0x1270   :  { %5580 = vsyncpa [#allocation3], 1 }
0x1271   :  { %5582 = vsyncpa [#allocation3 + $0x1], 1 }
0x1272   :  { %5583 = vsyncpa [#allocation6], 1 }
0x1273   :  { %5584 = vsyncpa [#allocation9], 1 }
0x1274   :  { %5585 = vsyncpa [#allocation4], 1 }
0x1275   :  { %5587 = vsyncpa [#allocation4 + $0x1], 1 }

</bundles_post_ra>
